<compile_context>
chip_gen: v5e
topology: v5e:2x2
jax: 0.10.0
libtpu: 0.0.40
codegen_flags: <defaults>
</compile_context>

<pallas_src>
import functools

import jax
import jax.numpy as jnp
from jax.experimental import pallas as pl
from jax.experimental.pallas import tpu as pltpu

NEG_INF = -1e30


def _elu(x):
    # F.elu, alpha=1
    return jnp.where(x > 0, x, jnp.exp(x) - 1.0)


def _round_up(x, m):
    return ((x + m - 1) // m) * m


def gat_layer_kernel(
        feat_ref, adjt_ref, io_ref,
        w1_ref, a1_ref, b1_ref,
        w2_ref, a2_ref, b2_ref,
        wl_ref, bl_ref,
        out_ref,
        x1_scr, z1_scr, z2_scr, el_scr, er_scr,
        *, dt, neg_slope, tile_rows, adj_resident):
    layer = pl.program_id(0)
    tile = pl.program_id(1)
    row0 = pl.multiple_of(tile * tile_rows, tile_rows)

    def project(x, w_ref, a_ref, z_scr):
        """z = x @ W (bf16 inputs, f32 accum); el/er scores via one small matmul."""
        z = jnp.dot(x.astype(jnp.bfloat16), w_ref[...].astype(jnp.bfloat16),
                    preferred_element_type=jnp.float32)                  # (N, D)
        z_scr[...] = z.astype(z_scr.dtype)
        scores = jnp.dot(z, a_ref[...],
                         preferred_element_type=jnp.float32)             # (N, 2)
        el_scr[...] = scores[:, 0:1].T          # (1, N) per-src score (lane-major)
        er_scr[...] = scores[:, 1:2]            # (N, 1) per-dst score

    def attend(z_scr, b_ref):
        """Edge softmax + aggregation for the current destination-row tile."""
        if adj_resident:
            adj_blk = adjt_ref[pl.ds(row0, tile_rows), :]   # (T, N) int8, resident
        else:
            adj_blk = adjt_ref[...]                          # (T, N) int8, streamed
        mask = adj_blk != 0                                   # no int8->f32 cast
        er_t = er_scr[pl.ds(row0, tile_rows), :]              # (T, 1)
        e = er_t + el_scr[...]                                 # (T, N)
        e = jnp.maximum(e, neg_slope * e)                      # leaky_relu(0.2)
        e = jnp.where(mask, e, NEG_INF)                        # mask non-edges
        m = jnp.max(e, axis=-1, keepdims=True)
        p = jnp.exp(e - m)                                     # non-edges underflow to 0
        denom = jnp.sum(p, axis=-1, keepdims=True)             # > 0 (self-loops assumed)
        agg = jnp.dot(p.astype(jnp.bfloat16), z_scr[...],
                      preferred_element_type=jnp.float32)      # (T, D)
        return agg * pl.reciprocal(denom, approx=True) + b_ref[...]

    @pl.when(layer == 0)
    def _layer0():
        @pl.when(tile == 0)
        def _():
            project(feat_ref[...], w1_ref, a1_ref, z1_scr)
        h = attend(z1_scr, b1_ref)
        # conv1 applies F.elu inside GATConv (activation=...), and forward()
        # applies F.elu again -> elu(elu(.)) matches the reference module.
        h = _elu(_elu(h))
        # TODO(synk): attn_drop / F.dropout skipped (inference, training=False).
        x1_scr[pl.ds(row0, tile_rows), :] = h.astype(x1_scr.dtype)
        # out_ref deliberately NOT written here: layer 1 revisits the same HBM
        # blocks (layer-independent out index_map) and fully overwrites them.

    @pl.when(layer == 1)
    def _layer1():
        @pl.when(tile == 0)
        def _():
            project(x1_scr[...], w2_ref, a2_ref, z2_scr)
        h = _elu(attend(z2_scr, b2_ref))
        logits = jnp.dot(h, wl_ref[...],
                         preferred_element_type=jnp.float32) + bl_ref[...]   # (T, 3)
        sig = jax.nn.sigmoid(logits)
        io = io_ref[...]                          # (T, 8): [u, s, a0, b0, g0, pad]
        u, s = io[:, 0:1], io[:, 1:2]
        alphas = sig[:, 2:3] * io[:, 2:3]
        beta = sig[:, 0:1] * io[:, 3:4]
        gamma = sig[:, 1:2] * io[:, 4:5]
        up = u + (alphas - beta * u) * dt
        sp = s + (beta * u - gamma * s) * dt
        # Single lane-dense full-width store (no masked 1-lane column writes).
        out_ref[...] = jnp.concatenate(
            [up, sp, alphas, beta, gamma,
             jnp.zeros((tile_rows, 3), jnp.float32)], axis=1)


def prepare_adjacency(adj):
    """ONE-TIME model setup: dst-major int8 edge mask adj_t[dst, src].

    adj[i, j] != 0 means edge i -> j; self-loops must be present (every dst row
    needs at least one incoming edge)."""
    adj_t = (jnp.asarray(adj).T != 0).astype(jnp.int8)
    if not isinstance(adj_t, jax.core.Tracer):
        assert bool(jnp.all(jnp.any(adj_t != 0, axis=1))), (
            "every destination row needs >=1 incoming edge (add self-loops)")
    return adj_t


def pack_params(raw_params):
    """ONE-TIME: concat attn_l/attn_r into (D, 2) so el/er come from one matmul."""
    w1, al1, ar1, b1, w2, al2, ar2, b2, wl, bl = raw_params
    a1 = jnp.concatenate([al1.T, ar1.T], axis=1)   # (D1, 2) columns = [l, r]
    a2 = jnp.concatenate([al2.T, ar2.T], axis=1)   # (D2, 2)
    return (w1, a1, b1, w2, a2, b2, wl, bl)


def _vmem_estimate_bytes(n_pad, fin, d1, d2, tile_rows, adj_resident):
    """Real footprint: scratches + 2x double-buffered blocks + residents."""
    def f32(r, c):
        return _round_up(r, 8) * _round_up(c, 128) * 4

    def bf16(r, c):
        return _round_up(r, 16) * _round_up(c, 128) * 2

    def i8(r, c):
        return _round_up(r, 32) * _round_up(c, 128)

    scratch = (bf16(n_pad, d1)            # x1 (bf16)
               + bf16(n_pad, d1)          # z1
               + bf16(n_pad, d2)          # z2
               + f32(1, n_pad)            # el row
               + f32(n_pad, 1))           # er col (lane-padded)
    blocks = 2 * (f32(n_pad, fin)                          # feat (resident)
                  + f32(tile_rows, 8)                      # packed ODE inputs
                  + f32(tile_rows, 8)                      # packed outputs
                  + f32(fin, d1) + f32(d1, 2) + f32(1, d1)
                  + f32(d1, d2) + f32(d2, 2) + f32(1, d2)
                  + f32(d2, 3) + f32(1, 3))
    adj = 2 * (i8(n_pad, n_pad) if adj_resident else i8(tile_rows, n_pad))
    return scratch + blocks + adj


def gat_layer_forward(feat, adj_t, params, unsplice, splice,
                      alpha0, beta0, gamma0, dt, *,
                      tile_rows=128, adj_resident=None):
    """feat: (N, in_feats); adj_t: (N, N) int8 dst-major mask (prepare_adjacency).

    unsplice/splice/alpha0/beta0/gamma0: (N, 1); dt: python float.
    Returns (unsplice_predict, splice_predict, alphas, beta, gamma), each (N, 1).
    """
    N, fin = feat.shape
    w1, a1, b1, w2, a2, b2, wl, bl = params
    d1, d2 = w1.shape[1], w2.shape[1]

    # Pad N up to a multiple of the tile so the streaming/pipelined block shape
    # is kept for any N (padded dst rows have zero in-degree -> finite garbage
    # confined to padded rows; padded src cols are masked out of real rows).
    n_pad = max(_round_up(N, tile_rows), tile_rows)
    num_tiles = n_pad // tile_rows

    # Lane-dense packed ODE inputs: [unsplice, splice, alpha0, beta0, gamma0, pad3].
    io_in = jnp.concatenate(
        [unsplice, splice, alpha0, beta0, gamma0,
         jnp.zeros((N, 3), jnp.float32)], axis=1).astype(jnp.float32)    # (N, 8)

    pad = n_pad - N
    if pad:
        feat = jnp.pad(feat, ((0, pad), (0, 0)))
        adj_t = jnp.pad(adj_t, ((0, pad), (0, pad)))
        io_in = jnp.pad(io_in, ((0, pad), (0, 0)))

    if adj_resident is None:
        # Keep the int8 mask resident (one DMA total) when it's comfortably
        # small; stream (tile_rows, N) blocks per layer otherwise.
        adj_resident = (n_pad * n_pad) <= (8 << 20)

    kernel = functools.partial(gat_layer_kernel, dt=float(dt), neg_slope=0.2,
                               tile_rows=tile_rows, adj_resident=adj_resident)

    def full(shape):
        return pl.BlockSpec(shape, lambda l, t: (0,) * len(shape))

    def row_tiled(cols):
        return pl.BlockSpec((tile_rows, cols), lambda l, t: (t, 0))

    if adj_resident:
        adj_spec = pl.BlockSpec((n_pad, n_pad), lambda l, t: (0, 0))
    else:
        adj_spec = pl.BlockSpec((tile_rows, n_pad), lambda l, t: (t, 0))

    in_specs = [
        full((n_pad, fin)),      # feat: resident across the whole grid
        adj_spec,                # int8 adjacency: resident or streamed per tile
        row_tiled(8),            # packed ODE inputs
        full(w1.shape), full(a1.shape), full(b1.shape),
        full(w2.shape), full(a2.shape), full(b2.shape),
        full(wl.shape), full(bl.shape),
    ]

    est = _vmem_estimate_bytes(n_pad, fin, d1, d2, tile_rows, adj_resident)
    vmem_limit = min(max(int(est * 1.5) + (4 << 20), 16 << 20), 128 << 20)

    packed = pl.pallas_call(
        kernel,
        out_shape=jax.ShapeDtypeStruct((n_pad, 8), jnp.float32),
        grid=(2, num_tiles),
        in_specs=in_specs,
        out_specs=row_tiled(8),
        scratch_shapes=[
            pltpu.VMEM((n_pad, d1), jnp.bfloat16),   # x1: conv1 output (conv2 input)
            pltpu.VMEM((n_pad, d1), jnp.bfloat16),   # z1 = feat @ W1
            pltpu.VMEM((n_pad, d2), jnp.bfloat16),   # z2 = x1 @ W2
            pltpu.VMEM((1, n_pad), jnp.float32),     # el row (per-src scores)
            pltpu.VMEM((n_pad, 1), jnp.float32),     # er col (per-dst scores)
        ],
        compiler_params=pltpu.CompilerParams(
            # Both axes "arbitrary": layer 1 depends on ALL layer-0 tiles via the
            # x1 VMEM scratch, so the dst-tile axis cannot be megacore-parallel.
            dimension_semantics=("arbitrary", "arbitrary"),
            vmem_limit_bytes=vmem_limit,
        ),
    )(feat, adj_t, io_in, w1, a1, b1, w2, a2, b2, wl, bl)

    packed = packed[:N]
    return (packed[:, 0:1], packed[:, 1:2], packed[:, 2:3],
            packed[:, 3:4], packed[:, 4:5])


def init_params(key, in_feats, h1, h2, num_heads):
    d1 = num_heads * h1      # conv1 out_feats (GATConv num_heads=1)
    d2 = h2                  # conv2 out_feats
    ks = jax.random.split(key, 10)
    sc = 0.1
    w1 = sc * jax.random.normal(ks[0], (in_feats, d1), jnp.float32)
    al1 = sc * jax.random.normal(ks[1], (1, d1), jnp.float32)
    ar1 = sc * jax.random.normal(ks[2], (1, d1), jnp.float32)
    b1 = sc * jax.random.normal(ks[3], (1, d1), jnp.float32)
    w2 = sc * jax.random.normal(ks[4], (d1, d2), jnp.float32)
    al2 = sc * jax.random.normal(ks[5], (1, d2), jnp.float32)
    ar2 = sc * jax.random.normal(ks[6], (1, d2), jnp.float32)
    b2 = sc * jax.random.normal(ks[7], (1, d2), jnp.float32)
    wl = sc * jax.random.normal(ks[8], (d2, 3), jnp.float32)
    bl = sc * jax.random.normal(ks[9], (1, 3), jnp.float32)
    return (w1, al1, ar1, b1, w2, al2, ar2, b2, wl, bl)


def gat_layer_reference(feat, adj_t, raw_params, unsplice, splice,
                        alpha0, beta0, gamma0, dt):
    """Pure-JAX f32 reference of the same forward pass (for validation)."""
    w1, al1, ar1, b1, w2, al2, ar2, b2, wl, bl = raw_params
    adj = (adj_t != 0).astype(jnp.float32)

    def conv(h, w, al, ar, b):
        z = h @ w
        el = jnp.sum(z * al, axis=-1, keepdims=True)
        er = jnp.sum(z * ar, axis=-1, keepdims=True)
        e = er + el.T
        e = jnp.where(e > 0, e, 0.2 * e)
        e = jnp.where(adj > 0, e, NEG_INF)
        a = jax.nn.softmax(e, axis=-1)
        return a @ z + b

    x = _elu(_elu(conv(feat, w1, al1, ar1, b1)))
    x = _elu(conv(x, w2, al2, ar2, b2))
    out = jax.nn.sigmoid(x @ wl + bl)
    beta = out[:, 0:1] * beta0
    gamma = out[:, 1:2] * gamma0
    alphas = out[:, 2:3] * alpha0
    up = unsplice + (alphas - beta * unsplice) * dt
    sp = splice + (beta * unsplice - gamma * splice) * dt
    return up, sp, alphas, beta, gamma


def _run_case(key, N, in_feats, h1, h2, num_heads, dt, **fwd_kwargs):
    k_feat, k_adj, k_u, k_s, k_a0, k_b0, k_g0, k_p = jax.random.split(key, 8)

    feat = jax.random.normal(k_feat, (N, in_feats), jnp.float32)
    # random sparse directed graph + self-loops; dst-major int8 built ONCE at setup
    adj = jnp.logical_or(jax.random.bernoulli(k_adj, 0.05, (N, N)),
                         jnp.eye(N, dtype=bool))
    adj_t = prepare_adjacency(adj)

    unsplice = jax.random.uniform(k_u, (N, 1), jnp.float32)
    splice = jax.random.uniform(k_s, (N, 1), jnp.float32)
    alpha0 = jax.random.uniform(k_a0, (N, 1), jnp.float32)
    beta0 = jax.random.uniform(k_b0, (N, 1), jnp.float32)
    gamma0 = jax.random.uniform(k_g0, (N, 1), jnp.float32)

    raw_params = init_params(k_p, in_feats, h1, h2, num_heads)
    params = pack_params(raw_params)

    outs = gat_layer_forward(feat, adj_t, params, unsplice, splice,
                             alpha0, beta0, gamma0, dt, **fwd_kwargs)
    outs = jax.block_until_ready(outs)

    for o in outs:
        assert o.shape == (N, 1)
        assert bool(jnp.all(jnp.isfinite(o)))

    refs = gat_layer_reference(feat, adj_t, raw_params, unsplice, splice,
                               alpha0, beta0, gamma0, dt)
    max_err = max(float(jnp.max(jnp.abs(o - r))) for o, r in zip(outs, refs))
    assert max_err < 5e-2, f"kernel/reference mismatch: {max_err}"


if __name__ == "__main__":
    key = jax.random.PRNGKey(0)
    k1, k2 = jax.random.split(key, 2)

    # Case 1: N multiple of 128, resident int8 adjacency (auto).
    _run_case(k1, N=256, in_feats=32, h1=16, h2=32, num_heads=2, dt=0.1)

    # Case 2: N not a multiple of 128 (exercises padding) + streaming adjacency.
    _run_case(k2, N=200, in_feats=32, h1=16, h2=32, num_heads=2, dt=0.1,
              adj_resident=False)

    print("KERNEL_OK")
</pallas_src>

<mosaic_0001>
module attributes {stable_mosaic.version = 11 : i64} {
  func.func @gat_layer_kernel(%arg0: i32, %arg1: i32, %arg2: memref<256x32xf32, #tpu.memory_space<vmem>>, %arg3: memref<256x256xi8, #tpu.memory_space<vmem>>, %arg4: memref<128x8xf32, #tpu.memory_space<vmem>>, %arg5: memref<32x32xf32, #tpu.memory_space<vmem>>, %arg6: memref<32x2xf32, #tpu.memory_space<vmem>>, %arg7: memref<1x32xf32, #tpu.memory_space<vmem>>, %arg8: memref<32x32xf32, #tpu.memory_space<vmem>>, %arg9: memref<32x2xf32, #tpu.memory_space<vmem>>, %arg10: memref<1x32xf32, #tpu.memory_space<vmem>>, %arg11: memref<32x3xf32, #tpu.memory_space<vmem>>, %arg12: memref<1x3xf32, #tpu.memory_space<vmem>>, %arg13: memref<128x8xf32, #tpu.memory_space<vmem>>, %arg14: memref<256x32xbf16, #tpu.memory_space<vmem>>, %arg15: memref<256x32xbf16, #tpu.memory_space<vmem>>, %arg16: memref<256x32xbf16, #tpu.memory_space<vmem>>, %arg17: memref<1x256xf32, #tpu.memory_space<vmem>>, %arg18: memref<256x1xf32, #tpu.memory_space<vmem>>) attributes {dimension_semantics = [#tpu.dimension_semantics<arbitrary>, #tpu.dimension_semantics<arbitrary>], iteration_bounds = array<i64: 2, 2>, scalar_prefetch = 0 : i64, scratch_operands = 5 : i64, tpu.core_type = #tpu.core_type<tc>, window_params = [{pipeline_mode = #tpu.pipeline_mode<synchronous>, transform_indices = @transform_0, window_bounds = array<i64: 256, 32>}, {pipeline_mode = #tpu.pipeline_mode<synchronous>, transform_indices = @transform_1, window_bounds = array<i64: 256, 256>}, {transform_indices = @transform_2, window_bounds = array<i64: 128, 8>}, {pipeline_mode = #tpu.pipeline_mode<synchronous>, transform_indices = @transform_3, window_bounds = array<i64: 32, 32>}, {pipeline_mode = #tpu.pipeline_mode<synchronous>, transform_indices = @transform_4, window_bounds = array<i64: 32, 2>}, {pipeline_mode = #tpu.pipeline_mode<synchronous>, transform_indices = @transform_5, window_bounds = array<i64: 1, 32>}, {pipeline_mode = #tpu.pipeline_mode<synchronous>, transform_indices = @transform_6, window_bounds = array<i64: 32, 32>}, {pipeline_mode = #tpu.pipeline_mode<synchronous>, transform_indices = @transform_7, window_bounds = array<i64: 32, 2>}, {pipeline_mode = #tpu.pipeline_mode<synchronous>, transform_indices = @transform_8, window_bounds = array<i64: 1, 32>}, {pipeline_mode = #tpu.pipeline_mode<synchronous>, transform_indices = @transform_9, window_bounds = array<i64: 32, 3>}, {pipeline_mode = #tpu.pipeline_mode<synchronous>, transform_indices = @transform_10, window_bounds = array<i64: 1, 3>}, {transform_indices = @transform_11, window_bounds = array<i64: 128, 8>}]} {
    %c128_i32 = arith.constant 128 : i32
    %0 = arith.muli %arg1, %c128_i32 : i32
    %1 = tpu.assume_multiple %0, 128 : i32
    %c0_i32 = arith.constant 0 : i32
    %2 = arith.cmpi eq, %arg0, %c0_i32 : i32
    %3 = arith.extui %2 : i1 to i32
    %c0_i32_0 = arith.constant 0 : i32
    %4 = arith.cmpi ne, %3, %c0_i32_0 : i32
    scf.if %4 {
      %c0_i32_2 = arith.constant 0 : i32
      %8 = arith.cmpi eq, %arg1, %c0_i32_2 : i32
      %9 = arith.extui %8 : i1 to i32
      %c0_i32_3 = arith.constant 0 : i32
      %10 = arith.cmpi ne, %9, %c0_i32_3 : i32
      scf.if %10 {
        %c0_20 = arith.constant 0 : index
        %c0_21 = arith.constant 0 : index
        %57 = vector.load %arg2[%c0_20, %c0_21] : memref<256x32xf32, #tpu.memory_space<vmem>>, vector<256x32xf32>
        %58 = arith.truncf %57 : vector<256x32xf32> to vector<256x32xbf16>
        %c0_22 = arith.constant 0 : index
        %c0_23 = arith.constant 0 : index
        %59 = vector.load %arg5[%c0_22, %c0_23] : memref<32x32xf32, #tpu.memory_space<vmem>>, vector<32x32xf32>
        %60 = arith.truncf %59 : vector<32x32xf32> to vector<32x32xbf16>
        %cst_24 = arith.constant dense<0.000000e+00> : vector<256x32xf32>
        %61 = tpu.matmul %58, %60, %cst_24 {dimension_numbers = #tpu.dot_dimension_numbers<[1], [0], [0], [1], [0, 0, 1, 1], [], []>} : vector<256x32xbf16>, vector<32x32xbf16>, vector<256x32xf32> -> vector<256x32xf32>
        %62 = arith.truncf %61 : vector<256x32xf32> to vector<256x32xbf16>
        %c0_25 = arith.constant 0 : index
        %c0_26 = arith.constant 0 : index
        %63 = vector.load %arg15[%c0_25, %c0_26] : memref<256x32xbf16, #tpu.memory_space<vmem>>, vector<256x32xbf16>
        tpu.vector_store %arg15[%c0_25, %c0_26], %62 {strides = array<i32>} : memref<256x32xbf16, #tpu.memory_space<vmem>>, vector<256x32xbf16>,
        %c0_27 = arith.constant 0 : index
        %c0_28 = arith.constant 0 : index
        %64 = vector.load %arg6[%c0_27, %c0_28] : memref<32x2xf32, #tpu.memory_space<vmem>>, vector<32x2xf32>
        %cst_29 = arith.constant dense<0.000000e+00> : vector<256x2xf32>
        %65 = tpu.matmul %61, %64, %cst_29 {dimension_numbers = #tpu.dot_dimension_numbers<[1], [0], [0], [1], [0, 0, 1, 1], [], []>} : vector<256x32xf32>, vector<32x2xf32>, vector<256x2xf32> -> vector<256x2xf32>
        %66 = vector.extract_strided_slice %65 {offsets = [0, 0], sizes = [256, 1], strides = [1, 1]} : vector<256x2xf32> to vector<256x1xf32>
        %67 = tpu.transpose %66, [1, 0] : vector<256x1xf32> -> vector<1x256xf32>
        %c0_30 = arith.constant 0 : index
        %c0_31 = arith.constant 0 : index
        %68 = vector.load %arg17[%c0_30, %c0_31] : memref<1x256xf32, #tpu.memory_space<vmem>>, vector<1x256xf32>
        tpu.vector_store %arg17[%c0_30, %c0_31], %67 {strides = array<i32>} : memref<1x256xf32, #tpu.memory_space<vmem>>, vector<1x256xf32>,
        %69 = vector.extract_strided_slice %65 {offsets = [0, 1], sizes = [256, 1], strides = [1, 1]} : vector<256x2xf32> to vector<256x1xf32>
        %c0_32 = arith.constant 0 : index
        %c0_33 = arith.constant 0 : index
        %70 = vector.load %arg18[%c0_32, %c0_33] : memref<256x1xf32, #tpu.memory_space<vmem>>, vector<256x1xf32>
        tpu.vector_store %arg18[%c0_32, %c0_33], %69 {strides = array<i32>} : memref<256x1xf32, #tpu.memory_space<vmem>>, vector<256x1xf32>,
      } else {
      }
      %11 = arith.index_cast %1 : i32 to index
      %c0 = arith.constant 0 : index
      %12 = vector.load %arg3[%11, %c0] : memref<256x256xi8, #tpu.memory_space<vmem>>, vector<128x256xi8>
      %c0_i8 = arith.constant 0 : i8
      %13 = vector.broadcast %c0_i8 : i8 to vector<128x256xi8>
      %14 = arith.cmpi ne, %12, %13 : vector<128x256xi8>
      %15 = arith.index_cast %1 : i32 to index
      %c0_4 = arith.constant 0 : index
      %16 = vector.load %arg18[%15, %c0_4] : memref<256x1xf32, #tpu.memory_space<vmem>>, vector<128x1xf32>
      %c0_5 = arith.constant 0 : index
      %c0_6 = arith.constant 0 : index
      %17 = vector.load %arg17[%c0_5, %c0_6] : memref<1x256xf32, #tpu.memory_space<vmem>>, vector<1x256xf32>
      %18 = vector.broadcast %16 : vector<128x1xf32> to vector<128x256xf32>
      %19 = vector.broadcast %17 : vector<1x256xf32> to vector<128x256xf32>
      %20 = arith.addf %18, %19 : vector<128x256xf32>
      %cst = arith.constant 2.000000e-01 : f32
      %21 = vector.broadcast %cst : f32 to vector<128x256xf32>
      %22 = arith.mulf %21, %20 : vector<128x256xf32>
      %23 = arith.maximumf %20, %22 : vector<128x256xf32>
      %cst_7 = arith.constant -1.000000e+30 : f32
      %24 = vector.broadcast %cst_7 : f32 to vector<128x256xf32>
      %25 = arith.select %14, %23, %24 : vector<128x256xi1>, vector<128x256xf32>
      %cst_8 = arith.constant dense<0xFF800000> : vector<128xf32>
      %26 = vector.multi_reduction <maximumf>, %25, %cst_8 [1] : vector<128x256xf32> to vector<128xf32>
      %27 = vector.shape_cast %26 : vector<128xf32> to vector<128x1xf32>
      %28 = vector.broadcast %27 : vector<128x1xf32> to vector<128x256xf32>
      %29 = arith.subf %25, %28 : vector<128x256xf32>
      %30 = math.exp %29 : vector<128x256xf32>
      %cst_9 = arith.constant dense<0.000000e+00> : vector<128xf32>
      %31 = vector.multi_reduction <add>, %30, %cst_9 [1] : vector<128x256xf32> to vector<128xf32>
      %32 = vector.shape_cast %31 : vector<128xf32> to vector<128x1xf32>
      %33 = arith.truncf %30 : vector<128x256xf32> to vector<128x256xbf16>
      %c0_10 = arith.constant 0 : index
      %c0_11 = arith.constant 0 : index
      %34 = vector.load %arg15[%c0_10, %c0_11] : memref<256x32xbf16, #tpu.memory_space<vmem>>, vector<256x32xbf16>
      %cst_12 = arith.constant dense<0.000000e+00> : vector<128x32xf32>
      %35 = tpu.matmul %33, %34, %cst_12 {dimension_numbers = #tpu.dot_dimension_numbers<[1], [0], [0], [1], [0, 0, 1, 1], [], []>} : vector<128x256xbf16>, vector<256x32xbf16>, vector<128x32xf32> -> vector<128x32xf32>
      %36 = tpu.reciprocal %32 {approx = true} : vector<128x1xf32> -> vector<128x1xf32>
      %37 = vector.broadcast %36 : vector<128x1xf32> to vector<128x32xf32>
      %38 = arith.mulf %35, %37 : vector<128x32xf32>
      %c0_13 = arith.constant 0 : index
      %c0_14 = arith.constant 0 : index
      %39 = vector.load %arg7[%c0_13, %c0_14] : memref<1x32xf32, #tpu.memory_space<vmem>>, vector<1x32xf32>
      %40 = vector.broadcast %39 : vector<1x32xf32> to vector<128x32xf32>
      %41 = arith.addf %38, %40 : vector<128x32xf32>
      %cst_15 = arith.constant 0.000000e+00 : f32
      %42 = vector.broadcast %cst_15 : f32 to vector<128x32xf32>
      %43 = arith.cmpf ogt, %41, %42 : vector<128x32xf32>
      %44 = math.exp %41 : vector<128x32xf32>
      %cst_16 = arith.constant 1.000000e+00 : f32
      %45 = vector.broadcast %cst_16 : f32 to vector<128x32xf32>
      %46 = arith.subf %44, %45 : vector<128x32xf32>
      %47 = arith.select %43, %41, %46 : vector<128x32xi1>, vector<128x32xf32>
      %cst_17 = arith.constant 0.000000e+00 : f32
      %48 = vector.broadcast %cst_17 : f32 to vector<128x32xf32>
      %49 = arith.cmpf ogt, %47, %48 : vector<128x32xf32>
      %50 = math.exp %47 : vector<128x32xf32>
      %cst_18 = arith.constant 1.000000e+00 : f32
      %51 = vector.broadcast %cst_18 : f32 to vector<128x32xf32>
      %52 = arith.subf %50, %51 : vector<128x32xf32>
      %53 = arith.select %49, %47, %52 : vector<128x32xi1>, vector<128x32xf32>
      %54 = arith.truncf %53 : vector<128x32xf32> to vector<128x32xbf16>
      %55 = arith.index_cast %1 : i32 to index
      %c0_19 = arith.constant 0 : index
      %56 = vector.load %arg14[%55, %c0_19] : memref<256x32xbf16, #tpu.memory_space<vmem>>, vector<128x32xbf16>
      tpu.vector_store %arg14[%55, %c0_19], %54 {strides = array<i32>} : memref<256x32xbf16, #tpu.memory_space<vmem>>, vector<128x32xbf16>,
    } else {
    }
    %c1_i32 = arith.constant 1 : i32
    %5 = arith.cmpi eq, %arg0, %c1_i32 : i32
    %6 = arith.extui %5 : i1 to i32
    %c0_i32_1 = arith.constant 0 : i32
    %7 = arith.cmpi ne, %6, %c0_i32_1 : i32
    scf.if %7 {
      %c0_i32_2 = arith.constant 0 : i32
      %8 = arith.cmpi eq, %arg1, %c0_i32_2 : i32
      %9 = arith.extui %8 : i1 to i32
      %c0_i32_3 = arith.constant 0 : i32
      %10 = arith.cmpi ne, %9, %c0_i32_3 : i32
      scf.if %10 {
        %c0_30 = arith.constant 0 : index
        %c0_31 = arith.constant 0 : index
        %84 = vector.load %arg14[%c0_30, %c0_31] : memref<256x32xbf16, #tpu.memory_space<vmem>>, vector<256x32xbf16>
        %c0_32 = arith.constant 0 : index
        %c0_33 = arith.constant 0 : index
        %85 = vector.load %arg8[%c0_32, %c0_33] : memref<32x32xf32, #tpu.memory_space<vmem>>, vector<32x32xf32>
        %86 = arith.truncf %85 : vector<32x32xf32> to vector<32x32xbf16>
        %cst_34 = arith.constant dense<0.000000e+00> : vector<256x32xf32>
        %87 = tpu.matmul %84, %86, %cst_34 {dimension_numbers = #tpu.dot_dimension_numbers<[1], [0], [0], [1], [0, 0, 1, 1], [], []>} : vector<256x32xbf16>, vector<32x32xbf16>, vector<256x32xf32> -> vector<256x32xf32>
        %88 = arith.truncf %87 : vector<256x32xf32> to vector<256x32xbf16>
        %c0_35 = arith.constant 0 : index
        %c0_36 = arith.constant 0 : index
        %89 = vector.load %arg16[%c0_35, %c0_36] : memref<256x32xbf16, #tpu.memory_space<vmem>>, vector<256x32xbf16>
        tpu.vector_store %arg16[%c0_35, %c0_36], %88 {strides = array<i32>} : memref<256x32xbf16, #tpu.memory_space<vmem>>, vector<256x32xbf16>,
        %c0_37 = arith.constant 0 : index
        %c0_38 = arith.constant 0 : index
        %90 = vector.load %arg9[%c0_37, %c0_38] : memref<32x2xf32, #tpu.memory_space<vmem>>, vector<32x2xf32>
        %cst_39 = arith.constant dense<0.000000e+00> : vector<256x2xf32>
        %91 = tpu.matmul %87, %90, %cst_39 {dimension_numbers = #tpu.dot_dimension_numbers<[1], [0], [0], [1], [0, 0, 1, 1], [], []>} : vector<256x32xf32>, vector<32x2xf32>, vector<256x2xf32> -> vector<256x2xf32>
        %92 = vector.extract_strided_slice %91 {offsets = [0, 0], sizes = [256, 1], strides = [1, 1]} : vector<256x2xf32> to vector<256x1xf32>
        %93 = tpu.transpose %92, [1, 0] : vector<256x1xf32> -> vector<1x256xf32>
        %c0_40 = arith.constant 0 : index
        %c0_41 = arith.constant 0 : index
        %94 = vector.load %arg17[%c0_40, %c0_41] : memref<1x256xf32, #tpu.memory_space<vmem>>, vector<1x256xf32>
        tpu.vector_store %arg17[%c0_40, %c0_41], %93 {strides = array<i32>} : memref<1x256xf32, #tpu.memory_space<vmem>>, vector<1x256xf32>,
        %95 = vector.extract_strided_slice %91 {offsets = [0, 1], sizes = [256, 1], strides = [1, 1]} : vector<256x2xf32> to vector<256x1xf32>
        %c0_42 = arith.constant 0 : index
        %c0_43 = arith.constant 0 : index
        %96 = vector.load %arg18[%c0_42, %c0_43] : memref<256x1xf32, #tpu.memory_space<vmem>>, vector<256x1xf32>
        tpu.vector_store %arg18[%c0_42, %c0_43], %95 {strides = array<i32>} : memref<256x1xf32, #tpu.memory_space<vmem>>, vector<256x1xf32>,
      } else {
      }
      %11 = arith.index_cast %1 : i32 to index
      %c0 = arith.constant 0 : index
      %12 = vector.load %arg3[%11, %c0] : memref<256x256xi8, #tpu.memory_space<vmem>>, vector<128x256xi8>
      %c0_i8 = arith.constant 0 : i8
      %13 = vector.broadcast %c0_i8 : i8 to vector<128x256xi8>
      %14 = arith.cmpi ne, %12, %13 : vector<128x256xi8>
      %15 = arith.index_cast %1 : i32 to index
      %c0_4 = arith.constant 0 : index
      %16 = vector.load %arg18[%15, %c0_4] : memref<256x1xf32, #tpu.memory_space<vmem>>, vector<128x1xf32>
      %c0_5 = arith.constant 0 : index
      %c0_6 = arith.constant 0 : index
      %17 = vector.load %arg17[%c0_5, %c0_6] : memref<1x256xf32, #tpu.memory_space<vmem>>, vector<1x256xf32>
      %18 = vector.broadcast %16 : vector<128x1xf32> to vector<128x256xf32>
      %19 = vector.broadcast %17 : vector<1x256xf32> to vector<128x256xf32>
      %20 = arith.addf %18, %19 : vector<128x256xf32>
      %cst = arith.constant 2.000000e-01 : f32
      %21 = vector.broadcast %cst : f32 to vector<128x256xf32>
      %22 = arith.mulf %21, %20 : vector<128x256xf32>
      %23 = arith.maximumf %20, %22 : vector<128x256xf32>
      %cst_7 = arith.constant -1.000000e+30 : f32
      %24 = vector.broadcast %cst_7 : f32 to vector<128x256xf32>
      %25 = arith.select %14, %23, %24 : vector<128x256xi1>, vector<128x256xf32>
      %cst_8 = arith.constant dense<0xFF800000> : vector<128xf32>
      %26 = vector.multi_reduction <maximumf>, %25, %cst_8 [1] : vector<128x256xf32> to vector<128xf32>
      %27 = vector.shape_cast %26 : vector<128xf32> to vector<128x1xf32>
      %28 = vector.broadcast %27 : vector<128x1xf32> to vector<128x256xf32>
      %29 = arith.subf %25, %28 : vector<128x256xf32>
      %30 = math.exp %29 : vector<128x256xf32>
      %cst_9 = arith.constant dense<0.000000e+00> : vector<128xf32>
      %31 = vector.multi_reduction <add>, %30, %cst_9 [1] : vector<128x256xf32> to vector<128xf32>
      %32 = vector.shape_cast %31 : vector<128xf32> to vector<128x1xf32>
      %33 = arith.truncf %30 : vector<128x256xf32> to vector<128x256xbf16>
      %c0_10 = arith.constant 0 : index
      %c0_11 = arith.constant 0 : index
      %34 = vector.load %arg16[%c0_10, %c0_11] : memref<256x32xbf16, #tpu.memory_space<vmem>>, vector<256x32xbf16>
      %cst_12 = arith.constant dense<0.000000e+00> : vector<128x32xf32>
      %35 = tpu.matmul %33, %34, %cst_12 {dimension_numbers = #tpu.dot_dimension_numbers<[1], [0], [0], [1], [0, 0, 1, 1], [], []>} : vector<128x256xbf16>, vector<256x32xbf16>, vector<128x32xf32> -> vector<128x32xf32>
      %36 = tpu.reciprocal %32 {approx = true} : vector<128x1xf32> -> vector<128x1xf32>
      %37 = vector.broadcast %36 : vector<128x1xf32> to vector<128x32xf32>
      %38 = arith.mulf %35, %37 : vector<128x32xf32>
      %c0_13 = arith.constant 0 : index
      %c0_14 = arith.constant 0 : index
      %39 = vector.load %arg10[%c0_13, %c0_14] : memref<1x32xf32, #tpu.memory_space<vmem>>, vector<1x32xf32>
      %40 = vector.broadcast %39 : vector<1x32xf32> to vector<128x32xf32>
      %41 = arith.addf %38, %40 : vector<128x32xf32>
      %cst_15 = arith.constant 0.000000e+00 : f32
      %42 = vector.broadcast %cst_15 : f32 to vector<128x32xf32>
      %43 = arith.cmpf ogt, %41, %42 : vector<128x32xf32>
      %44 = math.exp %41 : vector<128x32xf32>
      %cst_16 = arith.constant 1.000000e+00 : f32
      %45 = vector.broadcast %cst_16 : f32 to vector<128x32xf32>
      %46 = arith.subf %44, %45 : vector<128x32xf32>
      %47 = arith.select %43, %41, %46 : vector<128x32xi1>, vector<128x32xf32>
      %c0_17 = arith.constant 0 : index
      %c0_18 = arith.constant 0 : index
      %48 = vector.load %arg11[%c0_17, %c0_18] : memref<32x3xf32, #tpu.memory_space<vmem>>, vector<32x3xf32>
      %cst_19 = arith.constant dense<0.000000e+00> : vector<128x3xf32>
      %49 = tpu.matmul %47, %48, %cst_19 {dimension_numbers = #tpu.dot_dimension_numbers<[1], [0], [0], [1], [0, 0, 1, 1], [], []>} : vector<128x32xf32>, vector<32x3xf32>, vector<128x3xf32> -> vector<128x3xf32>
      %c0_20 = arith.constant 0 : index
      %c0_21 = arith.constant 0 : index
      %50 = vector.load %arg12[%c0_20, %c0_21] : memref<1x3xf32, #tpu.memory_space<vmem>>, vector<1x3xf32>
      %51 = vector.broadcast %50 : vector<1x3xf32> to vector<128x3xf32>
      %52 = arith.addf %49, %51 : vector<128x3xf32>
      %53 = arith.negf %52 : vector<128x3xf32>
      %54 = math.exp %53 : vector<128x3xf32>
      %cst_22 = arith.constant 1.000000e+00 : f32
      %55 = vector.broadcast %cst_22 : f32 to vector<128x3xf32>
      %56 = arith.addf %55, %54 : vector<128x3xf32>
      %57 = arith.divf %55, %56 : vector<128x3xf32>
      %c0_23 = arith.constant 0 : index
      %c0_24 = arith.constant 0 : index
      %58 = vector.load %arg4[%c0_23, %c0_24] : memref<128x8xf32, #tpu.memory_space<vmem>>, vector<128x8xf32>
      %59 = vector.extract_strided_slice %58 {offsets = [0, 0], sizes = [128, 1], strides = [1, 1]} : vector<128x8xf32> to vector<128x1xf32>
      %60 = vector.extract_strided_slice %58 {offsets = [0, 1], sizes = [128, 1], strides = [1, 1]} : vector<128x8xf32> to vector<128x1xf32>
      %61 = vector.extract_strided_slice %57 {offsets = [0, 2], sizes = [128, 1], strides = [1, 1]} : vector<128x3xf32> to vector<128x1xf32>
      %62 = vector.extract_strided_slice %58 {offsets = [0, 2], sizes = [128, 1], strides = [1, 1]} : vector<128x8xf32> to vector<128x1xf32>
      %63 = arith.mulf %61, %62 : vector<128x1xf32>
      %64 = vector.extract_strided_slice %57 {offsets = [0, 0], sizes = [128, 1], strides = [1, 1]} : vector<128x3xf32> to vector<128x1xf32>
      %65 = vector.extract_strided_slice %58 {offsets = [0, 3], sizes = [128, 1], strides = [1, 1]} : vector<128x8xf32> to vector<128x1xf32>
      %66 = arith.mulf %64, %65 : vector<128x1xf32>
      %67 = vector.extract_strided_slice %57 {offsets = [0, 1], sizes = [128, 1], strides = [1, 1]} : vector<128x3xf32> to vector<128x1xf32>
      %68 = vector.extract_strided_slice %58 {offsets = [0, 4], sizes = [128, 1], strides = [1, 1]} : vector<128x8xf32> to vector<128x1xf32>
      %69 = arith.mulf %67, %68 : vector<128x1xf32>
      %70 = arith.mulf %66, %59 : vector<128x1xf32>
      %71 = arith.subf %63, %70 : vector<128x1xf32>
      %cst_25 = arith.constant 1.000000e-01 : f32
      %72 = vector.broadcast %cst_25 : f32 to vector<128x1xf32>
      %73 = arith.mulf %71, %72 : vector<128x1xf32>
      %74 = arith.addf %59, %73 : vector<128x1xf32>
      %75 = arith.mulf %66, %59 : vector<128x1xf32>
      %76 = arith.mulf %69, %60 : vector<128x1xf32>
      %77 = arith.subf %75, %76 : vector<128x1xf32>
      %cst_26 = arith.constant 1.000000e-01 : f32
      %78 = vector.broadcast %cst_26 : f32 to vector<128x1xf32>
      %79 = arith.mulf %77, %78 : vector<128x1xf32>
      %80 = arith.addf %60, %79 : vector<128x1xf32>
      %cst_27 = arith.constant 0.000000e+00 : f32
      %81 = vector.broadcast %cst_27 : f32 to vector<128x3xf32>
      %82 = tpu.concatenate %74, %80, %63, %66, %69, %81 in 1 : vector<128x1xf32>, vector<128x1xf32>, vector<128x1xf32>, vector<128x1xf32>, vector<128x1xf32>, vector<128x3xf32> -> vector<128x8xf32>
      %c0_28 = arith.constant 0 : index
      %c0_29 = arith.constant 0 : index
      %83 = vector.load %arg13[%c0_28, %c0_29] : memref<128x8xf32, #tpu.memory_space<vmem>>, vector<128x8xf32>
      tpu.vector_store %arg13[%c0_28, %c0_29], %82 {strides = array<i32>} : memref<128x8xf32, #tpu.memory_space<vmem>>, vector<128x8xf32>,
    } else {
    }
    return
  }
  func.func @transform_0(%arg0: i32, %arg1: i32) -> (i32, i32) {
    %c0_i32 = arith.constant 0 : i32
    %c0_i32_0 = arith.constant 0 : i32
    %c0_i32_1 = arith.constant 0 : i32
    return %c0_i32, %c0_i32_0 : i32, i32
  }
  func.func @transform_1(%arg0: i32, %arg1: i32) -> (i32, i32) {
    %c0_i32 = arith.constant 0 : i32
    %c0_i32_0 = arith.constant 0 : i32
    %c0_i32_1 = arith.constant 0 : i32
    return %c0_i32, %c0_i32_0 : i32, i32
  }
  func.func @transform_2(%arg0: i32, %arg1: i32) -> (i32, i32) {
    %c0_i32 = arith.constant 0 : i32
    %c0_i32_0 = arith.constant 0 : i32
    return %arg1, %c0_i32 : i32, i32
  }
  func.func @transform_3(%arg0: i32, %arg1: i32) -> (i32, i32) {
    %c0_i32 = arith.constant 0 : i32
    %c0_i32_0 = arith.constant 0 : i32
    %c0_i32_1 = arith.constant 0 : i32
    return %c0_i32, %c0_i32_0 : i32, i32
  }
  func.func @transform_4(%arg0: i32, %arg1: i32) -> (i32, i32) {
    %c0_i32 = arith.constant 0 : i32
    %c0_i32_0 = arith.constant 0 : i32
    %c0_i32_1 = arith.constant 0 : i32
    return %c0_i32, %c0_i32_0 : i32, i32
  }
  func.func @transform_5(%arg0: i32, %arg1: i32) -> (i32, i32) {
    %c0_i32 = arith.constant 0 : i32
    %c0_i32_0 = arith.constant 0 : i32
    %c0_i32_1 = arith.constant 0 : i32
    return %c0_i32, %c0_i32_0 : i32, i32
  }
  func.func @transform_6(%arg0: i32, %arg1: i32) -> (i32, i32) {
    %c0_i32 = arith.constant 0 : i32
    %c0_i32_0 = arith.constant 0 : i32
    %c0_i32_1 = arith.constant 0 : i32
    return %c0_i32, %c0_i32_0 : i32, i32
  }
  func.func @transform_7(%arg0: i32, %arg1: i32) -> (i32, i32) {
    %c0_i32 = arith.constant 0 : i32
    %c0_i32_0 = arith.constant 0 : i32
    %c0_i32_1 = arith.constant 0 : i32
    return %c0_i32, %c0_i32_0 : i32, i32
  }
  func.func @transform_8(%arg0: i32, %arg1: i32) -> (i32, i32) {
    %c0_i32 = arith.constant 0 : i32
    %c0_i32_0 = arith.constant 0 : i32
    %c0_i32_1 = arith.constant 0 : i32
    return %c0_i32, %c0_i32_0 : i32, i32
  }
  func.func @transform_9(%arg0: i32, %arg1: i32) -> (i32, i32) {
    %c0_i32 = arith.constant 0 : i32
    %c0_i32_0 = arith.constant 0 : i32
    %c0_i32_1 = arith.constant 0 : i32
    return %c0_i32, %c0_i32_0 : i32, i32
  }
  func.func @transform_10(%arg0: i32, %arg1: i32) -> (i32, i32) {
    %c0_i32 = arith.constant 0 : i32
    %c0_i32_0 = arith.constant 0 : i32
    %c0_i32_1 = arith.constant 0 : i32
    return %c0_i32, %c0_i32_0 : i32, i32
  }
  func.func @transform_11(%arg0: i32, %arg1: i32) -> (i32, i32) {
    %c0_i32 = arith.constant 0 : i32
    %c0_i32_0 = arith.constant 0 : i32
    return %arg1, %c0_i32 : i32, i32
  }
}

</mosaic_0001>

<bundles_post_ra>
// kernel: tpu_custom_call.1
= control target key start
LH: loop header
LB: loop body
LE: loop exit
PB: predicated region body
PF: predicated region fallthrough
CT: control target
= control target key end

     0   :  { %s6146_s17 = smov 0   ;;  %s6148_s18 = smov 0   ;;  %s8551_s0 = inlined_call_operand.vmem [shape: f32[256,32], index: 0, kind: input, shape index: {}]   ;;  %s8552_s1 = inlined_call_operand.vmem [shape: s8[256,256], index: 1, kind: input, shape index: {}]   ;;  %s8553_s2 = inlined_call_operand.vmem [shape: f32[256,8], index: 2, kind: input, shape index: {}]   ;;  %s8554_s3 = inlined_call_operand.vmem [shape: f32[32,32], index: 3, kind: input, shape index: {}]   ;;  %s8555_s4 = inlined_call_operand.vmem [shape: f32[32,2], index: 4, kind: input, shape index: {}]   ;;  %s8556_s5 = inlined_call_operand.vmem [shape: f32[1,32], index: 5, kind: input, shape index: {}]   ;;  %s8557_s6 = inlined_call_operand.vmem [shape: f32[32,32], index: 6, kind: input, shape index: {}]   ;;  %s8558_s7 = inlined_call_operand.vmem [shape: f32[32,2], index: 7, kind: input, shape index: {}]   ;;  %s8559_s8 = inlined_call_operand.vmem [shape: f32[1,32], index: 8, kind: input, shape index: {}]   ;;  %s8560_s9 = inlined_call_operand.vmem [shape: f32[32,3], index: 9, kind: input, shape index: {}]   ;;  %s8561_s10 = inlined_call_operand.vmem [shape: f32[1,3], index: 10, kind: input, shape index: {}]   ;;  %s8562_s11 = inlined_call_operand.vmem [shape: f32[256,8], index: 11, kind: output, shape index: {}]  }
   0x1   :  { %8564 = sst [smem:[#allocation8_spill]] %s8553_s2  ;;  %s6150_s19 = smov 0  }
   0x2   :  { %s6152_s20 = smov 0   ;;  %s6154_s21 = smov 0  }
   0x3 LB: > { %s30_s22 = sadd.s32 1, %s6066_s19  ;;  %s33_s23 = sadd.s32 1, %s6070_s20  ;;  %s6074_s21 = sphi %s6154_s21, %s21_s21   ;;  %s6070_s20 = sphi %s6152_s20, %s8635_s20   ;;  %s6066_s19 = sphi %s6150_s19, %s8634_s19   ;;  %s6062_s18 = sphi %s6148_s18, %s8633_s18   ;;  %s6058_s17 = sphi %s6146_s17, %s8632_s17  }
   0x4   : > { %p31_p0 = scmp.ge.s32.totalorder %s30_s22, 2  ;;  %p5125_p1 = scmp.ge.s32.totalorder %s6074_s21, 1 }
   0x5   : > { %p350_p2 = scmp.lt.s32.totalorder %s6074_s21, 5 }
   0x6   : > { %s8637_s22 = smov (%p31_p0, %s30_s22), 0  ;;  %s8639_s23 = smov (!%p31_p0, %s33_s23), %s6070_s20 }
   0x7   : > { %p351_p3 = pnand %p5125_p1, %p350_p2  ;;  %p35_p4 = scmp.ge.s32.totalorder %s8639_s23, 2 }
   0x8   : > { %s5126_s24 = sshll.u32 (!%p351_p3), %s6058_s17, 4  ;;  %s6182_s25 = sshll.u32 (!%p351_p3), %s6058_s17, 7 }
   0x9   : > { %s8641_s23 = smov (%p35_p4, %s8639_s23), 0  ;;  %354 = sbr.rel (%p351_p3) target bundleno = 2934 (0xb76), region = 64 }
   0xa   : > { %p391_p5 = scmp.lt.s32.totalorder (!%p351_p3), %s5126_s24, 31  ;;  %s8565_s2 = sld [smem:[#allocation8_spill]] (!%p351_p3) }
   0xb   : > { %p5131_p6 = scmp.ne.s32.totalorder (!%p351_p3), %s6062_s18, 0 }
   0xe   : > { %s8643_s24 = smov (!%p391_p5, %s5126_s24), 31  ;;  %409 = sbr.rel (%p5131_p6) target bundleno = 1180 (0x49c), region = 68 }
   0xf   : > { %s5127_s26 = sshll.u32 %s8643_s24, 3  ;;  %p5132_p7 = scmp.ne.s32.totalorder (!%p5131_p6), %s6058_s17, 0 }
  0x10   : > { %s6187_s29 = scalar_lea.vmem %s8565_s2, %s5127_s26  ;;  %s6192_s13 = scalar_lea.vmem %s8562_s11, %s5127_s26 }
  0x13   : > { %413 = sbr.rel (%p5132_p7) target bundleno = 685 (0x2ad), region = 72  ;;  %s6076_s14 = smov (!%p5132_p7), 127  }
  0x18   : > { %v464_v0 = vld [vmem:[%s8554_s3 + $0x10] sm:$0xff]  ;;  %v465_v1 = vld [vmem:[%s8554_s3 + $0x18] sm:$0xff]  ;;  %v462_v2 = vld [vmem:[%s8554_s3] sm:$0xff]  ;;  %vm468_vm0 = vcmask 261120   ;;  %vm638_vm1 = vcmask 257024   ;;  %vm1087_vm2 = vcmask 7168  }
  0x19   : > { %v467_v3 = vpack.c.bf16 %v465_v1, %v464_v0  ;;  %v463_v4 = vld [vmem:[%s8554_s3 + $0x8] sm:$0xff]  ;;  %v414_v5 = vld [vmem:[%s8551_s0] sm:$0xff]  ;;  %v416_v12 = vld [vmem:[%s8551_s0 + $0x10] sm:$0xff]  ;;  %vm951_vm3 = vcmask 1040384  }
  0x1a   : > { %v466_v6 = vpack.c.bf16 %v463_v4, %v462_v2  ;;  %v415_v7 = vld [vmem:[%s8551_s0 + $0x8] sm:$0xff]  ;;  %v430_v8 = vld [vmem:[%s8551_s0 + $0x80] sm:$0xff]  ;;  %v417_v13 = vld [vmem:[%s8551_s0 + $0x18] sm:$0xff] }
  0x1b   : > { %523 = vmatpush.bf16.msra.mxu0 %v467_v3  ;;  %5560 = vmatpush.bf16.msra.mxu2 %v467_v3  ;;  %v431_v9 = vld [vmem:[%s8551_s0 + $0x88] sm:$0xff]  ;;  %v446_v10 = vpack.c.bf16 %v415_v7, %v414_v5  ;;  %v432_v14 = vld [vmem:[%s8551_s0 + $0x90] sm:$0xff]  ;;  %v433_v15 = vld [vmem:[%s8551_s0 + $0x98] sm:$0xff]  ;;  %v447_v16 = vpack.c.bf16 %v417_v13, %v416_v12 }
  0x1c   : > { %v454_v11 = vpack.c.bf16 %v431_v9, %v430_v8  ;;  %v455_v17 = vpack.c.bf16 %v433_v15, %v432_v14  ;;  %v418_v18 = vld [vmem:[%s8551_s0 + $0x20] sm:$0xff]  ;;  %v419_v19 = vld [vmem:[%s8551_s0 + $0x28] sm:$0xff]  ;;  %v674_v24 = vld [vmem:[%s8555_s4 + $0x18] sm:$0xff] }
  0x1d   : > { %v434_v20 = vld [vmem:[%s8551_s0 + $0xa0] sm:$0xff]  ;;  %v435_v21 = vld [vmem:[%s8551_s0 + $0xa8] sm:$0xff]  ;;  %v448_v22 = vpack.c.bf16 %v419_v19, %v418_v18  ;;  %783 = vmatpush.msra.mxu1 %v674_v24  ;;  %v673_v25 = vld [vmem:[%s8555_s4 + $0x10] sm:$0xff]  ;;  %5562 = vmatpush.msra.mxu3 %v674_v24 }
  0x1e   : > { %v456_v23 = vpack.c.bf16 %v435_v21, %v434_v20  ;;  %v672_v26 = vld [vmem:[%s8555_s4 + $0x8] sm:$0xff]  ;;  %v420_v27 = vld [vmem:[%s8551_s0 + $0x30] sm:$0xff]  ;;  %v421_v28 = vld [vmem:[%s8551_s0 + $0x38] sm:$0xff] }
  0x1f   : > { %524 = vmatpush.bf16.msra.mxu0 %v466_v6  ;;  %5561 = vmatpush.bf16.msra.mxu2 %v466_v6  ;;  %v436_v29 = vld [vmem:[%s8551_s0 + $0xb0] sm:$0xff]  ;;  %v437_v30 = vld [vmem:[%s8551_s0 + $0xb8] sm:$0xff]  ;;  %v449_v31 = vpack.c.bf16 %v421_v28, %v420_v27  ;;  %v422_v33 = vld [vmem:[%s8551_s0 + $0x40] sm:$0xff] }
  0x20   : > { %784 = vmatpush.msra.mxu1 %v673_v25  ;;  %5563 = vmatpush.msra.mxu3 %v673_v25  ;;  %v457_v32 = vpack.c.bf16 %v437_v30, %v436_v29  ;;  %v423_v34 = vld [vmem:[%s8551_s0 + $0x48] sm:$0xff]  ;;  %v438_v35 = vld [vmem:[%s8551_s0 + $0xc0] sm:$0xff]  ;;  %v440_v40 = vld [vmem:[%s8551_s0 + $0xd0] sm:$0xff] }
  0x21   : > { %v439_v36 = vld [vmem:[%s8551_s0 + $0xc8] sm:$0xff]  ;;  %v450_v37 = vpack.c.bf16 %v423_v34, %v422_v33  ;;  %v671_v39 = vld [vmem:[%s8555_s4] sm:$0xff]  ;;  %v441_v41 = vld [vmem:[%s8551_s0 + $0xd8] sm:$0xff] }
  0x22   : > { %5133 = vmatmul.msk.bf16.vlgmr.msra.gmra.mxu0 %vm468_vm0, %v446_v10  ;;  %5141 = vmatmul.msk.bf16.vlgmr.msra.gmra.mxu2 %vm468_vm0, %v454_v11  ;;  %v458_v38 = vpack.c.bf16 %v439_v36, %v438_v35  ;;  %v459_v42 = vpack.c.bf16 %v441_v41, %v440_v40  ;;  %v424_v43 = vld [vmem:[%s8551_s0 + $0x50] sm:$0xff]  ;;  %v425_v44 = vld [vmem:[%s8551_s0 + $0x58] sm:$0xff]  ;;  %v442_v46 = vld [vmem:[%s8551_s0 + $0xe0] sm:$0xff] }
  0x23   : > { %785 = vmatpush.msra.mxu1 %v672_v26  ;;  %5564 = vmatpush.msra.mxu3 %v672_v26  ;;  %v451_v45 = vpack.c.bf16 %v425_v44, %v424_v43  ;;  %v443_v47 = vld [vmem:[%s8551_s0 + $0xe8] sm:$0xff]  ;;  %v444_v51 = vld [vmem:[%s8551_s0 + $0xf0] sm:$0xff]  ;;  %v445_v52 = vld [vmem:[%s8551_s0 + $0xf8] sm:$0xff] }
  0x24   : > { %v460_v48 = vpack.c.bf16 %v443_v47, %v442_v46  ;;  %v426_v53 = vld [vmem:[%s8551_s0 + $0x60] sm:$0xff]  ;;  %v461_v54 = vpack.c.bf16 %v445_v52, %v444_v51  ;;  %v427_v55 = vld [vmem:[%s8551_s0 + $0x68] sm:$0xff]  ;;  %v428_v1 = vld [vmem:[%s8551_s0 + $0x70] sm:$0xff] }
  0x25   : > { %786 = vmatpush.msra.mxu1 %v671_v39  ;;  %5565 = vmatpush.msra.mxu3 %v671_v39  ;;  %v452_v56 = vpack.c.bf16 %v427_v55, %v426_v53  ;;  %v429_v2 = vld [vmem:[%s8551_s0 + $0x78] sm:$0xff] }
  0x26   : > { %v453_v3 = vpack.c.bf16 %v429_v2, %v428_v1 }
  0x32   : > { %5134 = vmatmul.msk.bf16.gmra.mxu0 %vm468_vm0, %v447_v16  ;;  %5142 = vmatmul.msk.bf16.gmra.mxu2 %vm468_vm0, %v455_v17 }
  0x42   : > { %5135 = vmatmul.msk.bf16.gmra.mxu0 %vm468_vm0, %v448_v22  ;;  %5143 = vmatmul.msk.bf16.gmra.mxu2 %vm468_vm0, %v456_v23 }
  0x52   : > { %5136 = vmatmul.msk.bf16.gmra.mxu0 %vm468_vm0, %v449_v31  ;;  %5144 = vmatmul.msk.bf16.gmra.mxu2 %vm468_vm0, %v457_v32 }
  0x62   : > { %5137 = vmatmul.msk.bf16.gmra.mxu0 %vm468_vm0, %v450_v37  ;;  %5145 = vmatmul.msk.bf16.gmra.mxu2 %vm468_vm0, %v458_v38 }
  0x72   : > { %5146 = vmatmul.msk.bf16.gmra.mxu2 %vm468_vm0, %v459_v42  ;;  %5138 = vmatmul.msk.bf16.gmra.mxu0 %vm468_vm0, %v451_v45 }
  0x82   : > { %5147 = vmatmul.msk.bf16.gmra.mxu2 %vm468_vm0, %v460_v48  ;;  %5139 = vmatmul.msk.bf16.gmra.mxu0 %vm468_vm0, %v452_v56 }
  0x92   : > { %5148 = vmatmul.msk.bf16.gmra.mxu2 %vm468_vm0, %v461_v54  ;;  %5140 = vmatmul.msk.bf16.gmra.mxu0 %vm468_vm0, %v453_v3 }
  0x9f   : > { %v526_v49 = vpop.f32.mrf.mxu0 }
  0xa0   : > { %v606_v50 = vpack.c.bf16 %v526_v49, %v526_v49  ;;  %5149 = vmatmul.msk.f32.vlgmr.msra.gmra.mxu1 %vm468_vm0, %v526_v49 }
  0xa2   : > { %639 = vst.msk [vmem:[#allocation3] sm:$0xf] %vm638_vm1, %v606_v50 }
  0xa5   : > { %v566_v57 = vpop.f32.mrf.mxu2 }
  0xa6   : > { %v622_v58 = vpack.c.bf16 %v566_v57, %v566_v57  ;;  %5165 = vmatmul.msk.f32.vlgmr.msra.gmra.mxu3 %vm468_vm0, %v566_v57 }
  0xa7   : > { %v528_v59 = vpop.f32.mrf.mxu0 }
  0xa8   : > { %655 = vst.msk [vmem:[#allocation3 + $0x40] sm:$0xf] %vm638_vm1, %v622_v58  ;;  %v607_v60 = vpack.c.bf16 %v528_v59, %v528_v59  ;;  %5150 = vmatmul.msk.f32.gmra.mxu1 %vm468_vm0, %v528_v59 }
  0xaa   : > { %640 = vst.msk [vmem:[#allocation3 + $0x4] sm:$0xf] %vm638_vm1, %v607_v60 }
  0xad   : > { %v568_v61 = vpop.f32.mrf.mxu2 }
  0xae   : > { %v623_v62 = vpack.c.bf16 %v568_v61, %v568_v61  ;;  %5166 = vmatmul.msk.f32.gmra.mxu3 %vm468_vm0, %v568_v61 }
  0xaf   : > { %v531_v63 = vpop.f32.mrf.mxu0 }
  0xb0   : > { %656 = vst.msk [vmem:[#allocation3 + $0x44] sm:$0xf] %vm638_vm1, %v623_v62  ;;  %v608_v0 = vpack.c.bf16 %v531_v63, %v531_v63  ;;  %5151 = vmatmul.msk.f32.gmra.mxu1 %vm468_vm0, %v531_v63 }
  0xb2   : > { %641 = vst.msk [vmem:[#allocation3 + $0x8] sm:$0xf] %vm638_vm1, %v608_v0 }
  0xb5   : > { %v571_v4 = vpop.f32.mrf.mxu2 }
  0xb6   : > { %v624_v5 = vpack.c.bf16 %v571_v4, %v571_v4  ;;  %5167 = vmatmul.msk.f32.gmra.mxu3 %vm468_vm0, %v571_v4 }
  0xb7   : > { %v533_v6 = vpop.f32.mrf.mxu0 }
  0xb8   : > { %v609_v7 = vpack.c.bf16 %v533_v6, %v533_v6  ;;  %5152 = vmatmul.msk.f32.gmra.mxu1 %vm468_vm0, %v533_v6  ;;  %657 = vst.msk [vmem:[#allocation3 + $0x48] sm:$0xf] %vm638_vm1, %v624_v5 }
  0xba   : > { %642 = vst.msk [vmem:[#allocation3 + $0xc] sm:$0xf] %vm638_vm1, %v609_v7 }
  0xbd   : > { %v573_v8 = vpop.f32.mrf.mxu2 }
  0xbe   : > { %v625_v9 = vpack.c.bf16 %v573_v8, %v573_v8  ;;  %5168 = vmatmul.msk.f32.gmra.mxu3 %vm468_vm0, %v573_v8 }
  0xbf   : > { %v536_v10 = vpop.f32.mrf.mxu0 }
  0xc0   : > { %v610_v11 = vpack.c.bf16 %v536_v10, %v536_v10  ;;  %5153 = vmatmul.msk.f32.gmra.mxu1 %vm468_vm0, %v536_v10  ;;  %658 = vst.msk [vmem:[#allocation3 + $0x4c] sm:$0xf] %vm638_vm1, %v625_v9 }
  0xc2   : > { %643 = vst.msk [vmem:[#allocation3 + $0x10] sm:$0xf] %vm638_vm1, %v610_v11 }
  0xc5   : > { %v576_v12 = vpop.f32.mrf.mxu2 }
  0xc6   : > { %v626_v13 = vpack.c.bf16 %v576_v12, %v576_v12  ;;  %5169 = vmatmul.msk.f32.gmra.mxu3 %vm468_vm0, %v576_v12 }
  0xc7   : > { %v538_v14 = vpop.f32.mrf.mxu0 }
  0xc8   : > { %v611_v15 = vpack.c.bf16 %v538_v14, %v538_v14  ;;  %5154 = vmatmul.msk.f32.gmra.mxu1 %vm468_vm0, %v538_v14  ;;  %659 = vst.msk [vmem:[#allocation3 + $0x50] sm:$0xf] %vm638_vm1, %v626_v13 }
  0xca   : > { %644 = vst.msk [vmem:[#allocation3 + $0x14] sm:$0xf] %vm638_vm1, %v611_v15 }
  0xcd   : > { %v578_v16 = vpop.f32.mrf.mxu2 }
  0xce   : > { %v627_v17 = vpack.c.bf16 %v578_v16, %v578_v16  ;;  %5170 = vmatmul.msk.f32.gmra.mxu3 %vm468_vm0, %v578_v16 }
  0xcf   : > { %v541_v18 = vpop.f32.mrf.mxu0 }
  0xd0   : > { %v612_v19 = vpack.c.bf16 %v541_v18, %v541_v18  ;;  %5155 = vmatmul.msk.f32.gmra.mxu1 %vm468_vm0, %v541_v18  ;;  %660 = vst.msk [vmem:[#allocation3 + $0x54] sm:$0xf] %vm638_vm1, %v627_v17 }
  0xd2   : > { %645 = vst.msk [vmem:[#allocation3 + $0x18] sm:$0xf] %vm638_vm1, %v612_v19 }
  0xd5   : > { %v581_v20 = vpop.f32.mrf.mxu2 }
  0xd6   : > { %v628_v21 = vpack.c.bf16 %v581_v20, %v581_v20  ;;  %5171 = vmatmul.msk.f32.gmra.mxu3 %vm468_vm0, %v581_v20 }
  0xd7   : > { %v543_v22 = vpop.f32.mrf.mxu0 }
  0xd8   : > { %v613_v23 = vpack.c.bf16 %v543_v22, %v543_v22  ;;  %5156 = vmatmul.msk.f32.gmra.mxu1 %vm468_vm0, %v543_v22  ;;  %661 = vst.msk [vmem:[#allocation3 + $0x58] sm:$0xf] %vm638_vm1, %v628_v21 }
  0xda   : > { %646 = vst.msk [vmem:[#allocation3 + $0x1c] sm:$0xf] %vm638_vm1, %v613_v23 }
  0xdd   : > { %v583_v24 = vpop.f32.mrf.mxu2 }
  0xde   : > { %v629_v25 = vpack.c.bf16 %v583_v24, %v583_v24  ;;  %5172 = vmatmul.msk.f32.gmra.mxu3 %vm468_vm0, %v583_v24 }
  0xdf   : > { %v546_v26 = vpop.f32.mrf.mxu0 }
  0xe0   : > { %v614_v27 = vpack.c.bf16 %v546_v26, %v546_v26  ;;  %5157 = vmatmul.msk.f32.gmra.mxu1 %vm468_vm0, %v546_v26  ;;  %662 = vst.msk [vmem:[#allocation3 + $0x5c] sm:$0xf] %vm638_vm1, %v629_v25 }
  0xe2   : > { %647 = vst.msk [vmem:[#allocation3 + $0x20] sm:$0xf] %vm638_vm1, %v614_v27 }
  0xe5   : > { %v586_v28 = vpop.f32.mrf.mxu2 }
  0xe6   : > { %v630_v29 = vpack.c.bf16 %v586_v28, %v586_v28  ;;  %5173 = vmatmul.msk.f32.gmra.mxu3 %vm468_vm0, %v586_v28 }
  0xe7   : > { %v548_v30 = vpop.f32.mrf.mxu0 }
  0xe8   : > { %v615_v31 = vpack.c.bf16 %v548_v30, %v548_v30  ;;  %5158 = vmatmul.msk.f32.gmra.mxu1 %vm468_vm0, %v548_v30  ;;  %663 = vst.msk [vmem:[#allocation3 + $0x60] sm:$0xf] %vm638_vm1, %v630_v29 }
  0xea   : > { %648 = vst.msk [vmem:[#allocation3 + $0x24] sm:$0xf] %vm638_vm1, %v615_v31 }
  0xed   : > { %v588_v32 = vpop.f32.mrf.mxu2 }
  0xee   : > { %v631_v33 = vpack.c.bf16 %v588_v32, %v588_v32  ;;  %5174 = vmatmul.msk.f32.gmra.mxu3 %vm468_vm0, %v588_v32 }
  0xef   : > { %v551_v34 = vpop.f32.mrf.mxu0 }
  0xf0   : > { %664 = vst.msk [vmem:[#allocation3 + $0x64] sm:$0xf] %vm638_vm1, %v631_v33  ;;  %v616_v35 = vpack.c.bf16 %v551_v34, %v551_v34  ;;  %5159 = vmatmul.msk.f32.gmra.mxu1 %vm468_vm0, %v551_v34 }
  0xf2   : > { %649 = vst.msk [vmem:[#allocation3 + $0x28] sm:$0xf] %vm638_vm1, %v616_v35 }
  0xf5   : > { %v591_v36 = vpop.f32.mrf.mxu2 }
  0xf6   : > { %v632_v37 = vpack.c.bf16 %v591_v36, %v591_v36  ;;  %5175 = vmatmul.msk.f32.gmra.mxu3 %vm468_vm0, %v591_v36 }
  0xf7   : > { %v553_v40 = vpop.f32.mrf.mxu0 }
  0xf8   : > { %665 = vst.msk [vmem:[#allocation3 + $0x68] sm:$0xf] %vm638_vm1, %v632_v37  ;;  %v617_v41 = vpack.c.bf16 %v553_v40, %v553_v40  ;;  %5160 = vmatmul.msk.f32.gmra.mxu1 %vm468_vm0, %v553_v40 }
  0xfa   : > { %650 = vst.msk [vmem:[#allocation3 + $0x2c] sm:$0xf] %vm638_vm1, %v617_v41 }
  0xfd   : > { %v593_v38 = vpop.f32.mrf.mxu2 }
  0xfe   : > { %v633_v39 = vpack.c.bf16 %v593_v38, %v593_v38  ;;  %5176 = vmatmul.msk.f32.gmra.mxu3 %vm468_vm0, %v593_v38 }
  0xff   : > { %v556_v48 = vpop.f32.mrf.mxu0 }
 0x100   : > { %666 = vst.msk [vmem:[#allocation3 + $0x6c] sm:$0xf] %vm638_vm1, %v633_v39  ;;  %v618_v49 = vpack.c.bf16 %v556_v48, %v556_v48  ;;  %5161 = vmatmul.msk.f32.gmra.mxu1 %vm468_vm0, %v556_v48 }
 0x102   : > { %651 = vst.msk [vmem:[#allocation3 + $0x30] sm:$0xf] %vm638_vm1, %v618_v49 }
 0x105   : > { %v596_v42 = vpop.f32.mrf.mxu2 }
 0x106   : > { %v634_v43 = vpack.c.bf16 %v596_v42, %v596_v42  ;;  %5177 = vmatmul.msk.f32.gmra.mxu3 %vm468_vm0, %v596_v42 }
 0x107   : > { %v558_v58 = vpop.f32.mrf.mxu0 }
 0x108   : > { %667 = vst.msk [vmem:[#allocation3 + $0x70] sm:$0xf] %vm638_vm1, %v634_v43  ;;  %v619_v59 = vpack.c.bf16 %v558_v58, %v558_v58  ;;  %5162 = vmatmul.msk.f32.gmra.mxu1 %vm468_vm0, %v558_v58 }
 0x10a   : > { %652 = vst.msk [vmem:[#allocation3 + $0x34] sm:$0xf] %vm638_vm1, %v619_v59 }
 0x10d   : > { %v598_v45 = vpop.f32.mrf.mxu2 }
 0x10e   : > { %v635_v46 = vpack.c.bf16 %v598_v45, %v598_v45  ;;  %5178 = vmatmul.msk.f32.gmra.mxu3 %vm468_vm0, %v598_v45 }
 0x10f   : > { %v561_v62 = vpop.f32.mrf.mxu0 }
 0x110   : > { %668 = vst.msk [vmem:[#allocation3 + $0x74] sm:$0xf] %vm638_vm1, %v635_v46  ;;  %v620_v63 = vpack.c.bf16 %v561_v62, %v561_v62  ;;  %5163 = vmatmul.msk.f32.gmra.mxu1 %vm468_vm0, %v561_v62 }
 0x112   : > { %653 = vst.msk [vmem:[#allocation3 + $0x38] sm:$0xf] %vm638_vm1, %v620_v63 }
 0x115   : > { %v601_v51 = vpop.f32.mrf.mxu2 }
 0x116   : > { %v636_v52 = vpack.c.bf16 %v601_v51, %v601_v51  ;;  %5179 = vmatmul.msk.f32.gmra.mxu3 %vm468_vm0, %v601_v51 }
 0x117   : > { %v563_v2 = vpop.f32.mrf.mxu0 }
 0x118   : > { %669 = vst.msk [vmem:[#allocation3 + $0x78] sm:$0xf] %vm638_vm1, %v636_v52  ;;  %v621_v3 = vpack.c.bf16 %v563_v2, %v563_v2  ;;  %5164 = vmatmul.msk.f32.gmra.mxu1 %vm468_vm0, %v563_v2 }
 0x11a   : > { %654 = vst.msk [vmem:[#allocation3 + $0x3c] sm:$0xf] %vm638_vm1, %v621_v3 }
 0x11d   : > { %v788_v44 = vpop.f32.mrf.mxu1  ;;  %v603_v55 = vpop.f32.mrf.mxu2 }
 0x11e   : > { %991 = vrot.lane.b32.xlu2 %v788_v44, %s6076_s14  ;;  %v637_v56 = vpack.c.bf16 %v603_v55, %v603_v55  ;;  %5180 = vmatmul.msk.f32.gmra.mxu3 %vm468_vm0, %v603_v55 }
 0x120   : > { %670 = vst.msk [vmem:[#allocation3 + $0x7c] sm:$0xf] %vm638_vm1, %v637_v56 }
 0x125   : > { %v791_v47 = vpop.f32.mrf.mxu1 }
 0x126   : > { %993 = vrot.lane.b32.xlu2 %v791_v47, %s6076_s14 }
 0x129   : > { %v836_v50 = vpop.f32.mrf.mxu3 }
 0x12a   : > { %1023 = vrot.lane.b32.xlu0 %v836_v50, %s6076_s14 }
 0x12d   : > { %v794_v53 = vpop.f32.mrf.mxu1 }
 0x12e   : > { %995 = vrot.lane.b32.xlu2 %v794_v53, %s6076_s14 }
 0x131   : > { %v839_v54 = vpop.f32.mrf.mxu3 }
 0x132   : > { %1025 = vrot.lane.b32.xlu1 %v839_v54, %s6076_s14 }
 0x135   : > { %v797_v57 = vpop.f32.mrf.mxu1 }
 0x136   : > { %997 = vrot.lane.b32.xlu2 %v797_v57, %s6076_s14 }
 0x139   : > { %v842_v60 = vpop.f32.mrf.mxu3 }
 0x13d   : > { %v800_v61 = vpop.f32.mrf.mxu1 }
 0x13e   : > { %1027 = vrot.lane.b32.xlu2 %v842_v60, %s6076_s14 }
 0x141   : > { %v845_v0 = vpop.f32.mrf.mxu3 }
 0x145   : > { %v803_v1 = vpop.f32.mrf.mxu1 }
 0x146   : > { %999 = vrot.lane.b32.xlu2 %v800_v61, %s6076_s14 }
 0x149   : > { %v848_v4 = vpop.f32.mrf.mxu3 }
 0x14c   : > { %884 = vxpose.xlu0.b32.start [1/16] (narrow) %v788_v44, 8 }
 0x14d   : > { %v806_v5 = vpop.f32.mrf.mxu1 }
 0x14e   : > { %1029 = vrot.lane.b32.xlu2 %v845_v0, %s6076_s14 }
 0x151   : > { %v851_v6 = vpop.f32.mrf.mxu3 }
 0x154   : > { %885 = vxpose.xlu0.b32.cont [2/16] (narrow) %v791_v47, 8 }
 0x155   : > { %v809_v7 = vpop.f32.mrf.mxu1 }
 0x156   : > { %1001 = vrot.lane.b32.xlu2 %v803_v1, %s6076_s14 }
 0x159   : > { %v854_v9 = vpop.f32.mrf.mxu3 }
 0x15c   : > { %886 = vxpose.xlu0.b32.cont [3/16] (narrow) %v794_v53, 8 }
 0x15d   : > { %v812_v11 = vpop.f32.mrf.mxu1 }
 0x15e   : > { %1031 = vrot.lane.b32.xlu2 %v848_v4, %s6076_s14 }
 0x161   : > { %v857_v13 = vpop.f32.mrf.mxu3 }
 0x164   : > { %887 = vxpose.xlu0.b32.cont [4/16] (narrow) %v797_v57, 8 }
 0x165   : > { %v815_v15 = vpop.f32.mrf.mxu1 }
 0x166   : > { %1003 = vrot.lane.b32.xlu2 %v806_v5, %s6076_s14 }
 0x167   : > { %916 = vxpose.xlu1.b32.start [1/16] (narrow) %v836_v50, 8 }
 0x169   : > { %v860_v17 = vpop.f32.mrf.mxu3 }
 0x16c   : > { %888 = vxpose.xlu0.b32.cont [5/16] (narrow) %v800_v61, 8 }
 0x16d   : > { %v818_v18 = vpop.f32.mrf.mxu1 }
 0x16e   : > { %1033 = vrot.lane.b32.xlu2 %v851_v6, %s6076_s14 }
 0x16f   : > { %917 = vxpose.xlu1.b32.cont [2/16] (narrow) %v839_v54, 8  ;;  %v954_v54 = vlaneseq }
 0x171   : > { %v863_v21 = vpop.f32.mrf.mxu3  ;;  %vm956_vm4 = vcmp.lt.s32.totalorder %v954_v54, 256 }
 0x174   : > { %889 = vxpose.xlu0.b32.cont [6/16] (narrow) %v803_v1, 8 }
 0x175   : > { %v821_v22 = vpop.f32.mrf.mxu1 }
 0x176   : > { %1005 = vrot.lane.b32.xlu2 %v809_v7, %s6076_s14 }
 0x177   : > { %918 = vxpose.xlu1.b32.cont [3/16] (narrow) %v842_v60, 8 }
 0x178   : > { %v992_v8 = vpop.permute.xlu2 %991 }
 0x179   : > { %1088 = vst.msk [vmem:[#allocation6] sm:$0xff] %vm1087_vm2, %v992_v8  ;;  %v866_v26 = vpop.f32.mrf.mxu3 }
 0x17c   : > { %890 = vxpose.xlu0.b32.cont [7/16] (narrow) %v806_v5, 8 }
 0x17d   : > { %v824_v25 = vpop.f32.mrf.mxu1 }
 0x17e   : > { %1035 = vrot.lane.b32.xlu2 %v854_v9, %s6076_s14 }
 0x17f   : > { %919 = vxpose.xlu1.b32.cont [4/16] (narrow) %v845_v0, 8 }
 0x180   : > { %v994_v10 = vpop.permute.xlu2 %993 }
 0x181   : > { %1089 = vst.msk [vmem:[#allocation6 + $0x8] sm:$0xff] %vm1087_vm2, %v994_v10  ;;  %v869_v29 = vpop.f32.mrf.mxu3 }
 0x184   : > { %891 = vxpose.xlu0.b32.cont [8/16] (narrow) %v809_v7, 8 }
 0x185   : > { %v827_v28 = vpop.f32.mrf.mxu1 }
 0x186   : > { %1007 = vrot.lane.b32.xlu2 %v812_v11, %s6076_s14 }
 0x187   : > { %920 = vxpose.xlu1.b32.cont [5/16] (narrow) %v848_v4, 8 }
 0x188   : > { %v996_v12 = vpop.permute.xlu2 %995 }
 0x189   : > { %1090 = vst.msk [vmem:[#allocation6 + $0x10] sm:$0xff] %vm1087_vm2, %v996_v12  ;;  %v872_v31 = vpop.f32.mrf.mxu3 }
 0x18c   : > { %892 = vxpose.xlu0.b32.cont [9/16] (narrow) %v812_v11, 8 }
 0x18d   : > { %v830_v33 = vpop.f32.mrf.mxu1 }
 0x18e   : > { %1037 = vrot.lane.b32.xlu2 %v857_v13, %s6076_s14 }
 0x18f   : > { %921 = vxpose.xlu1.b32.cont [6/16] (narrow) %v851_v6, 8 }
 0x190   : > { %v998_v14 = vpop.permute.xlu2 %997 }
 0x191   : > { %1091 = vst.msk [vmem:[#allocation6 + $0x18] sm:$0xff] %vm1087_vm2, %v998_v14  ;;  %v875_v35 = vpop.f32.mrf.mxu3 }
 0x194   : > { %893 = vxpose.xlu0.b32.cont [10/16] (narrow) %v815_v15, 8 }
 0x195   : > { %v833_v38 = vpop.f32.mrf.mxu1 }
 0x196   : > { %1009 = vrot.lane.b32.xlu2 %v815_v15, %s6076_s14 }
 0x197   : > { %922 = vxpose.xlu1.b32.cont [7/16] (narrow) %v854_v9, 8 }
 0x198   : > { %v1028_v16 = vpop.permute.xlu2 %1027 }
 0x199   : > { %1106 = vst.msk [vmem:[#allocation6 + $0x90] sm:$0xff] %vm1087_vm2, %v1028_v16  ;;  %v878_v37 = vpop.f32.mrf.mxu3 }
 0x19c   : > { %v1024_v19 = vpop.permute.xlu0 %1023  ;;  %894 = vxpose.xlu0.b32.cont [11/16] (narrow) %v818_v18, 8 }
 0x19d   : > { %1104 = vst.msk [vmem:[#allocation6 + $0x80] sm:$0xff] %vm1087_vm2, %v1024_v19 }
 0x19e   : > { %1039 = vrot.lane.b32.xlu2 %v860_v17, %s6076_s14 }
 0x19f   : > { %923 = vxpose.xlu1.b32.cont [8/16] (narrow) %v857_v13, 8 }
 0x1a0   : > { %v1000_v20 = vpop.permute.xlu2 %999 }
 0x1a1   : > { %1092 = vst.msk [vmem:[#allocation6 + $0x20] sm:$0xff] %vm1087_vm2, %v1000_v20  ;;  %v881_v40 = vpop.f32.mrf.mxu3 }
 0x1a4   : > { %v1026_v23 = vpop.permute.xlu1 %1025  ;;  %895 = vxpose.xlu0.b32.cont [12/16] (narrow) %v821_v22, 8 }
 0x1a5   : > { %1105 = vst.msk [vmem:[#allocation6 + $0x88] sm:$0xff] %vm1087_vm2, %v1026_v23 }
 0x1a6   : > { %1011 = vrot.lane.b32.xlu2 %v818_v18, %s6076_s14 }
 0x1a7   : > { %924 = vxpose.xlu1.b32.cont [9/16] (narrow) %v860_v17, 8 }
 0x1a8   : > { %v1030_v24 = vpop.permute.xlu2 %1029 }
 0x1a9   : > { %1107 = vst.msk [vmem:[#allocation6 + $0x98] sm:$0xff] %vm1087_vm2, %v1030_v24 }
 0x1ac   : > { %896 = vxpose.xlu0.b32.cont [13/16] (narrow) %v824_v25, 8 }
 0x1ae   : > { %1041 = vrot.lane.b32.xlu2 %v863_v21, %s6076_s14 }
 0x1af   : > { %925 = vxpose.xlu1.b32.cont [10/16] (narrow) %v863_v21, 8 }
 0x1b0   : > { %v1002_v27 = vpop.permute.xlu2 %1001 }
 0x1b1   : > { %1093 = vst.msk [vmem:[#allocation6 + $0x28] sm:$0xff] %vm1087_vm2, %v1002_v27 }
 0x1b4   : > { %897 = vxpose.xlu0.b32.cont [14/16] (narrow) %v827_v28, 8 }
 0x1b6   : > { %1013 = vrot.lane.b32.xlu2 %v821_v22, %s6076_s14 }
 0x1b7   : > { %926 = vxpose.xlu1.b32.cont [11/16] (narrow) %v866_v26, 8 }
 0x1b8   : > { %v1032_v30 = vpop.permute.xlu2 %1031 }
 0x1b9   : > { %1108 = vst.msk [vmem:[#allocation6 + $0xa0] sm:$0xff] %vm1087_vm2, %v1032_v30 }
 0x1bc   : > { %898 = vxpose.xlu0.b32.cont [15/16] (narrow) %v830_v33, 8 }
 0x1be   : > { %1043 = vrot.lane.b32.xlu2 %v866_v26, %s6076_s14 }
 0x1bf   : > { %927 = vxpose.xlu1.b32.cont [12/16] (narrow) %v869_v29, 8 }
 0x1c0   : > { %v1004_v32 = vpop.permute.xlu2 %1003 }
 0x1c1   : > { %1094 = vst.msk [vmem:[#allocation6 + $0x30] sm:$0xff] %vm1087_vm2, %v1004_v32 }
 0x1c4   : > { %899 = vxpose.xlu0.b32.end [16/16] (narrow) %v833_v38, 8 }
 0x1c6   : > { %1015 = vrot.lane.b32.xlu2 %v824_v25, %s6076_s14 }
 0x1c7   : > { %928 = vxpose.xlu1.b32.cont [13/16] (narrow) %v872_v31, 8 }
 0x1c8   : > { %v1034_v34 = vpop.permute.xlu2 %1033 }
 0x1c9   : > { %1109 = vst.msk [vmem:[#allocation6 + $0xa8] sm:$0xff] %vm1087_vm2, %v1034_v34 }
 0x1ce   : > { %1045 = vrot.lane.b32.xlu2 %v869_v29, %s6076_s14 }
 0x1cf   : > { %929 = vxpose.xlu1.b32.cont [14/16] (narrow) %v875_v35, 8 }
 0x1d0   : > { %v1006_v36 = vpop.permute.xlu2 %1005 }
 0x1d1   : > { %1095 = vst.msk [vmem:[#allocation6 + $0x38] sm:$0xff] %vm1087_vm2, %v1006_v36 }
 0x1d6   : > { %1017 = vrot.lane.b32.xlu2 %v827_v28, %s6076_s14 }
 0x1d7   : > { %930 = vxpose.xlu1.b32.cont [15/16] (narrow) %v878_v37, 8 }
 0x1d8   : > { %v1036_v39 = vpop.permute.xlu2 %1035 }
 0x1d9   : > { %1110 = vst.msk [vmem:[#allocation6 + $0xb0] sm:$0xff] %vm1087_vm2, %v1036_v39 }
 0x1de   : > { %1047 = vrot.lane.b32.xlu2 %v872_v31, %s6076_s14 }
 0x1df   : > { %931 = vxpose.xlu1.b32.end [16/16] (narrow) %v881_v40, 8 }
 0x1e0   : > { %v1008_v41 = vpop.permute.xlu2 %1007 }
 0x1e1   : > { %1096 = vst.msk [vmem:[#allocation6 + $0x40] sm:$0xff] %vm1087_vm2, %v1008_v41 }
 0x1e6   : > { %1019 = vrot.lane.b32.xlu2 %v830_v33, %s6076_s14 }
 0x1e8   : > { %v1038_v42 = vpop.permute.xlu2 %1037 }
 0x1e9   : > { %1111 = vst.msk [vmem:[#allocation6 + $0xb8] sm:$0xff] %vm1087_vm2, %v1038_v42 }
 0x1ee   : > { %1049 = vrot.lane.b32.xlu2 %v875_v35, %s6076_s14 }
 0x1f0   : > { %v1010_v43 = vpop.permute.xlu2 %1009  ;;  %v900_v55 = vpop.trf.xlu0 }
 0x1f1   : > { %1097 = vst.msk [vmem:[#allocation6 + $0x48] sm:$0xff] %vm1087_vm2, %v1010_v43 }
 0x1f6   : > { %1021 = vrot.lane.b32.xlu2 %v833_v38, %s6076_s14 }
 0x1f8   : > { %v1040_v44 = vpop.permute.xlu2 %1039 }
 0x1f9   : > { %1112 = vst.msk [vmem:[#allocation6 + $0xc0] sm:$0xff] %vm1087_vm2, %v1040_v44 }
 0x1fe   : > { %1053 = vrot.lane.b32.xlu2 %v881_v40, %s6076_s14 }
 0x200   : > { %v1012_v45 = vpop.permute.xlu2 %1011 }
 0x201   : > { %1098 = vst.msk [vmem:[#allocation6 + $0x50] sm:$0xff] %vm1087_vm2, %v1012_v45 }
 0x208   : > { %v1042_v46 = vpop.permute.xlu2 %1041 }
 0x209   : > { %1113 = vst.msk [vmem:[#allocation6 + $0xc8] sm:$0xff] %vm1087_vm2, %v1042_v46 }
 0x20b   : > { %v932_v53 = vpop.trf.xlu1 }
 0x20c   : > { %v950_v56 = vrot.slane %v932_v53, 7 }
 0x20e   : > { %v952_v57 = vsel %vm951_vm3, %v900_v55, %v950_v56 }
 0x20f   : > { %958 = vst.msk [vmem:[#allocation5] sm:$0x3] %vm956_vm4, %v952_v57 }
 0x210   : > { %v1014_v47 = vpop.permute.xlu2 %1013 }
 0x211   : > { %1099 = vst.msk [vmem:[#allocation6 + $0x58] sm:$0xff] %vm1087_vm2, %v1014_v47 }
 0x218   : > { %v1044_v48 = vpop.permute.xlu2 %1043 }
 0x219   : > { %1114 = vst.msk [vmem:[#allocation6 + $0xd0] sm:$0xff] %vm1087_vm2, %v1044_v48 }
 0x220   : > { %v1016_v49 = vpop.permute.xlu2 %1015 }
 0x221   : > { %1100 = vst.msk [vmem:[#allocation6 + $0x60] sm:$0xff] %vm1087_vm2, %v1016_v49 }
 0x228   : > { %v1046_v50 = vpop.permute.xlu2 %1045 }
 0x229   : > { %1115 = vst.msk [vmem:[#allocation6 + $0xd8] sm:$0xff] %vm1087_vm2, %v1046_v50 }
 0x230   : > { %v1018_v51 = vpop.permute.xlu2 %1017 }
 0x231   : > { %1101 = vst.msk [vmem:[#allocation6 + $0x68] sm:$0xff] %vm1087_vm2, %v1018_v51 }
 0x238   : > { %v1048_v52 = vpop.permute.xlu2 %1047 }
 0x239   : > { %1116 = vst.msk [vmem:[#allocation6 + $0xe0] sm:$0xff] %vm1087_vm2, %v1048_v52  ;;  %1051 = vrot.lane.b32.xlu1 %v878_v37, %s6076_s14 }
 0x240   : > { %v1020_v58 = vpop.permute.xlu2 %1019 }
 0x241   : > { %1102 = vst.msk [vmem:[#allocation6 + $0x70] sm:$0xff] %vm1087_vm2, %v1020_v58 }
 0x248   : > { %v1050_v59 = vpop.permute.xlu2 %1049 }
 0x249   : > { %1117 = vst.msk [vmem:[#allocation6 + $0xe8] sm:$0xff] %vm1087_vm2, %v1050_v59 }
 0x250   : > { %v1022_v60 = vpop.permute.xlu2 %1021 }
 0x251   : > { %1103 = vst.msk [vmem:[#allocation6 + $0x78] sm:$0xff] %vm1087_vm2, %v1022_v60 }
 0x258   : > { %v1054_v61 = vpop.permute.xlu2 %1053 }
 0x259   : > { %1119 = vst.msk [vmem:[#allocation6 + $0xf8] sm:$0xff] %vm1087_vm2, %v1054_v61 }
 0x2ab   : > { %v1052_v62 = vpop.permute.xlu1 %1051 }
 0x2ac   : > { %1118 = vst.msk [vmem:[#allocation6 + $0xf0] sm:$0xff] %vm1087_vm2, %v1052_v62 }
 0x2ad PF: > { %v6077_v63 = vmov 0   ;;  %s6463_s15 = scalar_lea.vmem [#allocation6], %s6182_s25  ;;  %s1120_s16 = sshra.s32 %s6182_s25, 5  ;;  %v1158_v40 = vld [vmem:[#allocation5] sm:$0x3] }
 0x2ae   : > { %5659 = vset.pattern.permute.xlu1 %v6077_v63  ;;  %5658 = vset.pattern.permute.xlu0 %v6077_v63  ;;  %s5510_s24 = sshll.u32 %s1120_s16, 4  ;;  %v6503_v47 = vperm.slane %v1158_v40, 0  ;;  %v6505_v48 = vperm.slane %v1158_v40, 1  ;;  %s2202_s12 = sshra.s32 %s6182_s25, 3 }
 0x2af   : > { %5660 = vset.pattern.permute.xlu2 %v6077_v63  ;;  %s6486_s2 = scalar_lea.vmem %s8552_s1, %s5510_s24  ;;  %s5279_s14 = sshll.u32 %s2202_s12, 2 }
 0x2b0   : > { %v1129_v16 = vld [vmem:[%s6486_s2 + $0x20] sm:$0xff]  ;;  %v1130_v17 = vld [vmem:[%s6486_s2 + $0x28] sm:$0xff] }
 0x2b1   : > { %v1125_v18 = vld [vmem:[%s6486_s2] sm:$0xff]  ;;  %vm1137_vm5 = vnez %v1129_v16  ;;  %vm1138_vm6 = vnez %v1130_v17  ;;  %v1126_v19 = vld [vmem:[%s6486_s2 + $0x8] sm:$0xff]  ;;  %v1131_v17 = vld [vmem:[%s6486_s2 + $0x30] sm:$0xff] }
 0x2b2   : > { %vm1133_vm7 = vnez %v1125_v18  ;;  %v1344_v20 = vsel %vm1137_vm5, 16843009, %v6077_v63  ;;  %v1345_v21 = vsel %vm1138_vm6, 16843009, %v6077_v63  ;;  %vm1134_vm8 = vnez %v1126_v19 }
 0x2b3   : > { %v1150_v0 = vld [vmem:[%s6463_s15 + $0x40] sm:$0xff]  ;;  %v1152_v2 = vld [vmem:[%s6463_s15 + $0x50] sm:$0xff]  ;;  %v1151_v3 = vld [vmem:[%s6463_s15 + $0x48] sm:$0xff]  ;;  %v1364_v22 = vunpack.c.0.s8 %v1344_v20  ;;  %v1365_v23 = vunpack.c.0.s8 %v1345_v21  ;;  %v6495_v24 = vsel %vm1133_vm7, 16843009, %v6077_v63  ;;  %v1366_v31 = vunpack.c.1.s8 %v1344_v20 }
 0x2b4   : > { %v1142_v1 = vld [vmem:[%s6463_s15] sm:$0xff]  ;;  %1201 = vperm.xlu0 %5658, %v1150_v0   ;;  %1211 = vperm.xlu2 %5660, %v1152_v2   ;;  %v1143_v4 = vld [vmem:[%s6463_s15 + $0x8] sm:$0xff]  ;;  %v1153_v5 = vld [vmem:[%s6463_s15 + $0x58] sm:$0xff]  ;;  %v1341_v25 = vsel %vm1134_vm8, 16843009, %v6077_v63  ;;  %v1348_v27 = vunpack.c.0.s8 %v6495_v24  ;;  %v1367_v32 = vunpack.c.1.s8 %v1345_v21  ;;  %v1350_v35 = vunpack.c.1.s8 %v6495_v24 }
 0x2b5   : > { %1161 = vperm.xlu1 %5659, %v1142_v1   ;;  %v1144_v6 = vld [vmem:[%s6463_s15 + $0x10] sm:$0xff]  ;;  %v1145_v7 = vld [vmem:[%s6463_s15 + $0x18] sm:$0xff]  ;;  %v1154_v8 = vld [vmem:[%s6463_s15 + $0x60] sm:$0xff]  ;;  %v1396_v26 = vpack.c.b16 %v1365_v23, %v1364_v22  ;;  %v1349_v28 = vunpack.c.0.s8 %v1341_v25  ;;  %v1351_v36 = vunpack.c.1.s8 %v1341_v25  ;;  %v1370_v37 = vunpack.c.3.s8 %v1344_v20 }
 0x2b6   : > { %v1155_v9 = vld [vmem:[%s6463_s15 + $0x68] sm:$0xff]  ;;  %v1146_v10 = vld [vmem:[%s6463_s15 + $0x20] sm:$0xff]  ;;  %v1156_v12 = vld [vmem:[%s6463_s15 + $0x70] sm:$0xff]  ;;  %v1371_v38 = vunpack.c.3.s8 %v1345_v21  ;;  %v1398_v41 = vpack.c.b16 %v1367_v32, %v1366_v31  ;;  %v1368_v43 = vunpack.c.2.s8 %v1344_v20  ;;  %v1369_v44 = vunpack.c.2.s8 %v1345_v21 }
 0x2b7   : > { %v1147_v11 = vld [vmem:[%s6463_s15 + $0x28] sm:$0xff]  ;;  %v1157_v13 = vld [vmem:[%s6463_s15 + $0x78] sm:$0xff]  ;;  %v1148_v14 = vld [vmem:[%s6463_s15 + $0x30] sm:$0xff]  ;;  %v1397_v29 = vpack.c.b8 %v1396_v26, %v1396_v26  ;;  %v1380_v30 = vpack.c.b16 %v1349_v28, %v1348_v27  ;;  %v1382_v45 = vpack.c.b16 %v1351_v36, %v1350_v35  ;;  %v1354_v56 = vunpack.c.3.s8 %v6495_v24 }
 0x2b8   : > { %v1149_v15 = vld [vmem:[%s6463_s15 + $0x38] sm:$0xff]  ;;  %v1402_v42 = vpack.c.b16 %v1371_v38, %v1370_v37  ;;  %v1399_v51 = vpack.c.b8 %v1398_v41, %v1398_v41  ;;  %v1400_v52 = vpack.c.b16 %v1369_v44, %v1368_v43  ;;  %v1355_v61 = vunpack.c.3.s8 %v1341_v25  ;;  %s7030_s15 = scalar_lea.vmem [#allocation2], %s5279_s14 }
 0x2b9   : > { %vm1420_vm9 = vnez %v1397_v29  ;;  %v1381_v33 = vpack.c.b8 %v1380_v30, %v1380_v30  ;;  %v1383_v59 = vpack.c.b8 %v1382_v45, %v1382_v45  ;;  %v1352_v1 = vunpack.c.2.s8 %v6495_v24  ;;  %v1132_v22 = vld [vmem:[%s6486_s2 + $0x38] sm:$0xff] }
 0x2ba   : > { %v6501_v39 = vsel %vm1420_vm9, 16843009, %v6077_v63  ;;  %v1403_v46 = vpack.c.b8 %v1402_v42, %v1402_v42  ;;  %v1401_v60 = vpack.c.b8 %v1400_v52, %v1400_v52  ;;  %v1353_v2 = vunpack.c.2.s8 %v1341_v25 }
 0x2bb   : > { %vm1412_vm10 = vnez %v1381_v33  ;;  %v1460_v49 = vunpack.c.0.s8 %v6501_v39  ;;  %v1461_v50 = vunpack.c.1.s8 %v6501_v39  ;;  %vm6523_vm12 = vnez %v1399_v51 }
 0x2bc   : > { %1206 = vperm.xlu0 %5658, %v1151_v3   ;;  %1216 = vperm.xlu2 %5660, %v1153_v5   ;;  %vm1423_vm11 = vnez %v1403_v46  ;;  %v1428_v54 = vsel %vm1412_vm10, 16843009, %v6077_v63  ;;  %v1127_v3 = vld [vmem:[%s6486_s2 + $0x10] sm:$0xff]  ;;  %vm1422_vm13 = vnez %v1401_v60  ;;  %vm1413_vm0 = vnez %v1383_v59 }
 0x2bd   : > { %1166 = vperm.xlu1 %5659, %v1143_v4   ;;  %v1439_v55 = vsel %vm1423_vm11, 16843009, %v6077_v63  ;;  %v1128_v4 = vld [vmem:[%s6486_s2 + $0x18] sm:$0xff]  ;;  %vm1135_vm14 = vnez %v1127_v3  ;;  %v1384_v16 = vpack.c.b16 %v1353_v2, %v1352_v1  ;;  %v1437_v20 = vsel %vm6523_vm12, 16843009, %v6077_v63 }
 0x2be   : > { %vm1136_vm15 = vnez %v1128_v4  ;;  %v1429_v27 = vsel %vm1413_vm0, 16843009, %v6077_v63  ;;  %v6546_v28 = vsel %vm1135_vm14, 16843009, %v6077_v63  ;;  %vm1139_vm3 = vnez %v1131_v17 }
 0x2bf   : > { %v6550_v29 = vsel %vm1136_vm15, 16843009, %v6077_v63  ;;  %v1462_v31 = vunpack.c.0.s8 %v1437_v20  ;;  %v1385_v32 = vpack.c.b8 %v1384_v16, %v1384_v16  ;;  %vm1140_vm4 = vnez %v1132_v22 }
 0x2c0   : > { %vm6554_vm5 = vcmp.ne.s32.totalorder %v1460_v49, 0  ;;  %vm6558_vm6 = vcmp.ne.s32.totalorder %v1461_v50, 0  ;;  %v1463_v40 = vunpack.c.1.s8 %v1437_v20  ;;  %v1446_v41 = vunpack.c.0.s8 %v1429_v27 }
 0x2c1   : > { %v1447_v42 = vunpack.c.1.s8 %v1429_v27  ;;  %v1356_v43 = vunpack.c.0.s8 %v6546_v28  ;;  %v1357_v44 = vunpack.c.0.s8 %v6550_v29  ;;  %v6582_v45 = vsel %vm1139_vm3, 16843009, %v6077_v63 }
 0x2c2   : > { %vm1414_vm12 = vnez %v1385_v32  ;;  %v6590_v50 = vsel %vm1140_vm4, 16843009, %v6077_v63  ;;  %v1372_v1 = vunpack.c.0.s8 %v6582_v45  ;;  %vm6618_vm14 = vcmp.ne.s32.totalorder %v1463_v40, 0 }
 0x2c3   : > { %v1373_v2 = vunpack.c.0.s8 %v6590_v50  ;;  %vm6622_vm15 = vcmp.ne.s32.totalorder %v1446_v41, 0  ;;  %vm6628_vm0 = vcmp.ne.s32.totalorder %v1447_v42, 0 }
 0x2c4   : > { %1171 = vperm.xlu0 %5658, %v1144_v6   ;;  %1221 = vperm.xlu2 %5660, %v1154_v8   ;;  %v1466_v6 = vunpack.c.0.s8 %v1439_v55 }
 0x2c5   : > { %1176 = vperm.xlu1 %5659, %v1145_v7   ;;  %v1467_v7 = vunpack.c.1.s8 %v1439_v55  ;;  %v1374_v55 = vunpack.c.1.s8 %v6582_v45  ;;  %v1404_v22 = vpack.c.b16 %v1373_v2, %v1372_v1 }
 0x2c6   : > { %vm6535_vm1 = vcmp.ne.s32.totalorder %v1466_v6, 0 }
 0x2c7   : > { %vm6539_vm2 = vcmp.ne.s32.totalorder %v1467_v7, 0 }
 0x2cc   : > { %1226 = vperm.xlu0 %5658, %v1155_v9   ;;  %1186 = vperm.xlu2 %5660, %v1147_v11   ;;  %v1386_v11 = vpack.c.b16 %v1355_v61, %v1354_v56  ;;  %v1375_v56 = vunpack.c.1.s8 %v6590_v50 }
 0x2cd   : > { %1181 = vperm.xlu1 %5659, %v1146_v10   ;;  %v1438_v10 = vsel %vm1422_vm13, 16843009, %v6077_v63  ;;  %vm6614_vm13 = vcmp.ne.s32.totalorder %v1462_v31, 0 }
 0x2ce   : > { %v1464_v21 = vunpack.c.0.s8 %v1438_v10  ;;  %v1465_v25 = vunpack.c.1.s8 %v1438_v10  ;;  %v1387_v26 = vpack.c.b8 %v1386_v11, %v1386_v11 }
 0x2d0   : > { %vm1496_vm8 = vcmp.ne.s32.totalorder %v1464_v21, 0  ;;  %vm1497_vm10 = vcmp.ne.s32.totalorder %v1465_v25, 0  ;;  %vm1415_vm11 = vnez %v1387_v26  ;;  %v1378_v26 = vunpack.c.3.s8 %v6582_v45 }
 0x2d4   : > { %1231 = vperm.xlu0 %5658, %v1156_v12   ;;  %v1444_v12 = vunpack.c.0.s8 %v1428_v54 }
 0x2d5   : > { %1236 = vperm.xlu1 %5659, %v1157_v13   ;;  %v1445_v13 = vunpack.c.1.s8 %v1428_v54  ;;  %v6595_v54 = vsel %vm1415_vm11, 16843009, %v6077_v63 }
 0x2d6   : > { %vm6562_vm7 = vcmp.ne.s32.totalorder %v1444_v12, 0  ;;  %v1451_v20 = vunpack.c.1.s8 %v6595_v54 }
 0x2d7   : > { %vm6574_vm9 = vcmp.ne.s32.totalorder %v1445_v13, 0  ;;  %v1406_v13 = vpack.c.b16 %v1375_v56, %v1374_v55 }
 0x2dd   : > { %1191 = vperm.xlu1 %5659, %v1148_v14  }
 0x2e5   : > { %1196 = vperm.xlu1 %5659, %v1149_v15  }
 0x30e   : > { %v1212_v34 = vpop.permute.xlu2 %1211 }
 0x30f   : > { %v6510_v53 = vadd.f32 %v6503_v47, %v1212_v34  ;;  %v6516_v57 = vadd.f32 %v6505_v48, %v1212_v34  ;;  %v1379_v34 = vunpack.c.3.s8 %v6590_v50 }
 0x311   : > { %v1296_v14 = vmul.f32 0.2, %v6510_v53  ;;  %v1297_v15 = vmul.f32 0.2, %v6516_v57 }
 0x313   : > { %v1328_v30 = vmax.f32 %v6510_v53, %v1296_v14  ;;  %v1329_v33 = vmax.f32 %v6516_v57, %v1297_v15 }
 0x315   : > { %v6586_v49 = vsel %vm1496_vm8, %v1328_v30, -1e+30  ;;  %v6592_v53 = vsel %vm1497_vm10, %v1329_v33, -1e+30  ;;  %v1407_v33 = vpack.c.b8 %v1406_v13, %v1406_v13 }
 0x316   : > { %v1217_v58 = vpop.permute.xlu2 %1216  ;;  %v1570_v12 = vmax.f32 %v6586_v49, %v6592_v53 }
 0x317   : > { %v1266_v62 = vadd.f32 %v6503_v47, %v1217_v58  ;;  %v1267_v0 = vadd.f32 %v6505_v48, %v1217_v58 }
 0x319   : > { %v1298_v8 = vmul.f32 0.2, %v1266_v62  ;;  %v1299_v9 = vmul.f32 0.2, %v1267_v0 }
 0x31b   : > { %v1330_v18 = vmax.f32 %v1266_v62, %v1298_v8  ;;  %v1331_v19 = vmax.f32 %v1267_v0, %v1299_v9  ;;  %v6604_v62 = vsel %vm1414_vm12, 16843009, %v6077_v63  ;;  %v1388_v0 = vpack.c.b16 %v1357_v44, %v1356_v43 }
 0x31c   : > { %v1448_v43 = vunpack.c.0.s8 %v6604_v62  ;;  %v1405_v44 = vpack.c.b8 %v1404_v22, %v1404_v22 }
 0x31d   : > { %v6568_v37 = vsel %vm6535_vm1, %v1330_v18, -1e+30  ;;  %v6572_v38 = vsel %vm6539_vm2, %v1331_v19, -1e+30  ;;  %v1450_v18 = vunpack.c.0.s8 %v6595_v54  ;;  %v1389_v21 = vpack.c.b8 %v1388_v0, %v1388_v0 }
 0x31e   : > { %v1573_v46 = vmax.f32 %v6568_v37, %v6572_v38  ;;  %v1222_v61 = vpop.permute.xlu2 %1221  ;;  %vm1425_vm2 = vnez %v1407_v33  ;;  %vm1424_vm3 = vnez %v1405_v44 }
 0x31f   : > { %v6609_v6 = vadd.f32 %v6503_v47, %v1222_v61  ;;  %v6612_v8 = vadd.f32 %v6505_v48, %v1222_v61  ;;  %vm6661_vm1 = vnez %v1389_v21  ;;  %v1440_v9 = vsel %vm1424_vm3, 16843009, %v6077_v63 }
 0x320   : > { %vm6712_vm4 = vcmp.ne.s32.totalorder %v1450_v18, 0 }
 0x321   : > { %v6666_v55 = vmul.f32 0.2, %v6609_v6  ;;  %v6670_v1 = vmul.f32 0.2, %v6612_v8 }
 0x323   : > { %v1333_v39 = vmax.f32 %v6612_v8, %v6670_v1 }
 0x326   : > { %v1202_v51 = vpop.permute.xlu0 %1201 }
 0x327   : > { %v1162_v52 = vpop.permute.xlu1 %1161  ;;  %v1260_v57 = vadd.f32 %v6503_v47, %v1202_v51  ;;  %v1261_v58 = vadd.f32 %v6505_v48, %v1202_v51 }
 0x328   : > { %v1244_v59 = vadd.f32 %v6503_v47, %v1162_v52  ;;  %v1245_v60 = vadd.f32 %v6505_v48, %v1162_v52 }
 0x329   : > { %v1292_v3 = vmul.f32 0.2, %v1260_v57  ;;  %v1293_v4 = vmul.f32 0.2, %v1261_v58 }
 0x32a   : > { %v1276_v5 = vmul.f32 0.2, %v1244_v59  ;;  %v1277_v7 = vmul.f32 0.2, %v1245_v60 }
 0x32b   : > { %v1324_v14 = vmax.f32 %v1260_v57, %v1292_v3  ;;  %v1325_v15 = vmax.f32 %v1261_v58, %v1293_v4  ;;  %v1187_v57 = vpop.permute.xlu2 %1186  ;;  %v1449_v58 = vunpack.c.1.s8 %v6604_v62  ;;  %v1432_v3 = vsel %vm6661_vm1, 16843009, %v6077_v63 }
 0x32c   : > { %v1308_v16 = vmax.f32 %v1244_v59, %v1276_v5  ;;  %v1309_v19 = vmax.f32 %v1245_v60, %v1277_v7  ;;  %v1410_v59 = vpack.c.b16 %v1379_v34, %v1378_v26  ;;  %v1441_v4 = vsel %vm1425_vm2, 16843009, %v6077_v63 }
 0x32d   : > { %v6636_v23 = vsel %vm6554_vm5, %v1324_v14, -1e+30  ;;  %v6640_v24 = vsel %vm6558_vm6, %v1325_v15, -1e+30  ;;  %v6677_v5 = vadd.f32 %v6503_v47, %v1187_v57  ;;  %v1452_v26 = vunpack.c.0.s8 %v1432_v3 }
 0x32e   : > { %v6644_v25 = vsel %vm6562_vm7, %v1308_v16, -1e+30  ;;  %v1207_v27 = vpop.permute.xlu0 %1206  ;;  %v1564_v31 = vmax.f32 %v6636_v23, %v6640_v24  ;;  %v6651_v32 = vsel %vm6574_vm9, %v1309_v19, -1e+30  ;;  %v1411_v21 = vpack.c.b8 %v1410_v59, %v1410_v59 }
 0x32f   : > { %v1167_v30 = vpop.permute.xlu1 %1166  ;;  %v1262_v35 = vadd.f32 %v6503_v47, %v1207_v27  ;;  %v1263_v36 = vadd.f32 %v6505_v48, %v1207_v27  ;;  %v1540_v42 = vmax.f32 %v6644_v25, %v6651_v32  ;;  %vm6716_vm5 = vcmp.ne.s32.totalorder %v1451_v20, 0 }
 0x330   : > { %v1246_v40 = vadd.f32 %v6503_v47, %v1167_v30  ;;  %v1247_v41 = vadd.f32 %v6505_v48, %v1167_v30  ;;  %1565 = vmax.xlane.f32.xlu2 %v1564_v31  ;;  %vm6720_vm6 = vcmp.ne.s32.totalorder %v1448_v43, 0  ;;  %v1453_v34 = vunpack.c.1.s8 %v1432_v3  ;;  %v5517_v30 = vld [vmem:[#allocation3 + $0x30] sm:$0xff] }
 0x331   : > { %v1294_v51 = vmul.f32 0.2, %v1262_v35  ;;  %v1295_v52 = vmul.f32 0.2, %v1263_v36  ;;  %1541 = vmax.xlane.f32.xlu1 %v1540_v42  ;;  %vm6727_vm7 = vcmp.ne.s32.totalorder %v1449_v58, 0  ;;  %v1470_v18 = vunpack.c.0.s8 %v1441_v4 }
 0x332   : > { %v1278_v54 = vmul.f32 0.2, %v1246_v40  ;;  %v1279_v56 = vmul.f32 0.2, %v1247_v41  ;;  %v1471_v43 = vunpack.c.1.s8 %v1441_v4  ;;  %vm1427_vm8 = vnez %v1411_v21 }
 0x333   : > { %v1326_v60 = vmax.f32 %v1262_v35, %v1294_v51  ;;  %v1327_v61 = vmax.f32 %v1263_v36, %v1295_v52  ;;  %v1332_v35 = vmax.f32 %v6609_v6, %v6666_v55  ;;  %v6736_v6 = vadd.f32 %v6505_v48, %v1187_v57 }
 0x334   : > { %v1310_v0 = vmax.f32 %v1246_v40, %v1278_v54  ;;  %v1311_v2 = vmax.f32 %v1247_v41, %v1279_v56  ;;  %v1468_v41 = vunpack.c.0.s8 %v1440_v9  ;;  %v6739_v44 = vmul.f32 0.2, %v6677_v5  ;;  %v5525_v40 = vld [vmem:[#allocation3 + $0x70] sm:$0xff] }
 0x335   : > { %v6681_v62 = vsel %vm6614_vm13, %v1326_v60, -1e+30  ;;  %v6685_v7 = vsel %vm6618_vm14, %v1327_v61, -1e+30  ;;  %vm6741_vm9 = vcmp.ne.s32.totalorder %v1452_v26, 0  ;;  %vm6746_vm10 = vcmp.ne.s32.totalorder %v1453_v34, 0 }
 0x336   : > { %v6689_v13 = vsel %vm6622_vm15, %v1310_v0, -1e+30  ;;  %v1172_v14 = vpop.permute.xlu0 %1171  ;;  %v1567_v16 = vmax.f32 %v6681_v62, %v6685_v7  ;;  %v6695_v19 = vsel %vm6628_vm0, %v1311_v2, -1e+30  ;;  %v1469_v55 = vunpack.c.1.s8 %v1440_v9 }
 0x337   : > { %v1177_v15 = vpop.permute.xlu1 %1176  ;;  %v6699_v10 = vadd.f32 %v6503_v47, %v1172_v14  ;;  %v6708_v27 = vadd.f32 %v6505_v48, %v1172_v14  ;;  %v1543_v17 = vmax.f32 %v6689_v13, %v6695_v19  ;;  %v1376_v56 = vunpack.c.2.s8 %v6582_v45 }
 0x338   : > { %v6702_v22 = vadd.f32 %v6503_v47, %v1177_v15  ;;  %v6705_v11 = vadd.f32 %v6505_v48, %v1177_v15  ;;  %1568 = vmax.xlane.f32.xlu0 %v1567_v16  ;;  %vm6752_vm11 = vcmp.ne.s32.totalorder %v1468_v41, 0  ;;  %v6757_v59 = vsel %vm1427_vm8, 16843009, %v6077_v63 }
 0x339   : > { %v1280_v36 = vmul.f32 0.2, %v6699_v10  ;;  %1544 = vmax.xlane.f32.xlu2 %v1543_v17  ;;  %v1281_v52 = vmul.f32 0.2, %v6708_v27  ;;  %v1377_v60 = vunpack.c.2.s8 %v6590_v50  ;;  %vm6762_vm12 = vcmp.ne.s32.totalorder %v1470_v18, 0 }
 0x33a   : > { %v1282_v20 = vmul.f32 0.2, %v6702_v22  ;;  %v1283_v42 = vmul.f32 0.2, %v6705_v11  ;;  %vm6766_vm13 = vcmp.ne.s32.totalorder %v1471_v43, 0  ;;  %v1358_v14 = vunpack.c.1.s8 %v6546_v28  ;;  %v5526_v43 = vld [vmem:[#allocation3 + $0x78] sm:$0xff] }
 0x33b   : > { %v1312_v58 = vmax.f32 %v6699_v10, %v1280_v36  ;;  %v1359_v15 = vunpack.c.1.s8 %v6550_v29  ;;  %v1313_v10 = vmax.f32 %v6708_v27, %v1281_v52  ;;  %vm6784_vm14 = vcmp.ne.s32.totalorder %v1469_v55, 0  ;;  %1925 = vmatpush.bf16.msra.mxu1 %v5526_v43  ;;  %5574 = vmatpush.bf16.msra.mxu3 %v5526_v43 }
 0x33c   : > { %v1314_v61 = vmax.f32 %v6702_v22, %v1282_v20  ;;  %v1315_v0 = vmax.f32 %v6705_v11, %v1283_v42  ;;  %v6782_v22 = vsel %vm6752_vm11, %v1332_v35, -1e+30  ;;  %v1408_v11 = vpack.c.b16 %v1377_v60, %v1376_v56  ;;  %v5518_v42 = vld [vmem:[#allocation3 + $0x38] sm:$0xff] }
 0x33d   : > { %v1390_v26 = vpack.c.b16 %v1359_v15, %v1358_v14  ;;  %v1474_v41 = vunpack.c.0.s8 %v6757_v59  ;;  %v6803_v57 = vsel %vm6720_vm6, %v1312_v58, -1e+30  ;;  %v1362_v60 = vunpack.c.3.s8 %v6546_v28  ;;  %1876 = vmatpush.bf16.msra.mxu0 %v5518_v42  ;;  %5566 = vmatpush.bf16.msra.mxu2 %v5518_v42 }
 0x33e   : > { %v1227_v2 = vpop.permute.xlu0 %1226  ;;  %v1409_v35 = vpack.c.b8 %v1408_v11, %v1408_v11  ;;  %v6795_v55 = vsel %vm6712_vm4, %v1314_v61, -1e+30  ;;  %v6799_v56 = vsel %vm6716_vm5, %v1315_v0, -1e+30  ;;  %v1361_v4 = vunpack.c.2.s8 %v6550_v29 }
 0x33f   : > { %v1182_v3 = vpop.permute.xlu1 %1181  ;;  %v1270_v50 = vadd.f32 %v6503_v47, %v1227_v2  ;;  %v1271_v16 = vadd.f32 %v6505_v48, %v1227_v2  ;;  %v1391_v20 = vpack.c.b8 %v1390_v26, %v1390_v26  ;;  %v1363_v2 = vunpack.c.3.s8 %v6550_v29  ;;  %1926 = vmatpush.bf16.msra.mxu1 %v5525_v40  ;;  %5575 = vmatpush.bf16.msra.mxu3 %v5525_v40 }
 0x340   : > { %v1252_v9 = vadd.f32 %v6503_v47, %v1182_v3  ;;  %v1253_v21 = vadd.f32 %v6505_v48, %v1182_v3  ;;  %1574 = vmax.xlane.f32.xlu0 %v1573_v46  ;;  %v1475_v46 = vunpack.c.1.s8 %v6757_v59  ;;  %v6807_v59 = vsel %vm6727_vm7, %v1313_v10, -1e+30 }
 0x341   : > { %v1302_v17 = vmul.f32 0.2, %v1270_v50  ;;  %v1303_v34 = vmul.f32 0.2, %v1271_v16  ;;  %1571 = vmax.xlane.f32.xlu2 %v1570_v12  ;;  %vm6815_vm15 = vnez %v1409_v35  ;;  %v1549_v14 = vmax.f32 %v6795_v55, %v6799_v56  ;;  %1877 = vmatpush.bf16.msra.mxu0 %v5517_v30 }
 0x342   : > { %v1284_v36 = vmul.f32 0.2, %v1252_v9  ;;  %v1285_v27 = vmul.f32 0.2, %v1253_v21  ;;  %vm6825_vm0 = vcmp.ne.s32.totalorder %v1474_v41, 0  ;;  %vm6829_vm1 = vnez %v1391_v20  ;;  %5567 = vmatpush.bf16.msra.mxu2 %v5517_v30 }
 0x343   : > { %v1334_v61 = vmax.f32 %v1270_v50, %v1302_v17  ;;  %v1335_v31 = vmax.f32 %v1271_v16, %v1303_v34  ;;  %v1546_v54 = vmax.f32 %v6803_v57, %v6807_v59  ;;  %v1442_v26 = vsel %vm6815_vm15, 16843009, %v6077_v63  ;;  %v5516_v34 = vld [vmem:[#allocation3 + $0x28] sm:$0xff] }
 0x344   : > { %v1316_v52 = vmax.f32 %v1252_v9, %v1284_v36  ;;  %v1317_v12 = vmax.f32 %v1253_v21, %v1285_v27  ;;  %v1394_v17 = vpack.c.b16 %v1363_v2, %v1362_v60  ;;  %v5524_v36 = vld [vmem:[#allocation3 + $0x68] sm:$0xff]  ;;  %v1360_v20 = vunpack.c.2.s8 %v6546_v28 }
 0x345   : > { %v6848_v27 = vsel %vm6762_vm12, %v1334_v61, -1e+30  ;;  %v6852_v35 = vsel %vm6766_vm13, %v1335_v31, -1e+30  ;;  %vm6860_vm2 = vcmp.ne.s32.totalorder %v1475_v46, 0  ;;  %v1472_v28 = vunpack.c.0.s8 %v1442_v26  ;;  %1878 = vmatpush.bf16.msra.mxu0 %v5516_v34  ;;  %1927 = vmatpush.bf16.msra.mxu1 %v5524_v36 }
 0x346   : > { %v6813_v0 = vsel %vm6741_vm9, %v1316_v52, -1e+30  ;;  %v1232_v58 = vpop.permute.xlu0 %1231  ;;  %v6823_v15 = vsel %vm6746_vm10, %v1317_v12, -1e+30  ;;  %v1433_v52 = vsel %vm6829_vm1, 16843009, %v6077_v63  ;;  %v1473_v61 = vunpack.c.1.s8 %v1442_v26  ;;  %5568 = vmatpush.bf16.msra.mxu2 %v5516_v34  ;;  %5576 = vmatpush.bf16.msra.mxu3 %v5524_v36 }
 0x347   : > { %v1237_v3 = vpop.permute.xlu1 %1236  ;;  %v1272_v16 = vadd.f32 %v6503_v47, %v1232_v58  ;;  %v6835_v9 = vadd.f32 %v6505_v48, %v1232_v58  ;;  %v1552_v11 = vmax.f32 %v6813_v0, %v6823_v15  ;;  %v6869_v30 = vsel %vm6784_vm14, %v1333_v39, -1e+30 }
 0x348   : > { %v1274_v21 = vadd.f32 %v6503_v47, %v1237_v3  ;;  %v1275_v10 = vadd.f32 %v6505_v48, %v1237_v3  ;;  %1550 = vmax.xlane.f32.xlu0 %v1549_v14  ;;  %v1395_v31 = vpack.c.b8 %v1394_v17, %v1394_v17  ;;  %v1287_v29 = vmul.f32 0.2, %v6736_v6 }
 0x349   : > { %v1304_v42 = vmul.f32 0.2, %v1272_v16  ;;  %1547 = vmax.xlane.f32.xlu2 %v1546_v54  ;;  %1553 = vmax.xlane.f32.xlu1 %v1552_v11  ;;  %v1305_v12 = vmul.f32 0.2, %v6835_v9  ;;  %v1579_v46 = vmax.f32 %v6848_v27, %v6852_v35  ;;  %v1454_v40 = vunpack.c.0.s8 %v1433_v52 }
 0x34a   : > { %v1306_v41 = vmul.f32 0.2, %v1274_v21  ;;  %v1307_v43 = vmul.f32 0.2, %v1275_v10  ;;  %v1455_v18 = vunpack.c.1.s8 %v1433_v52  ;;  %v1392_v58 = vpack.c.b16 %v1361_v4, %v1360_v20 }
 0x34b   : > { %v1336_v8 = vmax.f32 %v1272_v16, %v1304_v42  ;;  %v1337_v3 = vmax.f32 %v6835_v9, %v1305_v12  ;;  %v1576_v14 = vmax.f32 %v6782_v22, %v6869_v30  ;;  %vm1504_vm3 = vcmp.ne.s32.totalorder %v1472_v28, 0 }
 0x34c   : > { %v1338_v60 = vmax.f32 %v1274_v21, %v1306_v41  ;;  %v1339_v2 = vmax.f32 %v1275_v10, %v1307_v43  ;;  %vm1505_vm4 = vcmp.ne.s32.totalorder %v1473_v61, 0  ;;  %vm1419_vm5 = vnez %v1395_v31 }
 0x34d   : > { %v1393_v16 = vpack.c.b8 %v1392_v58, %v1392_v58  ;;  %v1318_v21 = vmax.f32 %v6677_v5, %v6739_v44  ;;  %v1319_v10 = vmax.f32 %v6736_v6, %v1287_v29  ;;  %v6892_v54 = vsel %vm1504_vm3, %v1336_v8, -1e+30  ;;  %v5514_v58 = vld [vmem:[#allocation3 + $0x18] sm:$0xff] }
 0x34e   : > { %v6876_v33 = vsel %vm6825_vm0, %v1338_v60, -1e+30  ;;  %v6880_v39 = vsel %vm6860_vm2, %v1339_v2, -1e+30  ;;  %vm1486_vm6 = vcmp.ne.s32.totalorder %v1454_v40, 0  ;;  %vm1487_vm7 = vcmp.ne.s32.totalorder %v1455_v18, 0 }
 0x34f   : > { %v1192_v1 = vpop.permute.xlu1 %1191  ;;  %v1585_v51 = vmax.f32 %v6876_v33, %v6880_v39  ;;  %vm1418_vm8 = vnez %v1393_v16  ;;  %v6894_v11 = vsel %vm1505_vm4, %v1337_v3, -1e+30  ;;  %v1435_v26 = vsel %vm1419_vm5, 16843009, %v6077_v63  ;;  %v5523_v18 = vld [vmem:[#allocation3 + $0x60] sm:$0xff]  ;;  %v5522_v3 = vld [vmem:[#allocation3 + $0x58] sm:$0xff] }
 0x350   : > { %v1256_v50 = vadd.f32 %v6503_v47, %v1192_v1  ;;  %1580 = vmax.xlane.f32.xlu0 %v1579_v46  ;;  %v1257_v9 = vadd.f32 %v6505_v48, %v1192_v1  ;;  %v1434_v17 = vsel %vm1418_vm8, 16843009, %v6077_v63  ;;  %v6898_v5 = vsel %vm1486_vm6, %v1318_v21, -1e+30  ;;  %v5515_v1 = vld [vmem:[#allocation3 + $0x20] sm:$0xff]  ;;  %1928 = vmatpush.bf16.msra.mxu1 %v5523_v18  ;;  %v5520_v16 = vld [vmem:[#allocation3 + $0x48] sm:$0xff] }
 0x351   : > { %1577 = vmax.xlane.f32.xlu2 %v1576_v14  ;;  %1586 = vmax.xlane.f32.xlu1 %v1585_v51  ;;  %v6900_v6 = vsel %vm1487_vm7, %v1319_v10, -1e+30  ;;  %v1456_v44 = vunpack.c.0.s8 %v1434_v17  ;;  %v1582_v20 = vmax.f32 %v6892_v54, %v6894_v11  ;;  %v1458_v42 = vunpack.c.0.s8 %v1435_v26  ;;  %v5513_v14 = vld [vmem:[#allocation3 + $0x10] sm:$0xff]  ;;  %v5511_v21 = vld [vmem:[#allocation3] sm:$0xff] }
 0x352   : > { %v1288_v34 = vmul.f32 0.2, %v1256_v50  ;;  %v1289_v36 = vmul.f32 0.2, %v1257_v9  ;;  %v1459_v43 = vunpack.c.1.s8 %v1435_v26  ;;  %v1457_v52 = vunpack.c.1.s8 %v1434_v17  ;;  %1879 = vmatpush.bf16.msra.mxu0 %v5515_v1  ;;  %5569 = vmatpush.bf16.msra.mxu2 %v5515_v1  ;;  %v5521_v51 = vld [vmem:[#allocation3 + $0x50] sm:$0xff]  ;;  %v5519_v10 = vld [vmem:[#allocation3 + $0x40] sm:$0xff] }
 0x353   : > { %v1555_v63 = vmax.f32 %v6898_v5, %v6900_v6  ;;  %vm1488_vm9 = vcmp.ne.s32.totalorder %v1456_v44, 0  ;;  %vm1490_vm10 = vcmp.ne.s32.totalorder %v1458_v42, 0  ;;  %5577 = vmatpush.bf16.msra.mxu3 %v5523_v18  ;;  %vm2206_vm0 = vcmask 257024  }
 0x354   : > { %v1320_v60 = vmax.f32 %v1256_v50, %v1288_v34  ;;  %v1321_v45 = vmax.f32 %v1257_v9, %v1289_v36  ;;  %vm1491_vm11 = vcmp.ne.s32.totalorder %v1459_v43, 0  ;;  %vm1489_vm12 = vcmp.ne.s32.totalorder %v1457_v52, 0  ;;  %1929 = vmatpush.bf16.msra.mxu1 %v5522_v3  ;;  %v5512_v50 = vld [vmem:[#allocation3 + $0x8] sm:$0xff] }
 0x356   : > { %v6908_v29 = vsel %vm1488_vm9, %v1320_v60, -1e+30  ;;  %v6914_v46 = vsel %vm1489_vm12, %v1321_v45, -1e+30  ;;  %1880 = vmatpush.bf16.msra.mxu0 %v5514_v58  ;;  %5570 = vmatpush.bf16.msra.mxu2 %v5514_v58 }
 0x357   : > { %v1197_v41 = vpop.permute.xlu1 %1196  ;;  %v1558_v8 = vmax.f32 %v6908_v29, %v6914_v46  ;;  %5578 = vmatpush.bf16.msra.mxu3 %v5522_v3 }
 0x358   : > { %v1258_v4 = vadd.f32 %v6503_v47, %v1197_v41  ;;  %v1259_v12 = vadd.f32 %v6505_v48, %v1197_v41  ;;  %1583 = vmax.xlane.f32.xlu0 %v1582_v20  ;;  %1930 = vmatpush.bf16.msra.mxu1 %v5521_v51 }
 0x359   : > { %1556 = vmax.xlane.f32.xlu2 %v1555_v63 }
 0x35a   : > { %v1290_v28 = vmul.f32 0.2, %v1258_v4  ;;  %v1291_v2 = vmul.f32 0.2, %v1259_v12  ;;  %1881 = vmatpush.bf16.msra.mxu0 %v5513_v14  ;;  %5571 = vmatpush.bf16.msra.mxu2 %v5513_v14 }
 0x35b   : > { %5579 = vmatpush.bf16.msra.mxu3 %v5521_v51 }
 0x35c   : > { %v1322_v61 = vmax.f32 %v1258_v4, %v1290_v28  ;;  %v1323_v31 = vmax.f32 %v1259_v12, %v1291_v2  ;;  %1931 = vmatpush.bf16.msra.mxu1 %v5520_v16 }
 0x35e   : > { %v6910_v47 = vsel %vm1490_vm10, %v1322_v61, -1e+30  ;;  %v6912_v48 = vsel %vm1491_vm11, %v1323_v31, -1e+30  ;;  %1882 = vmatpush.bf16.msra.mxu0 %v5512_v50  ;;  %5572 = vmatpush.bf16.msra.mxu2 %v5512_v50 }
 0x35f   : > { %v1561_v40 = vmax.f32 %v6910_v47, %v6912_v48  ;;  %5580 = vmatpush.bf16.msra.mxu3 %v5520_v16 }
 0x360   : > { %1932 = vmatpush.bf16.msra.mxu1 %v5519_v10 }
 0x361   : > { %1562 = vmax.xlane.f32.xlu0 %v1561_v40  ;;  %1559 = vmax.xlane.f32.xlu2 %v1558_v8 }
 0x362   : > { %1883 = vmatpush.bf16.msra.mxu0 %v5511_v21  ;;  %5573 = vmatpush.bf16.msra.mxu2 %v5511_v21 }
 0x363   : > { %5581 = vmatpush.bf16.msra.mxu3 %v5519_v10 }
 0x3a3   : > { %v1566_v9 = vpop.xlane.xlu2 %1565 }
 0x3a4   : > { %v1604_v26 = vsub.f32 %v6636_v23, %v1566_v9  ;;  %v1542_v17 = vpop.xlane.xlu1 %1541  ;;  %v1605_v44 = vsub.f32 %v6640_v24, %v1566_v9 }
 0x3a5   : > { %v1588_v34 = vsub.f32 %v6644_v25, %v1542_v17  ;;  %v1589_v36 = vsub.f32 %v6651_v32, %v1542_v17 }
 0x3a6   : > { %v1652_v42 = vmul.f32 1.442695, %v1604_v26  ;;  %v1654_v43 = vmul.f32 1.442695, %v1605_v44 }
 0x3a7   : > { %v1620_v41 = vmul.f32 1.442695, %v1588_v34  ;;  %v1622_v20 = vmul.f32 1.442695, %v1589_v36 }
 0x3a9   : > { %5662 = vpow2.f32 %v1620_v41 }
 0x3aa   : > { %5664 = vpow2.f32 %v1622_v20 }
 0x3ab   : > { %v1569_v52 = vpop.xlane.xlu0 %1568  ;;  %5666 = vpow2.f32 %v1652_v42 }
 0x3ac   : > { %v1606_v4 = vsub.f32 %v6681_v62, %v1569_v52  ;;  %v1607_v12 = vsub.f32 %v6685_v7, %v1569_v52  ;;  %v1545_v23 = vpop.xlane.xlu2 %1544  ;;  %5668 = vpow2.f32 %v1654_v43 }
 0x3ad   : > { %v1590_v25 = vsub.f32 %v6689_v13, %v1545_v23  ;;  %v1591_v32 = vsub.f32 %v6695_v19, %v1545_v23 }
 0x3ae   : > { %v1656_v60 = vmul.f32 1.442695, %v1606_v4  ;;  %v1658_v63 = vmul.f32 1.442695, %v1607_v12 }
 0x3af   : > { %v5663_v24 = vpop.eup %5662  ;;  %v1624_v45 = vmul.f32 1.442695, %v1590_v25  ;;  %v1626_v28 = vmul.f32 1.442695, %v1591_v32 }
 0x3b0   : > { %5670 = vpow2.f32 %v1656_v60  ;;  %v5665_v2 = vpop.eup %5664 }
 0x3b1   : > { %5672 = vpow2.f32 %v1658_v63  ;;  %v1684_v61 = vadd.f32 %v5665_v2, %v5663_v24  ;;  %v6928_v62 = vpop.eup %5666 }
 0x3b2   : > { %5674 = vpow2.f32 %v1624_v45  ;;  %v6932_v40 = vpop.eup %5668 }
 0x3b3   : > { %5676 = vpow2.f32 %v1626_v28  ;;  %v1575_v7 = vpop.xlane.xlu0 %1574  ;;  %1685 = vadd.xlane.f32.xlu1 %v1684_v61 }
 0x3b4   : > { %v1610_v31 = vsub.f32 %v6568_v37, %v1575_v7  ;;  %v1611_v13 = vsub.f32 %v6572_v38, %v1575_v7  ;;  %v1572_v19 = vpop.xlane.xlu2 %1571 }
 0x3b5   : > { %v1608_v1 = vsub.f32 %v6586_v49, %v1572_v19  ;;  %v1609_v3 = vsub.f32 %v6592_v53, %v1572_v19 }
 0x3b6   : > { %v6934_v8 = vpop.eup %5670  ;;  %v1664_v58 = vmul.f32 1.442695, %v1610_v31  ;;  %v1666_v50 = vmul.f32 1.442695, %v1611_v13 }
 0x3b7   : > { %v6937_v18 = vpop.eup %5672  ;;  %v1740_v14 = vpack.c.bf16 %v6934_v8, %v6928_v62  ;;  %v1660_v16 = vmul.f32 1.442695, %v1608_v1  ;;  %v1662_v9 = vmul.f32 1.442695, %v1609_v3 }
 0x3b8   : > { %v5675_v51 = vpop.eup %5674  ;;  %v1741_v37 = vpack.c.bf16 %v6937_v18, %v6932_v40  ;;  %5678 = vpow2.f32 %v1664_v58 }
 0x3b9   : > { %v5677_v38 = vpop.eup %5676  ;;  %1904 = vmatmul.bf16.vlgmr.msra.gmra.mxu2 %v1740_v14  ;;  %v1732_v21 = vpack.c.bf16 %v5675_v51, %v5663_v24  ;;  %5680 = vpow2.f32 %v1666_v50 }
 0x3ba   : > { %1953 = vmatmul.bf16.vlgmr.msra.gmra.mxu3 %v1741_v37  ;;  %v1687_v10 = vadd.f32 %v5677_v38, %v5675_v51  ;;  %v1733_v49 = vpack.c.bf16 %v5677_v38, %v5665_v2  ;;  %5682 = vpow2.f32 %v1660_v16 }
 0x3bb   : > { %1884 = vmatmul.bf16.vlgmr.msra.gmra.mxu0 %v1732_v21  ;;  %v1551_v26 = vpop.xlane.xlu0 %1550  ;;  %5684 = vpow2.f32 %v1662_v9 }
 0x3bc   : > { %1688 = vadd.xlane.f32.xlu2 %v1687_v10  ;;  %1933 = vmatmul.bf16.vlgmr.msra.gmra.mxu1 %v1733_v49  ;;  %v1594_v53 = vsub.f32 %v6795_v55, %v1551_v26  ;;  %v1595_v17 = vsub.f32 %v6799_v56, %v1551_v26  ;;  %v1548_v34 = vpop.xlane.xlu2 %1547  ;;  %v1554_v36 = vpop.xlane.xlu1 %1553 }
 0x3bd   : > { %v1592_v20 = vsub.f32 %v6803_v57, %v1548_v34  ;;  %v1593_v42 = vsub.f32 %v6807_v59, %v1548_v34  ;;  %v1596_v43 = vsub.f32 %v6813_v0, %v1554_v36  ;;  %v1597_v52 = vsub.f32 %v6823_v15, %v1554_v36 }
 0x3be   : > { %v1632_v44 = vmul.f32 1.442695, %v1594_v53  ;;  %v1634_v41 = vmul.f32 1.442695, %v1595_v17  ;;  %v6950_v55 = vpop.eup %5678 }
 0x3bf   : > { %v1628_v4 = vmul.f32 1.442695, %v1592_v20  ;;  %v1630_v12 = vmul.f32 1.442695, %v1593_v42  ;;  %v1636_v56 = vmul.f32 1.442695, %v1596_v43  ;;  %v6952_v60 = vpop.eup %5680 }
 0x3c0   : > { %5686 = vpow2.f32 %v1632_v44  ;;  %v1638_v23 = vmul.f32 1.442695, %v1597_v52  ;;  %v6954_v63 = vpop.eup %5682 }
 0x3c1   : > { %5688 = vpow2.f32 %v1634_v41  ;;  %v6957_v0 = vpop.eup %5684  ;;  %v1742_v2 = vpack.c.bf16 %v6950_v55, %v6954_v63 }
 0x3c2   : > { %5690 = vpow2.f32 %v1628_v4 }
 0x3c3   : > { %5692 = vpow2.f32 %v1630_v12  ;;  %v1581_v57 = vpop.xlane.xlu0 %1580 }
 0x3c4   : > { %5694 = vpow2.f32 %v1636_v56  ;;  %v1614_v59 = vsub.f32 %v6848_v27, %v1581_v57  ;;  %v1615_v15 = vsub.f32 %v6852_v35, %v1581_v57  ;;  %v1578_v25 = vpop.xlane.xlu2 %1577  ;;  %v1743_v27 = vpack.c.bf16 %v6952_v60, %v6957_v0  ;;  %v1587_v17 = vpop.xlane.xlu1 %1586 }
 0x3c5   : > { %5696 = vpow2.f32 %v1638_v23  ;;  %v1612_v24 = vsub.f32 %v6782_v22, %v1578_v25  ;;  %v1613_v28 = vsub.f32 %v6869_v30, %v1578_v25  ;;  %v1618_v52 = vsub.f32 %v6876_v33, %v1587_v17 }
 0x3c6   : > { %v5687_v32 = vpop.eup %5686  ;;  %v1672_v7 = vmul.f32 1.442695, %v1614_v59  ;;  %v1674_v19 = vmul.f32 1.442695, %v1615_v15  ;;  %v1619_v57 = vsub.f32 %v6880_v39, %v1587_v17 }
 0x3c7   : > { %v5689_v45 = vpop.eup %5688  ;;  %v1668_v58 = vmul.f32 1.442695, %v1612_v24  ;;  %v1670_v14 = vmul.f32 1.442695, %v1613_v28  ;;  %v1680_v15 = vmul.f32 1.442695, %v1618_v52 }
 0x3c8   : > { %v5691_v61 = vpop.eup %5690  ;;  %v1693_v31 = vadd.f32 %v5689_v45, %v5687_v32  ;;  %5698 = vpow2.f32 %v1672_v7  ;;  %v1682_v25 = vmul.f32 1.442695, %v1619_v57 }
 0x3c9   : > { %v5693_v13 = vpop.eup %5692  ;;  %1909 = vmatmul.bf16.gmra.mxu2 %v1742_v2  ;;  %v1734_v35 = vpack.c.bf16 %v5687_v32, %v5691_v61  ;;  %5700 = vpow2.f32 %v1674_v19  ;;  %v1708_v2 = vadd.f32 %v6932_v40, %v6928_v62  ;;  %v1711_v62 = vadd.f32 %v6937_v18, %v6934_v8 }
 0x3ca   : > { %v5695_v1 = vpop.eup %5694  ;;  %1958 = vmatmul.bf16.gmra.mxu3 %v1743_v27  ;;  %v1690_v22 = vadd.f32 %v5693_v13, %v5691_v61  ;;  %v1735_v3 = vpack.c.bf16 %v5689_v45, %v5693_v13  ;;  %1694 = vadd.xlane.f32.xlu1 %v1693_v31  ;;  %5702 = vpow2.f32 %v1668_v58 }
 0x3cb   : > { %v5697_v30 = vpop.eup %5696  ;;  %1889 = vmatmul.bf16.gmra.mxu0 %v1734_v35  ;;  %v1584_v51 = vpop.xlane.xlu0 %1583  ;;  %5704 = vpow2.f32 %v1670_v14  ;;  %v1714_v35 = vadd.f32 %v6957_v0, %v6954_v63 }
 0x3cc   : > { %1691 = vadd.xlane.f32.xlu0 %v1690_v22  ;;  %1938 = vmatmul.bf16.gmra.mxu1 %v1735_v3  ;;  %v1696_v50 = vadd.f32 %v5697_v30, %v5695_v1  ;;  %v1557_v37 = vpop.xlane.xlu2 %1556  ;;  %v1617_v4 = vsub.f32 %v6894_v11, %v1584_v51  ;;  %v1717_v22 = vadd.f32 %v6952_v60, %v6950_v55 }
 0x3cd   : > { %v1598_v38 = vsub.f32 %v6898_v5, %v1557_v37  ;;  %v1599_v16 = vsub.f32 %v6900_v6, %v1557_v37  ;;  %v1616_v6 = vsub.f32 %v6892_v54, %v1584_v51  ;;  %v7003_v51 = vld [vmem:[%s8556_s5] ss:$0 sm:$0xff] }
 0x3ce   : > { %1697 = vadd.xlane.f32.xlu2 %v1696_v50  ;;  %v6968_v49 = vpop.eup %5698  ;;  %v1678_v59 = vmul.f32 1.442695, %v1617_v4 }
 0x3cf   : > { %v1640_v21 = vmul.f32 1.442695, %v1598_v38  ;;  %v1642_v10 = vmul.f32 1.442695, %v1599_v16  ;;  %v6970_v9 = vpop.eup %5700 }
 0x3d0   : > { %v6972_v53 = vpop.eup %5702  ;;  %v1723_v3 = vadd.f32 %v6970_v9, %v6968_v49 }
 0x3d1   : > { %5706 = vpow2.f32 %v1640_v21  ;;  %v6976_v5 = vpop.eup %5704 }
 0x3d2   : > { %5708 = vpow2.f32 %v1642_v10  ;;  %v1745_v54 = vpack.c.bf16 %v6970_v9, %v6976_v5  ;;  %v1720_v0 = vadd.f32 %v6976_v5, %v6972_v53 }
 0x3d4   : > { %v1563_v26 = vpop.xlane.xlu0 %1562  ;;  %v1560_v44 = vpop.xlane.xlu2 %1559 }
 0x3d5   : > { %v1602_v34 = vsub.f32 %v6910_v47, %v1563_v26  ;;  %v1603_v36 = vsub.f32 %v6912_v48, %v1563_v26  ;;  %v1600_v42 = vsub.f32 %v6908_v29, %v1560_v44  ;;  %v1601_v43 = vsub.f32 %v6914_v46, %v1560_v44 }
 0x3d6   : > { %v1744_v47 = vpack.c.bf16 %v6968_v49, %v6972_v53  ;;  %v1676_v46 = vmul.f32 1.442695, %v1616_v6 }
 0x3d7   : > { %v1648_v41 = vmul.f32 1.442695, %v1602_v34  ;;  %v1650_v20 = vmul.f32 1.442695, %v1603_v36  ;;  %v5707_v12 = vpop.eup %5706  ;;  %v1644_v48 = vmul.f32 1.442695, %v1600_v42 }
 0x3d8   : > { %v1646_v56 = vmul.f32 1.442695, %v1601_v43  ;;  %v5709_v23 = vpop.eup %5708  ;;  %v1736_v29 = vpack.c.bf16 %v5707_v12, %v5695_v1 }
 0x3d9   : > { %5710 = vpow2.f32 %v1648_v41  ;;  %1914 = vmatmul.bf16.gmra.mxu2 %v1744_v47  ;;  %v1699_v33 = vadd.f32 %v5709_v23, %v5707_v12  ;;  %v1737_v11 = vpack.c.bf16 %v5709_v23, %v5697_v30 }
 0x3da   : > { %5712 = vpow2.f32 %v1650_v20  ;;  %1963 = vmatmul.bf16.gmra.mxu3 %v1745_v54 }
 0x3db   : > { %5714 = vpow2.f32 %v1644_v48  ;;  %1894 = vmatmul.bf16.gmra.mxu0 %v1736_v29  ;;  %1700 = vadd.xlane.f32.xlu0 %v1699_v33 }
 0x3dc   : > { %5716 = vpow2.f32 %v1646_v56  ;;  %1943 = vmatmul.bf16.gmra.mxu1 %v1737_v11 }
 0x3dd   : > { %5718 = vpow2.f32 %v1676_v46 }
 0x3de   : > { %5720 = vpow2.f32 %v1678_v59 }
 0x3df   : > { %v5711_v32 = vpop.eup %5710  ;;  %5722 = vpow2.f32 %v1680_v15 }
 0x3e0   : > { %v5713_v24 = vpop.eup %5712  ;;  %5724 = vpow2.f32 %v1682_v25 }
 0x3e1   : > { %v5715_v39 = vpop.eup %5714  ;;  %v1705_v45 = vadd.f32 %v5713_v24, %v5711_v32 }
 0x3e2   : > { %v5717_v28 = vpop.eup %5716  ;;  %v1738_v58 = vpack.c.bf16 %v5711_v32, %v5715_v39 }
 0x3e3   : > { %v1702_v61 = vadd.f32 %v5717_v28, %v5715_v39  ;;  %1706 = vadd.xlane.f32.xlu2 %v1705_v45  ;;  %v5719_v7 = vpop.eup %5718  ;;  %1709 = vadd.xlane.f32.xlu0 %v1708_v2  ;;  %v1739_v40 = vpack.c.bf16 %v5713_v24, %v5717_v28 }
 0x3e4   : > { %v5721_v27 = vpop.eup %5720 }
 0x3e5   : > { %1703 = vadd.xlane.f32.xlu1 %v1702_v61  ;;  %v5723_v31 = vpop.eup %5722  ;;  %v1726_v63 = vadd.f32 %v5721_v27, %v5719_v7 }
 0x3e6   : > { %v5725_v13 = vpop.eup %5724  ;;  %v1746_v19 = vpack.c.bf16 %v5723_v31, %v5719_v7 }
 0x3e7   : > { %v1747_v1 = vpack.c.bf16 %v5725_v13, %v5721_v27  ;;  %v1729_v55 = vadd.f32 %v5725_v13, %v5723_v31 }
 0x3e9   : > { %1919 = vmatmul.bf16.gmra.mxu2 %v1746_v19 }
 0x3ea   : > { %1968 = vmatmul.bf16.gmra.mxu3 %v1747_v1 }
 0x3eb   : > { %1715 = vadd.xlane.f32.xlu2 %v1714_v35  ;;  %1899 = vmatmul.bf16.gmra.mxu0 %v1738_v58 }
 0x3ec   : > { %1718 = vadd.xlane.f32.xlu0 %v1717_v22  ;;  %1948 = vmatmul.bf16.gmra.mxu1 %v1739_v40 }
 0x3ed   : > { %1712 = vadd.xlane.f32.xlu1 %v1711_v62 }
 0x3f3   : > { %1724 = vadd.xlane.f32.xlu2 %v1723_v3 }
 0x3f4   : > { %1727 = vadd.xlane.f32.xlu0 %v1726_v63 }
 0x3f5   : > { %1721 = vadd.xlane.f32.xlu1 %v1720_v0 }
 0x3fd   : > { %1730 = vadd.xlane.f32.xlu1 %v1729_v55 }
 0x426   : > { %v1686_v8 = vpop.xlane.xlu1 %1685 }
 0x427   : > { %5726 = vrcp.f32 %v1686_v8 }
 0x42d   : > { %v5727_v50 = vpop.eup %5726 }
 0x42f   : > { %v1689_v30 = vpop.xlane.xlu2 %1688 }
 0x430   : > { %5728 = vrcp.f32 %v1689_v30 }
 0x436   : > { %v5729_v17 = vpop.eup %5728 }
 0x438   : > { %v1885_v18 = vpop.f32.mrf.mxu0 }
 0x439   : > { %v1934_v60 = vpop.f32.mrf.mxu1 }
 0x43a   : > { %v1935_v14 = vadd.f32 %v1934_v60, %v1885_v18 }
 0x43c   : > { %v1990_v37 = vmul.f32 %v5727_v50, %v1935_v14  ;;  %v7005_v38 = vpop.f32.mrf.mxu2 }
 0x43d   : > { %v7007_v16 = vpop.f32.mrf.mxu3  ;;  %v1695_v52 = vpop.xlane.xlu1 %1694 }
 0x43e   : > { %v2010_v21 = vadd.f32 %v7003_v51, %v1990_v37  ;;  %v1955_v50 = vadd.f32 %v7007_v16, %v7005_v38 }
 0x43f   : > { %v1692_v26 = vpop.xlane.xlu0 %1691 }
 0x440   : > { %v2042_v10 = vmul.f32 1.442695, %v2010_v21  ;;  %v1887_v49 = vpop.f32.mrf.mxu0  ;;  %vm2026_vm13 = vcmp.gt.f32.partialorder %v2010_v21, 0.0 }
 0x441   : > { %v1936_v9 = vpop.f32.mrf.mxu1  ;;  %v1698_v23 = vpop.xlane.xlu2 %1697 }
 0x442   : > { %5730 = vpow2.f32 %v2042_v10  ;;  %v1937_v53 = vadd.f32 %v1936_v9, %v1887_v49 }
 0x443   : > { %5732 = vrcp.f32 %v1692_v26 }
 0x444   : > { %v1991_v34 = vmul.f32 %v5729_v17, %v1937_v53  ;;  %v7010_v36 = vpop.f32.mrf.mxu2 }
 0x445   : > { %v7012_v5 = vpop.f32.mrf.mxu3 }
 0x446   : > { %v2011_v6 = vadd.f32 %v7003_v51, %v1991_v34 }
 0x448   : > { %v5731_v44 = vpop.eup %5730  ;;  %v2044_v41 = vmul.f32 1.442695, %v2011_v6  ;;  %v1890_v20 = vpop.f32.mrf.mxu0  ;;  %vm2027_vm14 = vcmp.gt.f32.partialorder %v2011_v6, 0.0 }
 0x449   : > { %v5247_v42 = vadd.f32 -1.0, %v5731_v44  ;;  %v1939_v43 = vpop.f32.mrf.mxu1  ;;  %v5733_v47 = vpop.eup %5732 }
 0x44a   : > { %5734 = vpow2.f32 %v2044_v41  ;;  %v1940_v4 = vadd.f32 %v1939_v43, %v1890_v20 }
 0x44b   : > { %v2090_v12 = vsel %vm2026_vm13, %v2010_v21, %v5247_v42  ;;  %5736 = vrcp.f32 %v1695_v52 }
 0x44c   : > { %v2122_v48 = vmul.f32 1.442695, %v2090_v12  ;;  %v1992_v56 = vmul.f32 %v5733_v47, %v1940_v4  ;;  %v7015_v54 = vpop.f32.mrf.mxu2  ;;  %vm2106_vm15 = vcmp.gt.f32.partialorder %v2090_v12, 0.0 }
 0x44d   : > { %v7017_v57 = vpop.f32.mrf.mxu3 }
 0x44e   : > { %5738 = vpow2.f32 %v2122_v48  ;;  %v2012_v29 = vadd.f32 %v7003_v51, %v1992_v56  ;;  %v1701_v46 = vpop.xlane.xlu0 %1700  ;;  %v1960_v48 = vadd.f32 %v7017_v57, %v7015_v54 }
 0x450   : > { %v5735_v33 = vpop.eup %5734  ;;  %v2046_v11 = vmul.f32 1.442695, %v2012_v29  ;;  %v1892_v59 = vpop.f32.mrf.mxu0  ;;  %vm2028_vm1 = vcmp.gt.f32.partialorder %v2012_v29, 0.0 }
 0x451   : > { %v5248_v15 = vadd.f32 -1.0, %v5735_v33  ;;  %v1941_v25 = vpop.f32.mrf.mxu1  ;;  %v5737_v24 = vpop.eup %5736  ;;  %v1957_v33 = vadd.f32 %v7012_v5, %v7010_v36 }
 0x452   : > { %5740 = vpow2.f32 %v2046_v11  ;;  %v1942_v32 = vadd.f32 %v1941_v25, %v1892_v59 }
 0x453   : > { %v2091_v39 = vsel %vm2027_vm14, %v2011_v6, %v5248_v15  ;;  %5742 = vrcp.f32 %v1698_v23 }
 0x454   : > { %v5739_v45 = vpop.eup %5738  ;;  %v2124_v28 = vmul.f32 1.442695, %v2091_v39  ;;  %v1993_v2 = vmul.f32 %v5737_v24, %v1942_v32  ;;  %v7021_v61 = vpop.f32.mrf.mxu2  ;;  %vm2107_vm2 = vcmp.gt.f32.partialorder %v2091_v39, 0.0 }
 0x455   : > { %v5263_v7 = vadd.f32 -1.0, %v5739_v45  ;;  %v7023_v27 = vpop.f32.mrf.mxu3 }
 0x456   : > { %v7025_v31 = vpop.xlane.xlu2 %1706  ;;  %5744 = vpow2.f32 %v2124_v28  ;;  %v2013_v13 = vadd.f32 %v7003_v51, %v1993_v2  ;;  %v1710_v35 = vpop.xlane.xlu0 %1709  ;;  %v1962_v59 = vadd.f32 %v7023_v27, %v7021_v61 }
 0x457   : > { %v2170_v19 = vsel %vm2106_vm15, %v2090_v12, %v5263_v7  ;;  %5746 = vrcp.f32 %v1710_v35 }
 0x458   : > { %v7028_v1 = vpop.xlane.xlu1 %1703  ;;  %v5741_v58 = vpop.eup %5740  ;;  %v2186_v22 = vpack.c.bf16 %v2170_v19, %v2170_v19  ;;  %v2048_v62 = vmul.f32 1.442695, %v2013_v13  ;;  %vm2029_vm3 = vcmp.gt.f32.partialorder %v2013_v13, 0.0 }
 0x459   : > { %v1895_v40 = vpop.f32.mrf.mxu0  ;;  %v5249_v3 = vadd.f32 -1.0, %v5741_v58  ;;  %v1944_v63 = vpop.f32.mrf.mxu1 }
 0x45a   : > { %2207 = vst.msk [vmem:[%s7030_s15] sm:$0xf] %vm2206_vm0, %v2186_v22  ;;  %5748 = vpow2.f32 %v2048_v62  ;;  %v1945_v0 = vadd.f32 %v1944_v63, %v1895_v40  ;;  %v5743_v55 = vpop.eup %5742 }
 0x45b   : > { %v2092_v8 = vsel %vm2028_vm1, %v2012_v29, %v5249_v3  ;;  %5750 = vrcp.f32 %v1701_v46 }
 0x45c   : > { %v5745_v18 = vpop.eup %5744  ;;  %v2126_v60 = vmul.f32 1.442695, %v2092_v8  ;;  %v1994_v30 = vmul.f32 %v5743_v55, %v1945_v0  ;;  %v7034_v14 = vpop.f32.mrf.mxu2  ;;  %vm2108_vm4 = vcmp.gt.f32.partialorder %v2092_v8, 0.0 }
 0x45d   : > { %v5264_v37 = vadd.f32 -1.0, %v5745_v18  ;;  %v7038_v21 = vpop.f32.mrf.mxu3  ;;  %v5747_v49 = vpop.eup %5746 }
 0x45e   : > { %v1716_v10 = vpop.xlane.xlu2 %1715  ;;  %5752 = vpow2.f32 %v2126_v60  ;;  %v2014_v9 = vadd.f32 %v7003_v51, %v1994_v30  ;;  %v1998_v53 = vmul.f32 %v5747_v49, %v1955_v50 }
 0x45f   : > { %v2171_v26 = vsel %vm2107_vm2, %v2091_v39, %v5264_v37  ;;  %v1719_v17 = vpop.xlane.xlu0 %1718  ;;  %5754 = vrcp.f32 %v1716_v10 }
 0x460   : > { %v1713_v34 = vpop.xlane.xlu1 %1712  ;;  %v5749_v6 = vpop.eup %5748  ;;  %v2187_v44 = vpack.c.bf16 %v2171_v26, %v2171_v26  ;;  %v2050_v41 = vmul.f32 1.442695, %v2014_v9  ;;  %5756 = vrcp.f32 %v1719_v17  ;;  %v7042_v20 = vadd.f32 %v7003_v51, %v1998_v53 }
 0x461   : > { %v1897_v38 = vpop.f32.mrf.mxu0  ;;  %v5250_v16 = vadd.f32 -1.0, %v5749_v6  ;;  %5758 = vrcp.f32 %v1713_v34  ;;  %v1946_v42 = vpop.f32.mrf.mxu1  ;;  %vm2030_vm5 = vcmp.gt.f32.partialorder %v2014_v9, 0.0  ;;  %v1965_v6 = vadd.f32 %v7038_v21, %v7034_v14 }
 0x462   : > { %2208 = vst.msk [vmem:[%s7030_s15 + $0x4] sm:$0xf] %vm2206_vm0, %v2187_v44  ;;  %5760 = vpow2.f32 %v2050_v41  ;;  %v1947_v43 = vadd.f32 %v1946_v42, %v1897_v38  ;;  %v5751_v52 = vpop.eup %5750  ;;  %v2058_v47 = vmul.f32 1.442695, %v7042_v20  ;;  %vm2034_vm6 = vcmp.gt.f32.partialorder %v7042_v20, 0.0 }
 0x463   : > { %v7046_v4 = vsel %vm2029_vm3, %v2013_v13, %v5250_v16 }
 0x464   : > { %v5753_v12 = vpop.eup %5752  ;;  %v2128_v56 = vmul.f32 1.442695, %v7046_v4  ;;  %v1995_v23 = vmul.f32 %v5751_v52, %v1947_v43  ;;  %v1917_v29 = vpop.f32.mrf.mxu2  ;;  %5762 = vpow2.f32 %v2058_v47  ;;  %vm2109_vm7 = vcmp.gt.f32.partialorder %v7046_v4, 0.0 }
 0x465   : > { %v5755_v46 = vpop.eup %5754  ;;  %v5265_v11 = vadd.f32 -1.0, %v5753_v12  ;;  %v1966_v15 = vpop.f32.mrf.mxu3 }
 0x466   : > { %v1725_v25 = vpop.xlane.xlu2 %1724  ;;  %v5757_v32 = vpop.eup %5756  ;;  %5764 = vpow2.f32 %v2128_v56  ;;  %v2000_v24 = vmul.f32 %v5755_v46, %v1960_v48  ;;  %v7057_v54 = vadd.f32 %v7003_v51, %v1995_v23 }
 0x467   : > { %v5759_v57 = vpop.eup %5758  ;;  %v2172_v39 = vsel %vm2108_vm4, %v2092_v8, %v5265_v11  ;;  %v2001_v45 = vmul.f32 %v5757_v32, %v1962_v59  ;;  %v1728_v28 = vpop.xlane.xlu0 %1727  ;;  %5766 = vrcp.f32 %v1725_v25  ;;  %v1967_v8 = vadd.f32 %v1966_v15, %v1917_v29 }
 0x468   : > { %v1722_v36 = vpop.xlane.xlu1 %1721  ;;  %v5761_v5 = vpop.eup %5760  ;;  %v2188_v2 = vpack.c.bf16 %v2172_v39, %v2172_v39  ;;  %5768 = vrcp.f32 %v7028_v1  ;;  %v7061_v61 = vadd.f32 %v7003_v51, %v2000_v24  ;;  %v1999_v7 = vmul.f32 %v5759_v57, %v1957_v33 }
 0x469   : > { %v5251_v27 = vadd.f32 -1.0, %v5761_v5  ;;  %v7064_v13 = vadd.f32 %v7003_v51, %v2001_v45  ;;  %v2052_v19 = vmul.f32 1.442695, %v7057_v54  ;;  %5770 = vrcp.f32 %v1728_v28  ;;  %v1900_v40 = vpop.f32.mrf.mxu0  ;;  %v1949_v3 = vpop.f32.mrf.mxu1 }
 0x46a   : > { %2209 = vst.msk [vmem:[%s7030_s15 + $0x8] sm:$0xf] %vm2206_vm0, %v2188_v2  ;;  %v2062_v35 = vmul.f32 1.442695, %v7061_v61  ;;  %v7071_v58 = vadd.f32 %v7003_v51, %v1999_v7  ;;  %5772 = vrcp.f32 %v1722_v36  ;;  %v5763_v1 = vpop.eup %5762  ;;  %v1950_v49 = vadd.f32 %v1949_v3, %v1900_v40 }
 0x46b   : > { %v7074_v22 = vsel %vm2030_vm5, %v2014_v9, %v5251_v27  ;;  %v2064_v62 = vmul.f32 1.442695, %v7064_v13  ;;  %5774 = vpow2.f32 %v2052_v19  ;;  %v5255_v0 = vadd.f32 -1.0, %v5763_v1 }
 0x46c   : > { %v5765_v63 = vpop.eup %5764  ;;  %v2130_v55 = vmul.f32 1.442695, %v7074_v22  ;;  %5776 = vpow2.f32 %v2062_v35  ;;  %v2060_v30 = vmul.f32 1.442695, %v7071_v58  ;;  %v1920_v9 = vpop.f32.mrf.mxu2  ;;  %vm2031_vm8 = vcmp.gt.f32.partialorder %v7057_v54, 0.0 }
 0x46d   : > { %v5767_v18 = vpop.eup %5766  ;;  %v5266_v60 = vadd.f32 -1.0, %v5765_v63  ;;  %5778 = vpow2.f32 %v2064_v62  ;;  %v7083_v37 = vsel %vm2034_vm6, %v7042_v20, %v5255_v0  ;;  %v1969_v26 = vpop.f32.mrf.mxu3  ;;  %vm2036_vm9 = vcmp.gt.f32.partialorder %v7061_v61, 0.0 }
 0x46e   : > { %v5769_v50 = vpop.eup %5768  ;;  %5780 = vpow2.f32 %v2130_v55  ;;  %v2003_v10 = vmul.f32 %v5767_v18, %v1967_v8  ;;  %v2138_v34 = vmul.f32 1.442695, %v7083_v37  ;;  %v1970_v43 = vadd.f32 %v1969_v26, %v1920_v9 }
 0x46f   : > { %v5771_v53 = vpop.eup %5770  ;;  %v2173_v17 = vsel %vm2109_vm7, %v7046_v4, %v5266_v60  ;;  %5782 = vpow2.f32 %v2060_v30  ;;  %v1996_v16 = vmul.f32 %v5769_v50, %v1950_v49  ;;  %vm2110_vm10 = vcmp.gt.f32.partialorder %v7074_v22, 0.0 }
 0x470   : > { %v5773_v44 = vpop.eup %5772  ;;  %v2189_v41 = vpack.c.bf16 %v2173_v17, %v2173_v17  ;;  %v7090_v38 = vadd.f32 %v7003_v51, %v2003_v10  ;;  %5784 = vpow2.f32 %v2138_v34  ;;  %vm2037_vm11 = vcmp.gt.f32.partialorder %v7064_v13, 0.0  ;;  %v1731_v48 = vpop.xlane.xlu1 %1730 }
 0x471   : > { %v5775_v20 = vpop.eup %5774  ;;  %v2002_v42 = vmul.f32 %v5773_v44, %v1965_v6  ;;  %5786 = vrcp.f32 %v7025_v31  ;;  %v7101_v12 = vadd.f32 %v7003_v51, %v1996_v16  ;;  %v2004_v15 = vmul.f32 %v5771_v53, %v1970_v43  ;;  %v1902_v2 = vpop.f32.mrf.mxu0 }
 0x472   : > { %v5777_v52 = vpop.eup %5776  ;;  %2210 = vst.msk [vmem:[%s7030_s15 + $0xc] sm:$0xf] %vm2206_vm0, %v2189_v41  ;;  %v5252_v14 = vadd.f32 -1.0, %v5775_v20  ;;  %v2068_v21 = vmul.f32 1.442695, %v7090_v38  ;;  %vm2035_vm12 = vcmp.gt.f32.partialorder %v7071_v58, 0.0 }
 0x473   : > { %v5779_v4 = vpop.eup %5778  ;;  %v5257_v47 = vadd.f32 -1.0, %v5777_v52  ;;  %v7107_v29 = vadd.f32 %v7003_v51, %v2002_v42  ;;  %vm2114_vm13 = vcmp.gt.f32.partialorder %v7083_v37, 0.0  ;;  %vm2039_vm14 = vcmp.gt.f32.partialorder %v7090_v38, 0.0 }
 0x474   : > { %v5781_v56 = vpop.eup %5780  ;;  %v5258_v23 = vadd.f32 -1.0, %v5779_v4  ;;  %v2095_v31 = vsel %vm2031_vm8, %v7057_v54, %v5252_v14  ;;  %5788 = vpow2.f32 %v2068_v21  ;;  %v1922_v27 = vpop.f32.mrf.mxu2  ;;  %vm2032_vm5 = vcmp.gt.f32.partialorder %v7101_v12, 0.0 }
 0x475   : > { %v5783_v46 = vpop.eup %5782  ;;  %v5267_v33 = vadd.f32 -1.0, %v5781_v56  ;;  %v2100_v11 = vsel %vm2036_vm9, %v7061_v61, %v5257_v47  ;;  %v2132_v59 = vmul.f32 1.442695, %v2095_v31  ;;  %5790 = vrcp.f32 %v1731_v48  ;;  %v1951_v61 = vpop.f32.mrf.mxu1 }
 0x476   : > { %v2101_v25 = vsel %vm2037_vm11, %v7064_v13, %v5258_v23  ;;  %v2142_v32 = vmul.f32 1.442695, %v2100_v11  ;;  %v5256_v24 = vadd.f32 -1.0, %v5783_v46  ;;  %v5785_v57 = vpop.eup %5784  ;;  %v1971_v13 = vpop.f32.mrf.mxu3  ;;  %v2066_v1 = vmul.f32 1.442695, %v7107_v29 }
 0x477   : > { %v2174_v54 = vsel %vm2110_vm10, %v7074_v22, %v5267_v33  ;;  %v2144_v39 = vmul.f32 1.442695, %v2101_v25  ;;  %5792 = vpow2.f32 %v2132_v59  ;;  %v5787_v45 = vpop.eup %5786  ;;  %v5271_v28 = vadd.f32 -1.0, %v5785_v57 }
 0x478   : > { %v2190_v36 = vpack.c.bf16 %v2174_v54, %v2174_v54  ;;  %5794 = vpow2.f32 %v2142_v32  ;;  %v2099_v5 = vsel %vm2035_vm12, %v7071_v58, %v5256_v24  ;;  %v2054_v22 = vmul.f32 1.442695, %v7101_v12 }
 0x479   : > { %5796 = vpow2.f32 %v2144_v39  ;;  %v2140_v7 = vmul.f32 1.442695, %v2099_v5  ;;  %v2178_v35 = vsel %vm2114_vm13, %v7083_v37, %v5271_v28  ;;  %v7125_v58 = vadd.f32 %v7003_v51, %v2004_v15 }
 0x47a   : > { %v5789_v19 = vpop.eup %5788  ;;  %2211 = vst.msk [vmem:[%s7030_s15 + $0x10] sm:$0xf] %vm2206_vm0, %v2190_v36  ;;  %v2194_v62 = vpack.c.bf16 %v2178_v35, %v2178_v35  ;;  %v1952_v3 = vadd.f32 %v1951_v61, %v1902_v2  ;;  %v1972_v55 = vadd.f32 %v1971_v13, %v1922_v27  ;;  %vm2111_vm15 = vcmp.gt.f32.partialorder %v2095_v31, 0.0 }
 0x47b   : > { %5798 = vpow2.f32 %v2140_v7  ;;  %v5260_v40 = vadd.f32 -1.0, %v5789_v19  ;;  %v5791_v63 = vpop.eup %5790  ;;  %v2070_v0 = vmul.f32 1.442695, %v7125_v58  ;;  %vm2116_vm1 = vcmp.gt.f32.partialorder %v2100_v11, 0.0 }
 0x47c   : > { %5800 = vpow2.f32 %v2066_v1  ;;  %2215 = vst.msk [vmem:[%s7030_s15 + $0x20] sm:$0xf] %vm2206_vm0, %v2194_v62  ;;  %v1997_v60 = vmul.f32 %v5787_v45, %v1952_v3  ;;  %v2005_v26 = vmul.f32 %v5791_v63, %v1972_v55  ;;  %vm2117_vm2 = vcmp.gt.f32.partialorder %v2101_v25, 0.0 }
 0x47d   : > { %v5793_v8 = vpop.eup %5792  ;;  %v2103_v18 = vsel %vm2039_vm14, %v7090_v38, %v5260_v40  ;;  %5802 = vpow2.f32 %v2054_v22  ;;  %vm2115_vm3 = vcmp.gt.f32.partialorder %v2099_v5, 0.0  ;;  %vm2038_vm4 = vcmp.gt.f32.partialorder %v7107_v29, 0.0 }
 0x47e   : > { %v5795_v30 = vpop.eup %5794  ;;  %v5268_v50 = vadd.f32 -1.0, %v5793_v8  ;;  %v2148_v37 = vmul.f32 1.442695, %v2103_v18  ;;  %5804 = vpow2.f32 %v2070_v0  ;;  %v2017_v9 = vadd.f32 %v7003_v51, %v1997_v60 }
 0x47f   : > { %v5797_v10 = vpop.eup %5796  ;;  %v5273_v49 = vadd.f32 -1.0, %v5795_v30  ;;  %v2025_v43 = vadd.f32 %v7003_v51, %v2005_v26  ;;  %vm2040_vm6 = vcmp.gt.f32.partialorder %v7125_v58, 0.0  ;;  %vm2119_vm7 = vcmp.gt.f32.partialorder %v2103_v18, 0.0 }
 0x480   : > { %v5274_v53 = vadd.f32 -1.0, %v5797_v10  ;;  %v2175_v17 = vsel %vm2111_vm15, %v2095_v31, %v5268_v50  ;;  %5806 = vpow2.f32 %v2148_v37  ;;  %v2056_v41 = vmul.f32 1.442695, %v2017_v9 }
 0x481   : > { %v5799_v34 = vpop.eup %5798  ;;  %v2180_v6 = vsel %vm2116_vm1, %v2100_v11, %v5273_v49  ;;  %v2191_v44 = vpack.c.bf16 %v2175_v17, %v2175_v17  ;;  %v2072_v56 = vmul.f32 1.442695, %v2025_v43  ;;  %vm2033_vm8 = vcmp.gt.f32.partialorder %v2017_v9, 0.0 }
 0x482   : > { %v5801_v38 = vpop.eup %5800  ;;  %v2181_v16 = vsel %vm2117_vm2, %v2101_v25, %v5274_v53  ;;  %v2196_v20 = vpack.c.bf16 %v2180_v6, %v2180_v6  ;;  %v5272_v42 = vadd.f32 -1.0, %v5799_v34  ;;  %5808 = vpow2.f32 %v2056_v41 }
 0x483   : > { %v5803_v52 = vpop.eup %5802  ;;  %v2197_v14 = vpack.c.bf16 %v2181_v16, %v2181_v16  ;;  %2212 = vst.msk [vmem:[%s7030_s15 + $0x14] sm:$0xf] %vm2206_vm0, %v2191_v44  ;;  %v5259_v21 = vadd.f32 -1.0, %v5801_v38  ;;  %5810 = vpow2.f32 %v2072_v56  ;;  %vm2041_vm9 = vcmp.gt.f32.partialorder %v2025_v43, 0.0 }
 0x484   : > { %v5805_v4 = vpop.eup %5804  ;;  %2217 = vst.msk [vmem:[%s7030_s15 + $0x28] sm:$0xf] %vm2206_vm0, %v2196_v20  ;;  %v2179_v47 = vsel %vm2115_vm3, %v2099_v5, %v5272_v42  ;;  %v5253_v48 = vadd.f32 -1.0, %v5803_v52 }
 0x485   : > { %2218 = vst.msk [vmem:[%s7030_s15 + $0x2c] sm:$0xf] %vm2206_vm0, %v2197_v14  ;;  %v2195_v23 = vpack.c.bf16 %v2179_v47, %v2179_v47  ;;  %v2102_v51 = vsel %vm2038_vm4, %v7107_v29, %v5259_v21  ;;  %v5261_v31 = vadd.f32 -1.0, %v5805_v4 }
 0x486   : > { %v5807_v46 = vpop.eup %5806  ;;  %v2146_v33 = vmul.f32 1.442695, %v2102_v51  ;;  %v2096_v11 = vsel %vm2032_vm5, %v7101_v12, %v5253_v48  ;;  %vm2118_vm10 = vcmp.gt.f32.partialorder %v2102_v51, 0.0 }
 0x487   : > { %2216 = vst.msk [vmem:[%s7030_s15 + $0x24] sm:$0xf] %vm2206_vm0, %v2195_v23  ;;  %v5276_v59 = vadd.f32 -1.0, %v5807_v46  ;;  %v2134_v15 = vmul.f32 1.442695, %v2096_v11  ;;  %v2104_v25 = vsel %vm2040_vm6, %v7125_v58, %v5261_v31  ;;  %vm2112_vm11 = vcmp.gt.f32.partialorder %v2096_v11, 0.0 }
 0x488   : > { %5812 = vpow2.f32 %v2146_v33  ;;  %v2150_v29 = vmul.f32 1.442695, %v2104_v25  ;;  %v5809_v32 = vpop.eup %5808  ;;  %vm2120_vm12 = vcmp.gt.f32.partialorder %v2104_v25, 0.0 }
 0x489   : > { %v2183_v24 = vsel %vm2119_vm7, %v2103_v18, %v5276_v59  ;;  %5814 = vpow2.f32 %v2134_v15  ;;  %v5254_v54 = vadd.f32 -1.0, %v5809_v32  ;;  %v5811_v12 = vpop.eup %5810 }
 0x48a   : > { %v2199_v57 = vpack.c.bf16 %v2183_v24, %v2183_v24  ;;  %5816 = vpow2.f32 %v2150_v29  ;;  %v5262_v28 = vadd.f32 -1.0, %v5811_v12 }
 0x48b   : > { %v2097_v39 = vsel %vm2033_vm8, %v2017_v9, %v5254_v54 }
 0x48c   : > { %2220 = vst.msk [vmem:[%s7030_s15 + $0x34] sm:$0xf] %vm2206_vm0, %v2199_v57  ;;  %v2136_v45 = vmul.f32 1.442695, %v2097_v39  ;;  %v2105_v61 = vsel %vm2041_vm9, %v2025_v43, %v5262_v28  ;;  %vm2113_vm13 = vcmp.gt.f32.partialorder %v2097_v39, 0.0 }
 0x48d   : > { %v2152_v13 = vmul.f32 1.442695, %v2105_v61  ;;  %vm2121_vm14 = vcmp.gt.f32.partialorder %v2105_v61, 0.0 }
 0x48e   : > { %v5813_v36 = vpop.eup %5812  ;;  %5818 = vpow2.f32 %v2136_v45 }
 0x48f   : > { %v5815_v5 = vpop.eup %5814  ;;  %v5275_v2 = vadd.f32 -1.0, %v5813_v36  ;;  %5820 = vpow2.f32 %v2152_v13 }
 0x490   : > { %v5817_v7 = vpop.eup %5816  ;;  %v5269_v27 = vadd.f32 -1.0, %v5815_v5 }
 0x491   : > { %v2182_v19 = vsel %vm2118_vm10, %v2102_v51, %v5275_v2  ;;  %v5277_v35 = vadd.f32 -1.0, %v5817_v7 }
 0x492   : > { %v2198_v1 = vpack.c.bf16 %v2182_v19, %v2182_v19  ;;  %v2176_v22 = vsel %vm2112_vm11, %v2096_v11, %v5269_v27 }
 0x493   : > { %v2192_v58 = vpack.c.bf16 %v2176_v22, %v2176_v22  ;;  %v2184_v62 = vsel %vm2120_vm12, %v2104_v25, %v5277_v35 }
 0x494   : > { %2219 = vst.msk [vmem:[%s7030_s15 + $0x30] sm:$0xf] %vm2206_vm0, %v2198_v1  ;;  %v2200_v40 = vpack.c.bf16 %v2184_v62, %v2184_v62  ;;  %v5819_v3 = vpop.eup %5818 }
 0x495   : > { %2213 = vst.msk [vmem:[%s7030_s15 + $0x18] sm:$0xf] %vm2206_vm0, %v2192_v58  ;;  %v5270_v63 = vadd.f32 -1.0, %v5819_v3  ;;  %v5821_v0 = vpop.eup %5820 }
 0x496   : > { %2221 = vst.msk [vmem:[%s7030_s15 + $0x38] sm:$0xf] %vm2206_vm0, %v2200_v40  ;;  %v5278_v18 = vadd.f32 -1.0, %v5821_v0 }
 0x497   : > { %v2177_v55 = vsel %vm2113_vm13, %v2097_v39, %v5270_v63 }
 0x498   : > { %v2193_v8 = vpack.c.bf16 %v2177_v55, %v2177_v55  ;;  %v2185_v60 = vsel %vm2121_vm14, %v2105_v61, %v5278_v18 }
 0x499   : > { %v2201_v30 = vpack.c.bf16 %v2185_v60, %v2185_v60 }
 0x49a   : > { %2214 = vst.msk [vmem:[%s7030_s15 + $0x1c] sm:$0xf] %vm2206_vm0, %v2193_v8 }
 0x49b   : > { %2222 = vst.msk [vmem:[%s7030_s15 + $0x3c] sm:$0xf] %vm2206_vm0, %v2201_v30 }
 0x49c PF: > { %p5280_p8 = scmp.ne.s32.totalorder %s6062_s18, 1 }
 0x49e   : > { %2226 = sbr.rel (%p5280_p8) target bundleno = 2934 (0xb76), region = 76 }
 0x4a3   : > { %p5281_p9 = scmp.ne.s32.totalorder %s6058_s17, 0 }
 0x4a4   : > { %s6078_s2 = smov (!%p5281_p9), 127  }
 0x4a5   : > { %2230 = sbr.rel (%p5281_p9) target bundleno = 1855 (0x73f), region = 80 }
 0x4aa   : > { %v2265_v50 = vld [vmem:[%s8557_s6 + $0x10] sm:$0xff]  ;;  %v2266_v37 = vld [vmem:[%s8557_s6 + $0x18] sm:$0xff]  ;;  %v2263_v10 = vld [vmem:[%s8557_s6] sm:$0xff]  ;;  %vm2349_vm0 = vcmask 261120   ;;  %vm2519_vm15 = vcmask 257024   ;;  %vm2968_vm1 = vcmask 7168  }
 0x4ab   : > { %v2268_v49 = vpack.c.bf16 %v2266_v37, %v2265_v50  ;;  %v2264_v9 = vld [vmem:[%s8557_s6 + $0x8] sm:$0xff]  ;;  %v5527_v53 = vld [vmem:[#allocation2] sm:$0xff]  ;;  %v5529_v44 = vld [vmem:[#allocation2 + $0x10] sm:$0xff]  ;;  %vm2832_vm2 = vcmask 1040384  }
 0x4ac   : > { %v2267_v26 = vpack.c.bf16 %v2264_v9, %v2263_v10  ;;  %v5535_v17 = vld [vmem:[#allocation2 + $0x40] sm:$0xff]  ;;  %v5528_v34 = vld [vmem:[#allocation2 + $0x8] sm:$0xff]  ;;  %v5537_v41 = vld [vmem:[#allocation2 + $0x50] sm:$0xff] }
 0x4ad   : > { %2404 = vmatpush.bf16.msra.mxu0 %v2268_v49  ;;  %5582 = vmatpush.bf16.msra.mxu2 %v2268_v49  ;;  %v5536_v6 = vld [vmem:[#allocation2 + $0x48] sm:$0xff]  ;;  %v2555_v38 = vld [vmem:[%s8558_s7 + $0x18] sm:$0xff]  ;;  %v2554_v16 = vld [vmem:[%s8558_s7 + $0x10] sm:$0xff] }
 0x4ae   : > { %2664 = vmatpush.msra.mxu1 %v2555_v38  ;;  %5584 = vmatpush.msra.mxu3 %v2555_v38  ;;  %v2553_v20 = vld [vmem:[%s8558_s7 + $0x8] sm:$0xff]  ;;  %v5530_v42 = vld [vmem:[#allocation2 + $0x18] sm:$0xff]  ;;  %v5531_v52 = vld [vmem:[#allocation2 + $0x20] sm:$0xff] }
 0x4af   : > { %v5538_v43 = vld [vmem:[#allocation2 + $0x58] sm:$0xff]  ;;  %v5539_v14 = vld [vmem:[#allocation2 + $0x60] sm:$0xff]  ;;  %v5540_v4 = vld [vmem:[#allocation2 + $0x68] sm:$0xff] }
 0x4b0   : > { %2665 = vmatpush.msra.mxu1 %v2554_v16  ;;  %5585 = vmatpush.msra.mxu3 %v2554_v16  ;;  %v2552_v21 = vld [vmem:[%s8558_s7] sm:$0xff]  ;;  %v5532_v47 = vld [vmem:[#allocation2 + $0x28] sm:$0xff]  ;;  %v5541_v48 = vld [vmem:[#allocation2 + $0x70] sm:$0xff] }
 0x4b1   : > { %2405 = vmatpush.bf16.msra.mxu0 %v2267_v26  ;;  %5583 = vmatpush.bf16.msra.mxu2 %v2267_v26  ;;  %v5533_v51 = vld [vmem:[#allocation2 + $0x30] sm:$0xff]  ;;  %v5542_v31 = vld [vmem:[#allocation2 + $0x78] sm:$0xff] }
 0x4b2   : > { %2666 = vmatpush.msra.mxu1 %v2553_v20  ;;  %5586 = vmatpush.msra.mxu3 %v2553_v20  ;;  %v5534_v24 = vld [vmem:[#allocation2 + $0x38] sm:$0xff] }
 0x4b4   : > { %5346 = vmatmul.msk.bf16.vlgmr.msra.gmra.mxu0 %vm2349_vm0, %v5527_v53  ;;  %5354 = vmatmul.msk.bf16.vlgmr.msra.gmra.mxu2 %vm2349_vm0, %v5535_v17 }
 0x4b5   : > { %2667 = vmatpush.msra.mxu1 %v2552_v21  ;;  %5587 = vmatpush.msra.mxu3 %v2552_v21 }
 0x4c4   : > { %5347 = vmatmul.msk.bf16.gmra.mxu0 %vm2349_vm0, %v5528_v34  ;;  %5355 = vmatmul.msk.bf16.gmra.mxu2 %vm2349_vm0, %v5536_v6 }
 0x4d4   : > { %5348 = vmatmul.msk.bf16.gmra.mxu0 %vm2349_vm0, %v5529_v44  ;;  %5356 = vmatmul.msk.bf16.gmra.mxu2 %vm2349_vm0, %v5537_v41 }
 0x4e4   : > { %5349 = vmatmul.msk.bf16.gmra.mxu0 %vm2349_vm0, %v5530_v42  ;;  %5357 = vmatmul.msk.bf16.gmra.mxu2 %vm2349_vm0, %v5538_v43 }
 0x4f4   : > { %5350 = vmatmul.msk.bf16.gmra.mxu0 %vm2349_vm0, %v5531_v52  ;;  %5358 = vmatmul.msk.bf16.gmra.mxu2 %vm2349_vm0, %v5539_v14 }
 0x504   : > { %5359 = vmatmul.msk.bf16.gmra.mxu2 %vm2349_vm0, %v5540_v4  ;;  %5351 = vmatmul.msk.bf16.gmra.mxu0 %vm2349_vm0, %v5532_v47 }
 0x514   : > { %5360 = vmatmul.msk.bf16.gmra.mxu2 %vm2349_vm0, %v5541_v48  ;;  %5352 = vmatmul.msk.bf16.gmra.mxu0 %vm2349_vm0, %v5533_v51 }
 0x524   : > { %5361 = vmatmul.msk.bf16.gmra.mxu2 %vm2349_vm0, %v5542_v31  ;;  %5353 = vmatmul.msk.bf16.gmra.mxu0 %vm2349_vm0, %v5534_v24 }
 0x531   : > { %v2407_v56 = vpop.f32.mrf.mxu0 }
 0x532   : > { %v2487_v23 = vpack.c.bf16 %v2407_v56, %v2407_v56  ;;  %5362 = vmatmul.msk.f32.vlgmr.msra.gmra.mxu1 %vm2349_vm0, %v2407_v56 }
 0x534   : > { %2520 = vst.msk [vmem:[#allocation4] sm:$0xf] %vm2519_vm15, %v2487_v23 }
 0x537   : > { %v2447_v46 = vpop.f32.mrf.mxu2 }
 0x538   : > { %v2503_v33 = vpack.c.bf16 %v2447_v46, %v2447_v46  ;;  %5378 = vmatmul.msk.f32.vlgmr.msra.gmra.mxu3 %vm2349_vm0, %v2447_v46 }
 0x539   : > { %v2409_v11 = vpop.f32.mrf.mxu0 }
 0x53a   : > { %2536 = vst.msk [vmem:[#allocation4 + $0x40] sm:$0xf] %vm2519_vm15, %v2503_v33  ;;  %v2488_v59 = vpack.c.bf16 %v2409_v11, %v2409_v11  ;;  %5363 = vmatmul.msk.f32.gmra.mxu1 %vm2349_vm0, %v2409_v11 }
 0x53c   : > { %2521 = vst.msk [vmem:[#allocation4 + $0x4] sm:$0xf] %vm2519_vm15, %v2488_v59 }
 0x53f   : > { %v2449_v15 = vpop.f32.mrf.mxu2 }
 0x540   : > { %v2504_v25 = vpack.c.bf16 %v2449_v15, %v2449_v15  ;;  %5379 = vmatmul.msk.f32.gmra.mxu3 %vm2349_vm0, %v2449_v15 }
 0x541   : > { %v2412_v29 = vpop.f32.mrf.mxu0 }
 0x542   : > { %2537 = vst.msk [vmem:[#allocation4 + $0x44] sm:$0xf] %vm2519_vm15, %v2504_v25  ;;  %v2489_v32 = vpack.c.bf16 %v2412_v29, %v2412_v29  ;;  %5364 = vmatmul.msk.f32.gmra.mxu1 %vm2349_vm0, %v2412_v29 }
 0x544   : > { %2522 = vst.msk [vmem:[#allocation4 + $0x8] sm:$0xf] %vm2519_vm15, %v2489_v32 }
 0x547   : > { %v2452_v57 = vpop.f32.mrf.mxu2 }
 0x548   : > { %v2505_v54 = vpack.c.bf16 %v2452_v57, %v2452_v57  ;;  %5380 = vmatmul.msk.f32.gmra.mxu3 %vm2349_vm0, %v2452_v57 }
 0x549   : > { %v2414_v12 = vpop.f32.mrf.mxu0 }
 0x54a   : > { %v2490_v39 = vpack.c.bf16 %v2414_v12, %v2414_v12  ;;  %5365 = vmatmul.msk.f32.gmra.mxu1 %vm2349_vm0, %v2414_v12  ;;  %2538 = vst.msk [vmem:[#allocation4 + $0x48] sm:$0xf] %vm2519_vm15, %v2505_v54 }
 0x54c   : > { %2523 = vst.msk [vmem:[#allocation4 + $0xc] sm:$0xf] %vm2519_vm15, %v2490_v39 }
 0x54f   : > { %v2454_v45 = vpop.f32.mrf.mxu2 }
 0x550   : > { %v2506_v28 = vpack.c.bf16 %v2454_v45, %v2454_v45  ;;  %5381 = vmatmul.msk.f32.gmra.mxu3 %vm2349_vm0, %v2454_v45 }
 0x551   : > { %v2417_v36 = vpop.f32.mrf.mxu0 }
 0x552   : > { %v2491_v5 = vpack.c.bf16 %v2417_v36, %v2417_v36  ;;  %5366 = vmatmul.msk.f32.gmra.mxu1 %vm2349_vm0, %v2417_v36  ;;  %2539 = vst.msk [vmem:[#allocation4 + $0x4c] sm:$0xf] %vm2519_vm15, %v2506_v28 }
 0x554   : > { %2524 = vst.msk [vmem:[#allocation4 + $0x10] sm:$0xf] %vm2519_vm15, %v2491_v5 }
 0x557   : > { %v2457_v2 = vpop.f32.mrf.mxu2 }
 0x558   : > { %v2507_v61 = vpack.c.bf16 %v2457_v2, %v2457_v2  ;;  %5382 = vmatmul.msk.f32.gmra.mxu3 %vm2349_vm0, %v2457_v2 }
 0x559   : > { %v2419_v7 = vpop.f32.mrf.mxu0 }
 0x55a   : > { %v2492_v27 = vpack.c.bf16 %v2419_v7, %v2419_v7  ;;  %5367 = vmatmul.msk.f32.gmra.mxu1 %vm2349_vm0, %v2419_v7  ;;  %2540 = vst.msk [vmem:[#allocation4 + $0x50] sm:$0xf] %vm2519_vm15, %v2507_v61 }
 0x55c   : > { %2525 = vst.msk [vmem:[#allocation4 + $0x14] sm:$0xf] %vm2519_vm15, %v2492_v27 }
 0x55f   : > { %v2459_v13 = vpop.f32.mrf.mxu2 }
 0x560   : > { %v2508_v19 = vpack.c.bf16 %v2459_v13, %v2459_v13  ;;  %5383 = vmatmul.msk.f32.gmra.mxu3 %vm2349_vm0, %v2459_v13 }
 0x561   : > { %v2422_v35 = vpop.f32.mrf.mxu0 }
 0x562   : > { %v2493_v1 = vpack.c.bf16 %v2422_v35, %v2422_v35  ;;  %5368 = vmatmul.msk.f32.gmra.mxu1 %vm2349_vm0, %v2422_v35  ;;  %2541 = vst.msk [vmem:[#allocation4 + $0x54] sm:$0xf] %vm2519_vm15, %v2508_v19 }
 0x564   : > { %2526 = vst.msk [vmem:[#allocation4 + $0x18] sm:$0xf] %vm2519_vm15, %v2493_v1 }
 0x567   : > { %v2462_v22 = vpop.f32.mrf.mxu2 }
 0x568   : > { %v2509_v58 = vpack.c.bf16 %v2462_v22, %v2462_v22  ;;  %5384 = vmatmul.msk.f32.gmra.mxu3 %vm2349_vm0, %v2462_v22 }
 0x569   : > { %v2424_v62 = vpop.f32.mrf.mxu0 }
 0x56a   : > { %v2494_v40 = vpack.c.bf16 %v2424_v62, %v2424_v62  ;;  %5369 = vmatmul.msk.f32.gmra.mxu1 %vm2349_vm0, %v2424_v62  ;;  %2542 = vst.msk [vmem:[#allocation4 + $0x58] sm:$0xf] %vm2519_vm15, %v2509_v58 }
 0x56c   : > { %2527 = vst.msk [vmem:[#allocation4 + $0x1c] sm:$0xf] %vm2519_vm15, %v2494_v40 }
 0x56f   : > { %v2464_v3 = vpop.f32.mrf.mxu2 }
 0x570   : > { %v2510_v63 = vpack.c.bf16 %v2464_v3, %v2464_v3  ;;  %5385 = vmatmul.msk.f32.gmra.mxu3 %vm2349_vm0, %v2464_v3 }
 0x571   : > { %v2427_v0 = vpop.f32.mrf.mxu0 }
 0x572   : > { %v2495_v55 = vpack.c.bf16 %v2427_v0, %v2427_v0  ;;  %5370 = vmatmul.msk.f32.gmra.mxu1 %vm2349_vm0, %v2427_v0  ;;  %2543 = vst.msk [vmem:[#allocation4 + $0x5c] sm:$0xf] %vm2519_vm15, %v2510_v63 }
 0x574   : > { %2528 = vst.msk [vmem:[#allocation4 + $0x20] sm:$0xf] %vm2519_vm15, %v2495_v55 }
 0x577   : > { %v2467_v8 = vpop.f32.mrf.mxu2 }
 0x578   : > { %v2511_v18 = vpack.c.bf16 %v2467_v8, %v2467_v8  ;;  %5386 = vmatmul.msk.f32.gmra.mxu3 %vm2349_vm0, %v2467_v8 }
 0x579   : > { %v2429_v60 = vpop.f32.mrf.mxu0 }
 0x57a   : > { %v2496_v30 = vpack.c.bf16 %v2429_v60, %v2429_v60  ;;  %5371 = vmatmul.msk.f32.gmra.mxu1 %vm2349_vm0, %v2429_v60  ;;  %2544 = vst.msk [vmem:[#allocation4 + $0x60] sm:$0xf] %vm2519_vm15, %v2511_v18 }
 0x57c   : > { %2529 = vst.msk [vmem:[#allocation4 + $0x24] sm:$0xf] %vm2519_vm15, %v2496_v30 }
 0x57f   : > { %v2469_v50 = vpop.f32.mrf.mxu2 }
 0x580   : > { %v2512_v37 = vpack.c.bf16 %v2469_v50, %v2469_v50  ;;  %5387 = vmatmul.msk.f32.gmra.mxu3 %vm2349_vm0, %v2469_v50 }
 0x581   : > { %v2432_v10 = vpop.f32.mrf.mxu0 }
 0x582   : > { %2545 = vst.msk [vmem:[#allocation4 + $0x64] sm:$0xf] %vm2519_vm15, %v2512_v37  ;;  %v2497_v49 = vpack.c.bf16 %v2432_v10, %v2432_v10  ;;  %5372 = vmatmul.msk.f32.gmra.mxu1 %vm2349_vm0, %v2432_v10 }
 0x584   : > { %2530 = vst.msk [vmem:[#allocation4 + $0x28] sm:$0xf] %vm2519_vm15, %v2497_v49 }
 0x587   : > { %v2472_v9 = vpop.f32.mrf.mxu2 }
 0x588   : > { %v2513_v26 = vpack.c.bf16 %v2472_v9, %v2472_v9  ;;  %5388 = vmatmul.msk.f32.gmra.mxu3 %vm2349_vm0, %v2472_v9 }
 0x589   : > { %v2434_v34 = vpop.f32.mrf.mxu0 }
 0x58a   : > { %2546 = vst.msk [vmem:[#allocation4 + $0x68] sm:$0xf] %vm2519_vm15, %v2513_v26  ;;  %v2498_v6 = vpack.c.bf16 %v2434_v34, %v2434_v34  ;;  %5373 = vmatmul.msk.f32.gmra.mxu1 %vm2349_vm0, %v2434_v34 }
 0x58c   : > { %2531 = vst.msk [vmem:[#allocation4 + $0x2c] sm:$0xf] %vm2519_vm15, %v2498_v6 }
 0x58f   : > { %v2474_v53 = vpop.f32.mrf.mxu2 }
 0x590   : > { %v2514_v17 = vpack.c.bf16 %v2474_v53, %v2474_v53  ;;  %5389 = vmatmul.msk.f32.gmra.mxu3 %vm2349_vm0, %v2474_v53 }
 0x591   : > { %v2437_v43 = vpop.f32.mrf.mxu0 }
 0x592   : > { %2547 = vst.msk [vmem:[#allocation4 + $0x6c] sm:$0xf] %vm2519_vm15, %v2514_v17  ;;  %v2499_v52 = vpack.c.bf16 %v2437_v43, %v2437_v43  ;;  %5374 = vmatmul.msk.f32.gmra.mxu1 %vm2349_vm0, %v2437_v43 }
 0x594   : > { %2532 = vst.msk [vmem:[#allocation4 + $0x30] sm:$0xf] %vm2519_vm15, %v2499_v52 }
 0x597   : > { %v2477_v44 = vpop.f32.mrf.mxu2 }
 0x598   : > { %v2515_v41 = vpack.c.bf16 %v2477_v44, %v2477_v44  ;;  %5390 = vmatmul.msk.f32.gmra.mxu3 %vm2349_vm0, %v2477_v44 }
 0x599   : > { %v2439_v31 = vpop.f32.mrf.mxu0 }
 0x59a   : > { %2548 = vst.msk [vmem:[#allocation4 + $0x70] sm:$0xf] %vm2519_vm15, %v2515_v41  ;;  %v2500_v46 = vpack.c.bf16 %v2439_v31, %v2439_v31  ;;  %5375 = vmatmul.msk.f32.gmra.mxu1 %vm2349_vm0, %v2439_v31 }
 0x59c   : > { %2533 = vst.msk [vmem:[#allocation4 + $0x34] sm:$0xf] %vm2519_vm15, %v2500_v46 }
 0x59f   : > { %v2479_v16 = vpop.f32.mrf.mxu2 }
 0x5a0   : > { %v2516_v20 = vpack.c.bf16 %v2479_v16, %v2479_v16  ;;  %5391 = vmatmul.msk.f32.gmra.mxu3 %vm2349_vm0, %v2479_v16 }
 0x5a1   : > { %v2442_v59 = vpop.f32.mrf.mxu0 }
 0x5a2   : > { %2549 = vst.msk [vmem:[#allocation4 + $0x74] sm:$0xf] %vm2519_vm15, %v2516_v20  ;;  %v2501_v15 = vpack.c.bf16 %v2442_v59, %v2442_v59  ;;  %5376 = vmatmul.msk.f32.gmra.mxu1 %vm2349_vm0, %v2442_v59 }
 0x5a4   : > { %2534 = vst.msk [vmem:[#allocation4 + $0x38] sm:$0xf] %vm2519_vm15, %v2501_v15 }
 0x5a7   : > { %v2482_v21 = vpop.f32.mrf.mxu2 }
 0x5a8   : > { %v2517_v4 = vpack.c.bf16 %v2482_v21, %v2482_v21  ;;  %5392 = vmatmul.msk.f32.gmra.mxu3 %vm2349_vm0, %v2482_v21 }
 0x5a9   : > { %v2444_v32 = vpop.f32.mrf.mxu0 }
 0x5aa   : > { %2550 = vst.msk [vmem:[#allocation4 + $0x78] sm:$0xf] %vm2519_vm15, %v2517_v4  ;;  %v2502_v24 = vpack.c.bf16 %v2444_v32, %v2444_v32  ;;  %5377 = vmatmul.msk.f32.gmra.mxu1 %vm2349_vm0, %v2444_v32 }
 0x5ac   : > { %2535 = vst.msk [vmem:[#allocation4 + $0x3c] sm:$0xf] %vm2519_vm15, %v2502_v24 }
 0x5af   : > { %v2669_v38 = vpop.f32.mrf.mxu1  ;;  %v2484_v56 = vpop.f32.mrf.mxu2 }
 0x5b0   : > { %2872 = vrot.lane.b32.xlu2 %v2669_v38, %s6078_s2  ;;  %v2518_v23 = vpack.c.bf16 %v2484_v56, %v2484_v56  ;;  %5393 = vmatmul.msk.f32.gmra.mxu3 %vm2349_vm0, %v2484_v56 }
 0x5b2   : > { %2551 = vst.msk [vmem:[#allocation4 + $0x7c] sm:$0xf] %vm2519_vm15, %v2518_v23 }
 0x5b7   : > { %v2672_v42 = vpop.f32.mrf.mxu1 }
 0x5b8   : > { %2874 = vrot.lane.b32.xlu2 %v2672_v42, %s6078_s2 }
 0x5bb   : > { %v2717_v14 = vpop.f32.mrf.mxu3 }
 0x5bc   : > { %2904 = vrot.lane.b32.xlu0 %v2717_v14, %s6078_s2 }
 0x5bf   : > { %v2675_v47 = vpop.f32.mrf.mxu1 }
 0x5c0   : > { %2876 = vrot.lane.b32.xlu2 %v2675_v47, %s6078_s2 }
 0x5c3   : > { %v2720_v48 = vpop.f32.mrf.mxu3 }
 0x5c4   : > { %2906 = vrot.lane.b32.xlu1 %v2720_v48, %s6078_s2 }
 0x5c7   : > { %v2678_v51 = vpop.f32.mrf.mxu1 }
 0x5c8   : > { %2878 = vrot.lane.b32.xlu2 %v2678_v51, %s6078_s2 }
 0x5cb   : > { %v2723_v33 = vpop.f32.mrf.mxu3 }
 0x5cf   : > { %v2681_v11 = vpop.f32.mrf.mxu1 }
 0x5d0   : > { %2908 = vrot.lane.b32.xlu2 %v2723_v33, %s6078_s2 }
 0x5d3   : > { %v2726_v25 = vpop.f32.mrf.mxu3 }
 0x5d7   : > { %v2684_v29 = vpop.f32.mrf.mxu1 }
 0x5d8   : > { %2880 = vrot.lane.b32.xlu2 %v2681_v11, %s6078_s2 }
 0x5db   : > { %v2729_v57 = vpop.f32.mrf.mxu3 }
 0x5de   : > { %2765 = vxpose.xlu0.b32.start [1/16] (narrow) %v2669_v38, 8 }
 0x5df   : > { %v2687_v54 = vpop.f32.mrf.mxu1 }
 0x5e0   : > { %2910 = vrot.lane.b32.xlu2 %v2726_v25, %s6078_s2 }
 0x5e3   : > { %v2732_v12 = vpop.f32.mrf.mxu3 }
 0x5e6   : > { %2766 = vxpose.xlu0.b32.cont [2/16] (narrow) %v2672_v42, 8 }
 0x5e7   : > { %v2690_v39 = vpop.f32.mrf.mxu1 }
 0x5e8   : > { %2882 = vrot.lane.b32.xlu2 %v2684_v29, %s6078_s2 }
 0x5eb   : > { %v2735_v28 = vpop.f32.mrf.mxu3 }
 0x5ee   : > { %2767 = vxpose.xlu0.b32.cont [3/16] (narrow) %v2675_v47, 8 }
 0x5ef   : > { %v2693_v5 = vpop.f32.mrf.mxu1 }
 0x5f0   : > { %2912 = vrot.lane.b32.xlu2 %v2729_v57, %s6078_s2 }
 0x5f3   : > { %v2738_v61 = vpop.f32.mrf.mxu3 }
 0x5f6   : > { %2768 = vxpose.xlu0.b32.cont [4/16] (narrow) %v2678_v51, 8 }
 0x5f7   : > { %v2696_v27 = vpop.f32.mrf.mxu1 }
 0x5f8   : > { %2884 = vrot.lane.b32.xlu2 %v2687_v54, %s6078_s2 }
 0x5f9   : > { %2797 = vxpose.xlu1.b32.start [1/16] (narrow) %v2717_v14, 8 }
 0x5fb   : > { %v2741_v19 = vpop.f32.mrf.mxu3 }
 0x5fe   : > { %2769 = vxpose.xlu0.b32.cont [5/16] (narrow) %v2681_v11, 8 }
 0x5ff   : > { %v2699_v35 = vpop.f32.mrf.mxu1 }
 0x600   : > { %2914 = vrot.lane.b32.xlu2 %v2732_v12, %s6078_s2 }
 0x601   : > { %2798 = vxpose.xlu1.b32.cont [2/16] (narrow) %v2720_v48, 8  ;;  %v2835_v48 = vlaneseq }
 0x603   : > { %v2744_v58 = vpop.f32.mrf.mxu3  ;;  %vm2837_vm3 = vcmp.lt.s32.totalorder %v2835_v48, 256 }
 0x606   : > { %2770 = vxpose.xlu0.b32.cont [6/16] (narrow) %v2684_v29, 8 }
 0x607   : > { %v2702_v62 = vpop.f32.mrf.mxu1 }
 0x608   : > { %2886 = vrot.lane.b32.xlu2 %v2690_v39, %s6078_s2 }
 0x609   : > { %2799 = vxpose.xlu1.b32.cont [3/16] (narrow) %v2723_v33, 8 }
 0x60a   : > { %v2873_v45 = vpop.permute.xlu2 %2872 }
 0x60b   : > { %2969 = vst.msk [vmem:[#allocation6] sm:$0xff] %vm2968_vm1, %v2873_v45  ;;  %v2747_v0 = vpop.f32.mrf.mxu3 }
 0x60e   : > { %2771 = vxpose.xlu0.b32.cont [7/16] (narrow) %v2687_v54, 8 }
 0x60f   : > { %v2705_v63 = vpop.f32.mrf.mxu1 }
 0x610   : > { %2916 = vrot.lane.b32.xlu2 %v2735_v28, %s6078_s2 }
 0x611   : > { %2800 = vxpose.xlu1.b32.cont [4/16] (narrow) %v2726_v25, 8 }
 0x612   : > { %v2875_v36 = vpop.permute.xlu2 %2874 }
 0x613   : > { %2970 = vst.msk [vmem:[#allocation6 + $0x8] sm:$0xff] %vm2968_vm1, %v2875_v36  ;;  %v2750_v18 = vpop.f32.mrf.mxu3 }
 0x616   : > { %2772 = vxpose.xlu0.b32.cont [8/16] (narrow) %v2690_v39, 8 }
 0x617   : > { %v2708_v8 = vpop.f32.mrf.mxu1 }
 0x618   : > { %2888 = vrot.lane.b32.xlu2 %v2693_v5, %s6078_s2 }
 0x619   : > { %2801 = vxpose.xlu1.b32.cont [5/16] (narrow) %v2729_v57, 8 }
 0x61a   : > { %v2877_v2 = vpop.permute.xlu2 %2876 }
 0x61b   : > { %2971 = vst.msk [vmem:[#allocation6 + $0x10] sm:$0xff] %vm2968_vm1, %v2877_v2  ;;  %v2753_v30 = vpop.f32.mrf.mxu3 }
 0x61e   : > { %2773 = vxpose.xlu0.b32.cont [9/16] (narrow) %v2693_v5, 8 }
 0x61f   : > { %v2711_v37 = vpop.f32.mrf.mxu1 }
 0x620   : > { %2918 = vrot.lane.b32.xlu2 %v2738_v61, %s6078_s2 }
 0x621   : > { %2802 = vxpose.xlu1.b32.cont [6/16] (narrow) %v2732_v12, 8 }
 0x622   : > { %v2879_v7 = vpop.permute.xlu2 %2878 }
 0x623   : > { %2972 = vst.msk [vmem:[#allocation6 + $0x18] sm:$0xff] %vm2968_vm1, %v2879_v7  ;;  %v2756_v49 = vpop.f32.mrf.mxu3 }
 0x626   : > { %2774 = vxpose.xlu0.b32.cont [10/16] (narrow) %v2696_v27, 8 }
 0x627   : > { %v2714_v53 = vpop.f32.mrf.mxu1 }
 0x628   : > { %2890 = vrot.lane.b32.xlu2 %v2696_v27, %s6078_s2 }
 0x629   : > { %2803 = vxpose.xlu1.b32.cont [7/16] (narrow) %v2735_v28, 8 }
 0x62a   : > { %v2909_v13 = vpop.permute.xlu2 %2908 }
 0x62b   : > { %2987 = vst.msk [vmem:[#allocation6 + $0x90] sm:$0xff] %vm2968_vm1, %v2909_v13  ;;  %v2759_v26 = vpop.f32.mrf.mxu3 }
 0x62e   : > { %v2905_v1 = vpop.permute.xlu0 %2904  ;;  %2775 = vxpose.xlu0.b32.cont [11/16] (narrow) %v2699_v35, 8 }
 0x62f   : > { %2985 = vst.msk [vmem:[#allocation6 + $0x80] sm:$0xff] %vm2968_vm1, %v2905_v1 }
 0x630   : > { %2920 = vrot.lane.b32.xlu2 %v2741_v19, %s6078_s2 }
 0x631   : > { %2804 = vxpose.xlu1.b32.cont [8/16] (narrow) %v2738_v61, 8 }
 0x632   : > { %v2881_v22 = vpop.permute.xlu2 %2880 }
 0x633   : > { %2973 = vst.msk [vmem:[#allocation6 + $0x20] sm:$0xff] %vm2968_vm1, %v2881_v22  ;;  %v2762_v34 = vpop.f32.mrf.mxu3 }
 0x636   : > { %v2907_v40 = vpop.permute.xlu1 %2906  ;;  %2776 = vxpose.xlu0.b32.cont [12/16] (narrow) %v2702_v62, 8 }
 0x637   : > { %2986 = vst.msk [vmem:[#allocation6 + $0x88] sm:$0xff] %vm2968_vm1, %v2907_v40 }
 0x638   : > { %2892 = vrot.lane.b32.xlu2 %v2699_v35, %s6078_s2 }
 0x639   : > { %2805 = vxpose.xlu1.b32.cont [9/16] (narrow) %v2741_v19, 8 }
 0x63a   : > { %v2911_v3 = vpop.permute.xlu2 %2910 }
 0x63b   : > { %2988 = vst.msk [vmem:[#allocation6 + $0x98] sm:$0xff] %vm2968_vm1, %v2911_v3 }
 0x63e   : > { %2777 = vxpose.xlu0.b32.cont [13/16] (narrow) %v2705_v63, 8 }
 0x640   : > { %2922 = vrot.lane.b32.xlu2 %v2744_v58, %s6078_s2 }
 0x641   : > { %2806 = vxpose.xlu1.b32.cont [10/16] (narrow) %v2744_v58, 8 }
 0x642   : > { %v2883_v55 = vpop.permute.xlu2 %2882 }
 0x643   : > { %2974 = vst.msk [vmem:[#allocation6 + $0x28] sm:$0xff] %vm2968_vm1, %v2883_v55 }
 0x646   : > { %2778 = vxpose.xlu0.b32.cont [14/16] (narrow) %v2708_v8, 8 }
 0x648   : > { %2894 = vrot.lane.b32.xlu2 %v2702_v62, %s6078_s2 }
 0x649   : > { %2807 = vxpose.xlu1.b32.cont [11/16] (narrow) %v2747_v0, 8 }
 0x64a   : > { %v2913_v60 = vpop.permute.xlu2 %2912 }
 0x64b   : > { %2989 = vst.msk [vmem:[#allocation6 + $0xa0] sm:$0xff] %vm2968_vm1, %v2913_v60 }
 0x64e   : > { %2779 = vxpose.xlu0.b32.cont [15/16] (narrow) %v2711_v37, 8 }
 0x650   : > { %2924 = vrot.lane.b32.xlu2 %v2747_v0, %s6078_s2 }
 0x651   : > { %2808 = vxpose.xlu1.b32.cont [12/16] (narrow) %v2750_v18, 8 }
 0x652   : > { %v2885_v50 = vpop.permute.xlu2 %2884 }
 0x653   : > { %2975 = vst.msk [vmem:[#allocation6 + $0x30] sm:$0xff] %vm2968_vm1, %v2885_v50 }
 0x656   : > { %2780 = vxpose.xlu0.b32.end [16/16] (narrow) %v2714_v53, 8 }
 0x658   : > { %2896 = vrot.lane.b32.xlu2 %v2705_v63, %s6078_s2 }
 0x659   : > { %2809 = vxpose.xlu1.b32.cont [13/16] (narrow) %v2753_v30, 8 }
 0x65a   : > { %v2915_v10 = vpop.permute.xlu2 %2914 }
 0x65b   : > { %2990 = vst.msk [vmem:[#allocation6 + $0xa8] sm:$0xff] %vm2968_vm1, %v2915_v10 }
 0x660   : > { %2926 = vrot.lane.b32.xlu2 %v2750_v18, %s6078_s2 }
 0x661   : > { %2810 = vxpose.xlu1.b32.cont [14/16] (narrow) %v2756_v49, 8 }
 0x662   : > { %v2887_v9 = vpop.permute.xlu2 %2886 }
 0x663   : > { %2976 = vst.msk [vmem:[#allocation6 + $0x38] sm:$0xff] %vm2968_vm1, %v2887_v9 }
 0x668   : > { %2898 = vrot.lane.b32.xlu2 %v2708_v8, %s6078_s2 }
 0x669   : > { %2811 = vxpose.xlu1.b32.cont [15/16] (narrow) %v2759_v26, 8 }
 0x66a   : > { %v2917_v17 = vpop.permute.xlu2 %2916 }
 0x66b   : > { %2991 = vst.msk [vmem:[#allocation6 + $0xb0] sm:$0xff] %vm2968_vm1, %v2917_v17 }
 0x670   : > { %2928 = vrot.lane.b32.xlu2 %v2753_v30, %s6078_s2 }
 0x671   : > { %2812 = vxpose.xlu1.b32.end [16/16] (narrow) %v2762_v34, 8 }
 0x672   : > { %v2889_v6 = vpop.permute.xlu2 %2888 }
 0x673   : > { %2977 = vst.msk [vmem:[#allocation6 + $0x40] sm:$0xff] %vm2968_vm1, %v2889_v6 }
 0x678   : > { %2900 = vrot.lane.b32.xlu2 %v2711_v37, %s6078_s2 }
 0x67a   : > { %v2919_v44 = vpop.permute.xlu2 %2918 }
 0x67b   : > { %2992 = vst.msk [vmem:[#allocation6 + $0xb8] sm:$0xff] %vm2968_vm1, %v2919_v44 }
 0x680   : > { %2930 = vrot.lane.b32.xlu2 %v2756_v49, %s6078_s2 }
 0x682   : > { %v2891_v41 = vpop.permute.xlu2 %2890  ;;  %v2781_v56 = vpop.trf.xlu0 }
 0x683   : > { %2978 = vst.msk [vmem:[#allocation6 + $0x48] sm:$0xff] %vm2968_vm1, %v2891_v41 }
 0x688   : > { %2902 = vrot.lane.b32.xlu2 %v2714_v53, %s6078_s2 }
 0x68a   : > { %v2921_v38 = vpop.permute.xlu2 %2920 }
 0x68b   : > { %2993 = vst.msk [vmem:[#allocation6 + $0xc0] sm:$0xff] %vm2968_vm1, %v2921_v38 }
 0x690   : > { %2934 = vrot.lane.b32.xlu2 %v2762_v34, %s6078_s2 }
 0x692   : > { %v2893_v16 = vpop.permute.xlu2 %2892 }
 0x693   : > { %2979 = vst.msk [vmem:[#allocation6 + $0x50] sm:$0xff] %vm2968_vm1, %v2893_v16 }
 0x69a   : > { %v2923_v20 = vpop.permute.xlu2 %2922 }
 0x69b   : > { %2994 = vst.msk [vmem:[#allocation6 + $0xc8] sm:$0xff] %vm2968_vm1, %v2923_v20 }
 0x69d   : > { %v2813_v47 = vpop.trf.xlu1 }
 0x69e   : > { %v2831_v23 = vrot.slane %v2813_v47, 7 }
 0x6a0   : > { %v2833_v51 = vsel %vm2832_vm2, %v2781_v56, %v2831_v23 }
 0x6a1   : > { %2839 = vst.msk [vmem:[#allocation5] sm:$0x3] %vm2837_vm3, %v2833_v51 }
 0x6a2   : > { %v2895_v42 = vpop.permute.xlu2 %2894 }
 0x6a3   : > { %2980 = vst.msk [vmem:[#allocation6 + $0x58] sm:$0xff] %vm2968_vm1, %v2895_v42 }
 0x6aa   : > { %v2925_v43 = vpop.permute.xlu2 %2924 }
 0x6ab   : > { %2995 = vst.msk [vmem:[#allocation6 + $0xd0] sm:$0xff] %vm2968_vm1, %v2925_v43 }
 0x6b2   : > { %v2897_v52 = vpop.permute.xlu2 %2896 }
 0x6b3   : > { %2981 = vst.msk [vmem:[#allocation6 + $0x60] sm:$0xff] %vm2968_vm1, %v2897_v52 }
 0x6ba   : > { %v2927_v14 = vpop.permute.xlu2 %2926 }
 0x6bb   : > { %2996 = vst.msk [vmem:[#allocation6 + $0xd8] sm:$0xff] %vm2968_vm1, %v2927_v14 }
 0x6c2   : > { %v2899_v21 = vpop.permute.xlu2 %2898 }
 0x6c3   : > { %2982 = vst.msk [vmem:[#allocation6 + $0x68] sm:$0xff] %vm2968_vm1, %v2899_v21 }
 0x6ca   : > { %v2929_v4 = vpop.permute.xlu2 %2928 }
 0x6cb   : > { %2997 = vst.msk [vmem:[#allocation6 + $0xe0] sm:$0xff] %vm2968_vm1, %v2929_v4  ;;  %2932 = vrot.lane.b32.xlu1 %v2759_v26, %s6078_s2 }
 0x6d2   : > { %v2901_v31 = vpop.permute.xlu2 %2900 }
 0x6d3   : > { %2983 = vst.msk [vmem:[#allocation6 + $0x70] sm:$0xff] %vm2968_vm1, %v2901_v31 }
 0x6da   : > { %v2931_v46 = vpop.permute.xlu2 %2930 }
 0x6db   : > { %2998 = vst.msk [vmem:[#allocation6 + $0xe8] sm:$0xff] %vm2968_vm1, %v2931_v46 }
 0x6e2   : > { %v2903_v33 = vpop.permute.xlu2 %2902 }
 0x6e3   : > { %2984 = vst.msk [vmem:[#allocation6 + $0x78] sm:$0xff] %vm2968_vm1, %v2903_v33 }
 0x6ea   : > { %v2935_v11 = vpop.permute.xlu2 %2934 }
 0x6eb   : > { %3000 = vst.msk [vmem:[#allocation6 + $0xf8] sm:$0xff] %vm2968_vm1, %v2935_v11 }
 0x73d   : > { %v2933_v59 = vpop.permute.xlu1 %2932 }
 0x73e   : > { %2999 = vst.msk [vmem:[#allocation6 + $0xf0] sm:$0xff] %vm2968_vm1, %v2933_v59 }
 0x73f PF: > { %v6079_v15 = vmov 0   ;;  %s7333_s26 = scalar_lea.vmem [#allocation6], %s6182_s25  ;;  %s3001_s30 = sshra.s32 %s6182_s25, 5  ;;  %v3039_v50 = vld [vmem:[#allocation5] sm:$0x3] }
 0x740   : > { %5823 = vset.pattern.permute.xlu1 %v6079_v15  ;;  %5822 = vset.pattern.permute.xlu0 %v6079_v15  ;;  %s5543_s12 = sshll.u32 %s3001_s30, 4  ;;  %v7382_v34 = vperm.slane %v3039_v50, 0  ;;  %v7384_v6 = vperm.slane %v3039_v50, 1  ;;  %s6080_s25 = smov 125  }
 0x741   : > { %5824 = vset.pattern.permute.xlu2 %v6079_v15  ;;  %s7352_s14 = scalar_lea.vmem %s8552_s1, %s5543_s12  ;;  %s6082_s15 = smov 127  }
 0x742   : > { %v3006_v2 = vld [vmem:[%s7352_s14] sm:$0xff]  ;;  %v3007_v61 = vld [vmem:[%s7352_s14 + $0x8] sm:$0xff]  ;;  %v3008_v40 = vld [vmem:[%s7352_s14 + $0x10] sm:$0xff]  ;;  %s6083_s16 = smov 2   ;;  %s6084_s28 = smov 1  }
 0x743   : > { %vm3014_vm4 = vnez %v3006_v2  ;;  %vm3015_vm5 = vnez %v3007_v61  ;;  %v3009_v3 = vld [vmem:[%s7352_s14 + $0x18] sm:$0xff]  ;;  %vm3016_vm6 = vnez %v3008_v40  ;;  %v3012_v44 = vld [vmem:[%s7352_s14 + $0x30] sm:$0xff]  ;;  %s6085_s2 = smov 126  }
 0x744   : > { %v7357_v7 = vsel %vm3014_vm4, 16843009, %v6079_v15  ;;  %v7360_v27 = vsel %vm3015_vm5, 16843009, %v6079_v15  ;;  %vm3017_vm7 = vnez %v3009_v3  ;;  %v7371_v18 = vsel %vm3016_vm6, 16843009, %v6079_v15 }
 0x745   : > { %v3025_v25 = vld [vmem:[%s7333_s26 + $0x10] sm:$0xff]  ;;  %v3023_v29 = vld [vmem:[%s7333_s26] sm:$0xff]  ;;  %v3024_v32 = vld [vmem:[%s7333_s26 + $0x8] sm:$0xff]  ;;  %v3233_v13 = vunpack.c.2.s8 %v7357_v7  ;;  %v3234_v19 = vunpack.c.2.s8 %v7360_v27  ;;  %v3229_v35 = vunpack.c.0.s8 %v7357_v7  ;;  %v3230_v1 = vunpack.c.0.s8 %v7360_v27 }
 0x746   : > { %3052 = vperm.xlu1 %5823, %v3025_v25   ;;  %3042 = vperm.xlu0 %5822, %v3023_v29   ;;  %v3026_v24 = vld [vmem:[%s7333_s26 + $0x18] sm:$0xff]  ;;  %v3029_v57 = vld [vmem:[%s7333_s26 + $0x30] sm:$0xff]  ;;  %v3027_v12 = vld [vmem:[%s7333_s26 + $0x20] sm:$0xff]  ;;  %v3231_v63 = vunpack.c.1.s8 %v7357_v7  ;;  %v3232_v0 = vunpack.c.1.s8 %v7360_v27  ;;  %v7374_v60 = vsel %vm3017_vm7, 16843009, %v6079_v15  ;;  %v3241_v49 = vunpack.c.2.s8 %v7371_v18 }
 0x747   : > { %v3030_v54 = vld [vmem:[%s7333_s26 + $0x38] sm:$0xff]  ;;  %3062 = vperm.xlu2 %5824, %v3027_v12   ;;  %v3035_v39 = vld [vmem:[%s7333_s26 + $0x60] sm:$0xff]  ;;  %v3028_v45 = vld [vmem:[%s7333_s26 + $0x28] sm:$0xff]  ;;  %v3265_v22 = vpack.c.b16 %v3234_v19, %v3233_v13  ;;  %v3261_v58 = vpack.c.b16 %v3230_v1, %v3229_v35  ;;  %v3242_v9 = vunpack.c.2.s8 %v7374_v60  ;;  %v3243_v53 = vunpack.c.3.s8 %v7371_v18 }
 0x748   : > { %v3036_v28 = vld [vmem:[%s7333_s26 + $0x68] sm:$0xff]  ;;  %v3031_v36 = vld [vmem:[%s7333_s26 + $0x40] sm:$0xff]  ;;  %v3263_v8 = vpack.c.b16 %v3232_v0, %v3231_v63  ;;  %v3244_v17 = vunpack.c.3.s8 %v7374_v60  ;;  %v3013_v20 = vld [vmem:[%s7352_s14 + $0x38] sm:$0xff]  ;;  %vm3020_vm12 = vnez %v3012_v44 }
 0x749   : > { %v3032_v5 = vld [vmem:[%s7333_s26 + $0x48] sm:$0xff]  ;;  %v3266_v62 = vpack.c.b8 %v3265_v22, %v3265_v22  ;;  %v3262_v55 = vpack.c.b8 %v3261_v58, %v3261_v58  ;;  %v3273_v16 = vpack.c.b16 %v3242_v9, %v3241_v49  ;;  %vm3021_vm0 = vnez %v3013_v20 }
 0x74a   : > { %v3264_v10 = vpack.c.b8 %v3263_v8, %v3263_v8  ;;  %v3275_v21 = vpack.c.b16 %v3244_v17, %v3243_v53  ;;  %v3010_v17 = vld [vmem:[%s7352_s14 + $0x20] sm:$0xff] }
 0x74b   : > { %vm3295_vm8 = vnez %v3266_v62  ;;  %vm3293_vm9 = vnez %v3262_v55  ;;  %v3274_v59 = vpack.c.b8 %v3273_v16, %v3273_v16  ;;  %vm3018_vm6 = vnez %v3010_v17 }
 0x74c   : > { %v3311_v30 = vsel %vm3295_vm8, 16843009, %v6079_v15  ;;  %v3309_v37 = vsel %vm3293_vm9, 16843009, %v6079_v15  ;;  %vm3294_vm10 = vnez %v3264_v10  ;;  %v7467_v29 = vsel %vm3018_vm6, 16843009, %v6079_v15 }
 0x74d   : > { %v3329_v26 = vunpack.c.0.s8 %v3311_v30  ;;  %v3330_v41 = vunpack.c.1.s8 %v3311_v30  ;;  %v3325_v38 = vunpack.c.0.s8 %v3309_v37  ;;  %v3326_v14 = vunpack.c.1.s8 %v3309_v37 }
 0x74e   : > { %3047 = vperm.xlu0 %5822, %v3024_v32   ;;  %3057 = vperm.xlu1 %5823, %v3026_v24   ;;  %v3310_v31 = vsel %vm3294_vm10, 16843009, %v6079_v15  ;;  %v3276_v32 = vpack.c.b8 %v3275_v21, %v3275_v21  ;;  %v7411_v24 = vsel %vm3020_vm12, 16843009, %v6079_v15  ;;  %vm3299_vm1 = vnez %v3274_v59 }
 0x74f   : > { %3067 = vperm.xlu2 %5824, %v3028_v45   ;;  %vm7388_vm11 = vcmp.ne.s32.totalorder %v3329_v26, 0  ;;  %vm7396_vm13 = vcmp.ne.s32.totalorder %v3330_v41, 0  ;;  %vm7400_vm14 = vcmp.ne.s32.totalorder %v3325_v38, 0  ;;  %vm7405_vm15 = vcmp.ne.s32.totalorder %v3326_v14, 0 }
 0x750   : > { %v3253_v22 = vunpack.c.0.s8 %v7411_v24  ;;  %vm3300_vm2 = vnez %v3276_v32  ;;  %v3315_v55 = vsel %vm3299_vm1, 16843009, %v6079_v15  ;;  %v3255_v20 = vunpack.c.1.s8 %v7411_v24 }
 0x751   : > { %v3316_v8 = vsel %vm3300_vm2, 16843009, %v6079_v15  ;;  %v3337_v10 = vunpack.c.0.s8 %v3315_v55  ;;  %v3338_v26 = vunpack.c.1.s8 %v3315_v55 }
 0x752   : > { %v3339_v53 = vunpack.c.0.s8 %v3316_v8 }
 0x753   : > { %vm7458_vm5 = vcmp.ne.s32.totalorder %v3337_v10, 0  ;;  %vm3370_vm8 = vcmp.ne.s32.totalorder %v3338_v26, 0 }
 0x754   : > { %vm7462_vm9 = vcmp.ne.s32.totalorder %v3339_v53, 0  ;;  %v3037_v53 = vld [vmem:[%s7333_s26 + $0x70] sm:$0xff] }
 0x756   : > { %3072 = vperm.xlu0 %5822, %v3029_v57   ;;  %3077 = vperm.xlu1 %5823, %v3030_v54  }
 0x75e   : > { %3102 = vperm.xlu1 %5823, %v3035_v39   ;;  %v7414_v39 = vsel %vm3021_vm0, 16843009, %v6079_v15 }
 0x75f   : > { %v3254_v58 = vunpack.c.0.s8 %v7414_v39 }
 0x761   : > { %v3285_v30 = vpack.c.b16 %v3254_v58, %v3253_v22 }
 0x763   : > { %v3286_v16 = vpack.c.b8 %v3285_v30, %v3285_v30 }
 0x765   : > { %vm3305_vm10 = vnez %v3286_v16  ;;  %v3038_v16 = vld [vmem:[%s7333_s26 + $0x78] sm:$0xff] }
 0x766   : > { %3107 = vperm.xlu1 %5823, %v3036_v28   ;;  %v3327_v28 = vunpack.c.0.s8 %v3310_v31 }
 0x768   : > { %vm3359_vm3 = vcmp.ne.s32.totalorder %v3327_v28, 0  ;;  %v3236_v28 = vunpack.c.3.s8 %v7360_v27  ;;  %v3245_v27 = vunpack.c.0.s8 %v7467_v29 }
 0x76e   : > { %3082 = vperm.xlu1 %5823, %v3031_v36   ;;  %v3328_v36 = vunpack.c.1.s8 %v3310_v31  ;;  %v3340_v31 = vunpack.c.1.s8 %v3316_v8 }
 0x770   : > { %vm3360_vm4 = vcmp.ne.s32.totalorder %v3328_v36, 0 }
 0x776   : > { %3087 = vperm.xlu1 %5823, %v3032_v5  }
 0x7b8   : > { %v3053_v42 = vpop.permute.xlu1 %3052  ;;  %v3043_v43 = vpop.permute.xlu0 %3042 }
 0x7b9   : > { %v3129_v4 = vadd.f32 %v7382_v34, %v3053_v42  ;;  %v3130_v47 = vadd.f32 %v7384_v6, %v3053_v42  ;;  %v3125_v48 = vadd.f32 %v7382_v34, %v3043_v43  ;;  %v3126_v56 = vadd.f32 %v7384_v6, %v3043_v43  ;;  %v3011_v43 = vld [vmem:[%s7352_s14 + $0x28] sm:$0xff] }
 0x7ba   : > { %v3256_v42 = vunpack.c.1.s8 %v7414_v39  ;;  %vm3019_vm7 = vnez %v3011_v43  ;;  %v3239_v43 = vunpack.c.1.s8 %v7371_v18 }
 0x7bb   : > { %v3161_v46 = vmul.f32 0.2, %v3129_v4  ;;  %v3162_v33 = vmul.f32 0.2, %v3130_v47  ;;  %v3157_v11 = vmul.f32 0.2, %v3125_v48 }
 0x7bc   : > { %v3158_v25 = vmul.f32 0.2, %v3126_v56  ;;  %v3287_v59 = vpack.c.b16 %v3256_v42, %v3255_v20  ;;  %v7470_v32 = vsel %vm3019_vm7, 16843009, %v6079_v15 }
 0x7bd   : > { %v3189_v57 = vmax.f32 %v3125_v48, %v3157_v11  ;;  %v3193_v54 = vmax.f32 %v3129_v4, %v3161_v46  ;;  %v3194_v12 = vmax.f32 %v3130_v47, %v3162_v33 }
 0x7be   : > { %v3190_v45 = vmax.f32 %v3126_v56, %v3158_v25  ;;  %v3288_v58 = vpack.c.b8 %v3287_v59, %v3287_v59 }
 0x7bf   : > { %v7418_v5 = vsel %vm7388_vm11, %v3193_v54, -1e+30  ;;  %v7422_v2 = vsel %vm7396_vm13, %v3194_v12, -1e+30  ;;  %v7426_v61 = vsel %vm7400_vm14, %v3189_v57, -1e+30  ;;  %v3235_v57 = vunpack.c.3.s8 %v7357_v7 }
 0x7c0   : > { %v3048_v13 = vpop.permute.xlu0 %3047  ;;  %v3427_v19 = vmax.f32 %v7418_v5, %v7422_v2  ;;  %v7432_v35 = vsel %vm7405_vm15, %v3190_v45, -1e+30  ;;  %v7434_v1 = vpop.permute.xlu1 %3057  ;;  %vm3372_vm11 = vcmp.ne.s32.totalorder %v3340_v31, 0  ;;  %vm3306_vm12 = vnez %v3288_v58 }
 0x7c1   : > { %v3127_v62 = vadd.f32 %v7382_v34, %v3048_v13  ;;  %v3128_v40 = vadd.f32 %v7384_v6, %v3048_v13  ;;  %v3421_v3 = vmax.f32 %v7426_v61, %v7432_v35 }
 0x7c2   : > { %3428 = vmax.xlane.f32.xlu1 %v3427_v19  ;;  %v3321_v19 = vsel %vm3305_vm10, 16843009, %v6079_v15 }
 0x7c3   : > { %v3159_v63 = vmul.f32 0.2, %v3127_v62  ;;  %v3160_v0 = vmul.f32 0.2, %v3128_v40  ;;  %3422 = vmax.xlane.f32.xlu2 %v3421_v3  ;;  %v7491_v3 = vpack.c.b16 %v3236_v28, %v3235_v57  ;;  %v3349_v8 = vunpack.c.0.s8 %v3321_v19 }
 0x7c4   : > { %v3350_v30 = vunpack.c.1.s8 %v3321_v19 }
 0x7c5   : > { %v3191_v50 = vmax.f32 %v3127_v62, %v3159_v63  ;;  %v3192_v37 = vmax.f32 %v3128_v40, %v3160_v0  ;;  %v3246_v40 = vunpack.c.0.s8 %v7470_v32  ;;  %vm3381_vm13 = vcmp.ne.s32.totalorder %v3349_v8, 0 }
 0x7c6   : > { %vm3382_vm14 = vcmp.ne.s32.totalorder %v3350_v30, 0  ;;  %v3237_v8 = vunpack.c.0.s8 %v7371_v18  ;;  %v3238_v30 = vunpack.c.0.s8 %v7374_v60  ;;  %v3247_v18 = vunpack.c.1.s8 %v7467_v29 }
 0x7c7   : > { %v7444_v49 = vsel %vm3359_vm3, %v3191_v50, -1e+30  ;;  %v7446_v9 = vsel %vm3360_vm4, %v3192_v37, -1e+30  ;;  %v3277_v10 = vpack.c.b16 %v3246_v40, %v3245_v27 }
 0x7c8   : > { %v3073_v44 = vpop.permute.xlu0 %3072  ;;  %v3424_v41 = vmax.f32 %v7444_v49, %v7446_v9  ;;  %v3078_v38 = vpop.permute.xlu1 %3077 }
 0x7c9   : > { %v3137_v52 = vadd.f32 %v7382_v34, %v3073_v44  ;;  %v3138_v14 = vadd.f32 %v7384_v6, %v3073_v44  ;;  %v3139_v21 = vadd.f32 %v7382_v34, %v3078_v38  ;;  %v3140_v4 = vadd.f32 %v7384_v6, %v3078_v38 }
 0x7ca   : > { %3425 = vmax.xlane.f32.xlu0 %v3424_v41  ;;  %v3322_v44 = vsel %vm3306_vm12, 16843009, %v6079_v15  ;;  %v3278_v42 = vpack.c.b8 %v3277_v10, %v3277_v10 }
 0x7cb   : > { %v3169_v48 = vmul.f32 0.2, %v3137_v52  ;;  %v3170_v56 = vmul.f32 0.2, %v3138_v14  ;;  %v3171_v23 = vmul.f32 0.2, %v3139_v21  ;;  %v3351_v47 = vunpack.c.0.s8 %v3322_v44 }
 0x7cc   : > { %v3172_v51 = vmul.f32 0.2, %v3140_v4  ;;  %vm3301_vm0 = vnez %v3278_v42  ;;  %v5551_v42 = vld [vmem:[#allocation4 + $0x38] sm:$0xff] }
 0x7cd   : > { %v3201_v33 = vmax.f32 %v3137_v52, %v3169_v48  ;;  %v3202_v11 = vmax.f32 %v3138_v14, %v3170_v56  ;;  %v3203_v25 = vmax.f32 %v3139_v21, %v3171_v23  ;;  %v3240_v52 = vunpack.c.1.s8 %v7374_v60  ;;  %3757 = vmatpush.bf16.msra.mxu0 %v5551_v42  ;;  %5588 = vmatpush.bf16.msra.mxu3 %v5551_v42  ;;  %v5547_v42 = vld [vmem:[#allocation4 + $0x18] sm:$0xff] }
 0x7ce   : > { %v3204_v45 = vmax.f32 %v3140_v4, %v3172_v51  ;;  %v3352_v48 = vunpack.c.1.s8 %v3322_v44  ;;  %vm3383_vm15 = vcmp.ne.s32.totalorder %v3351_v47, 0  ;;  %v3317_v59 = vsel %vm3301_vm0, 16843009, %v6079_v15  ;;  %v7543_v47 = vld [vmem:[#allocation4 + $0x70] sm:$0xff] }
 0x7cf   : > { %v7475_v54 = vsel %vm7458_vm5, %v3201_v33, -1e+30  ;;  %v7477_v12 = vsel %vm3370_vm8, %v3202_v11, -1e+30  ;;  %v7487_v62 = vsel %vm7462_vm9, %v3203_v25, -1e+30  ;;  %v7510_v51 = vpack.c.b16 %v3240_v52, %v3239_v43 }
 0x7d0   : > { %v3439_v36 = vmax.f32 %v7475_v54, %v7477_v12  ;;  %v3103_v13 = vpop.permute.xlu1 %3102  ;;  %v7493_v55 = vsel %vm3372_vm11, %v3204_v45, -1e+30  ;;  %vm3384_vm1 = vcmp.ne.s32.totalorder %v3352_v48, 0  ;;  %v3033_v25 = vld [vmem:[%s7333_s26 + $0x50] sm:$0xff]  ;;  %v3342_v19 = vunpack.c.1.s8 %v3317_v59  ;;  %v7539_v43 = vld [vmem:[#allocation4 + $0x78] sm:$0xff] }
 0x7d1   : > { %v3149_v22 = vadd.f32 %v7382_v34, %v3103_v13  ;;  %v3150_v7 = vadd.f32 %v7384_v6, %v3103_v13  ;;  %v3442_v37 = vmax.f32 %v7487_v62, %v7493_v55  ;;  %v3341_v13 = vunpack.c.0.s8 %v3317_v59  ;;  %3806 = vmatpush.bf16.msra.mxu1 %v7539_v43  ;;  %v5549_v59 = vld [vmem:[#allocation4 + $0x28] sm:$0xff] }
 0x7d2   : > { %3440 = vmax.xlane.f32.xlu1 %v3439_v36  ;;  %vm3374_vm3 = vcmp.ne.s32.totalorder %v3342_v19, 0  ;;  %v3248_v60 = vunpack.c.1.s8 %v7470_v32 }
 0x7d3   : > { %v3181_v63 = vmul.f32 0.2, %v3149_v22  ;;  %v3182_v0 = vmul.f32 0.2, %v3150_v7  ;;  %vm3373_vm2 = vcmp.ne.s32.totalorder %v3341_v13, 0 }
 0x7d5   : > { %v3213_v50 = vmax.f32 %v3149_v22, %v3181_v63  ;;  %v3214_v26 = vmax.f32 %v3150_v7, %v3182_v0  ;;  %v3268_v0 = vpack.c.b8 %v7491_v3, %v7491_v3  ;;  %3807 = vmatpush.bf16.msra.mxu1 %v7543_v47 }
 0x7d7   : > { %v7502_v20 = vsel %vm3381_vm13, %v3213_v50, -1e+30  ;;  %v7506_v4 = vsel %vm3382_vm14, %v3214_v26, -1e+30  ;;  %vm3296_vm4 = vnez %v3268_v0  ;;  %v3131_v50 = vadd.f32 %v7382_v34, %v7434_v1 }
 0x7d8   : > { %v3108_v17 = vpop.permute.xlu1 %3107  ;;  %v3457_v23 = vmax.f32 %v7502_v20, %v7506_v4  ;;  %v3312_v10 = vsel %vm3296_vm4, 16843009, %v6079_v15  ;;  %v3269_v26 = vpack.c.b16 %v3238_v30, %v3237_v8 }
 0x7d9   : > { %v3151_v41 = vadd.f32 %v7382_v34, %v3108_v17  ;;  %v3152_v38 = vadd.f32 %v7384_v6, %v3108_v17  ;;  %v3331_v44 = vunpack.c.0.s8 %v3312_v10 }
 0x7da   : > { %3443 = vmax.xlane.f32.xlu1 %v3442_v37  ;;  %v3132_v37 = vadd.f32 %v7384_v6, %v7434_v1  ;;  %v3270_v3 = vpack.c.b8 %v3269_v26, %v3269_v26  ;;  %v3063_v1 = vpop.permute.xlu2 %3062 }
 0x7db   : > { %3112 = vperm.xlu2 %5824, %v3037_v53   ;;  %v3183_v14 = vmul.f32 0.2, %v3151_v41  ;;  %v3184_v21 = vmul.f32 0.2, %v3152_v38  ;;  %v3163_v53 = vmul.f32 0.2, %v3131_v50  ;;  %v3133_v52 = vadd.f32 %v7382_v34, %v3063_v1 }
 0x7dc   : > { %v3164_v17 = vmul.f32 0.2, %v3132_v37  ;;  %vm3363_vm5 = vcmp.ne.s32.totalorder %v3331_v44, 0  ;;  %vm3297_vm7 = vnez %v3270_v3  ;;  %v3134_v48 = vadd.f32 %v7384_v6, %v3063_v1  ;;  %v5555_v1 = vld [vmem:[#allocation4 + $0x58] sm:$0xff] }
 0x7dd   : > { %v3215_v56 = vmax.f32 %v3151_v41, %v3183_v14  ;;  %v3216_v31 = vmax.f32 %v3152_v38, %v3184_v21  ;;  %v3332_v41 = vunpack.c.1.s8 %v3312_v10  ;;  %v3195_v38 = vmax.f32 %v3131_v50, %v3163_v53  ;;  %v5550_v21 = vld [vmem:[#allocation4 + $0x30] sm:$0xff] }
 0x7de   : > { %3117 = vperm.xlu0 %5822, %v3038_v16   ;;  %v3196_v16 = vmax.f32 %v3132_v37, %v3164_v17  ;;  %v3279_v14 = vpack.c.b16 %v3248_v60, %v3247_v18  ;;  %3758 = vmatpush.bf16.msra.mxu0 %v5550_v21  ;;  %v3034_v60 = vld [vmem:[%s7333_s26 + $0x58] sm:$0xff] }
 0x7df   : > { %v7516_v57 = vsel %vm3383_vm15, %v3215_v56, -1e+30  ;;  %v7518_v36 = vsel %vm3384_vm1, %v3216_v31, -1e+30  ;;  %vm3364_vm6 = vcmp.ne.s32.totalorder %v3332_v41, 0  ;;  %5589 = vmatpush.bf16.msra.mxu3 %v5550_v21  ;;  %v5545_v21 = vld [vmem:[#allocation4 + $0x8] sm:$0xff] }
 0x7e0   : > { %v3083_v46 = vpop.permute.xlu1 %3082  ;;  %v3460_v22 = vmax.f32 %v7516_v57, %v7518_v36  ;;  %v7546_v56 = vsel %vm3363_vm5, %v3195_v38, -1e+30  ;;  %v3313_v31 = vsel %vm3297_vm7, 16843009, %v6079_v15  ;;  %v5548_v38 = vld [vmem:[#allocation4 + $0x20] sm:$0xff] }
 0x7e1   : > { %v3141_v33 = vadd.f32 %v7382_v34, %v3083_v46  ;;  %v3142_v11 = vadd.f32 %v7384_v6, %v3083_v46  ;;  %v3165_v46 = vmul.f32 0.2, %v3133_v52  ;;  %v3334_v19 = vunpack.c.1.s8 %v3313_v31 }
 0x7e2   : > { %3458 = vmax.xlane.f32.xlu1 %v3457_v23  ;;  %v7548_v23 = vsel %vm3364_vm6, %v3196_v16, -1e+30  ;;  %3759 = vmatpush.bf16.msra.mxu0 %v5549_v59  ;;  %v5556_v16 = vld [vmem:[#allocation4 + $0x60] sm:$0xff] }
 0x7e3   : > { %v3173_v45 = vmul.f32 0.2, %v3141_v33  ;;  %v3174_v28 = vmul.f32 0.2, %v3142_v11  ;;  %5590 = vmatpush.bf16.msra.mxu3 %v5549_v59  ;;  %vm3366_vm10 = vcmp.ne.s32.totalorder %v3334_v19, 0  ;;  %v3068_v59 = vpop.permute.xlu2 %3067 }
 0x7e4   : > { %v3136_v19 = vadd.f32 %v7384_v6, %v3068_v59 }
 0x7e5   : > { %v3205_v7 = vmax.f32 %v3141_v33, %v3173_v45  ;;  %v3206_v58 = vmax.f32 %v3142_v11, %v3174_v28  ;;  %v3430_v33 = vmax.f32 %v7546_v56, %v7548_v23  ;;  %v3280_v11 = vpack.c.b8 %v3279_v14, %v3279_v14  ;;  %v7573_v14 = vld [vmem:[#allocation4 + $0x50] sm:$0xff] }
 0x7e6   : > { %3092 = vperm.xlu0 %5822, %v3033_v25   ;;  %v7554_v25 = vld [vmem:[#allocation4 + $0x68] sm:$0xff]  ;;  %v3166_v45 = vmul.f32 0.2, %v3134_v48  ;;  %v3333_v28 = vunpack.c.0.s8 %v3313_v31  ;;  %3760 = vmatpush.bf16.msra.mxu0 %v5548_v38  ;;  %v5544_v31 = vld [vmem:[#allocation4] sm:$0xff] }
 0x7e7   : > { %v7522_v27 = vsel %vm3373_vm2, %v3205_v7, -1e+30  ;;  %v7524_v40 = vsel %vm3374_vm3, %v3206_v58, -1e+30  ;;  %vm3302_vm8 = vnez %v3280_v11  ;;  %3808 = vmatpush.bf16.msra.mxu1 %v7554_v25  ;;  %5591 = vmatpush.bf16.msra.mxu3 %v5548_v38  ;;  %v3258_v11 = vunpack.c.2.s8 %v7414_v39 }
 0x7e8   : > { %v3445_v63 = vmax.f32 %v7522_v27, %v7524_v40  ;;  %v3088_v13 = vpop.permute.xlu1 %3087  ;;  %v3198_v7 = vmax.f32 %v3134_v48, %v3166_v45  ;;  %vm3365_vm9 = vcmp.ne.s32.totalorder %v3333_v28, 0  ;;  %v3318_v0 = vsel %vm3302_vm8, 16843009, %v6079_v15  ;;  %v7576_v48 = vld [vmem:[#allocation4 + $0x48] sm:$0xff] }
 0x7e9   : > { %v3143_v58 = vadd.f32 %v7382_v34, %v3088_v13  ;;  %v3343_v10 = vunpack.c.0.s8 %v3318_v0  ;;  %v3344_v26 = vunpack.c.1.s8 %v3318_v0  ;;  %v3272_v45 = vpack.c.b8 %v7510_v51, %v7510_v51 }
 0x7ea   : > { %3461 = vmax.xlane.f32.xlu1 %v3460_v22  ;;  %v3197_v22 = vmax.f32 %v3133_v52, %v3165_v46  ;;  %v7562_v37 = vsel %vm3366_vm10, %v3198_v7, -1e+30  ;;  %3761 = vmatpush.bf16.msra.mxu0 %v5547_v42  ;;  %v5546_v52 = vld [vmem:[#allocation4 + $0x10] sm:$0xff]  ;;  %v7579_v46 = vld [vmem:[#allocation4 + $0x40] sm:$0xff] }
 0x7eb   : > { %v3175_v30 = vmul.f32 0.2, %v3143_v58  ;;  %vm3375_vm11 = vcmp.ne.s32.totalorder %v3343_v10, 0  ;;  %vm3376_vm12 = vcmp.ne.s32.totalorder %v3344_v26, 0  ;;  %3809 = vmatpush.bf16.msra.mxu1 %v5556_v16  ;;  %5592 = vmatpush.bf16.msra.mxu3 %v5547_v42  ;;  %vm3298_vm13 = vnez %v3272_v45 }
 0x7ec   : > { %v7560_v8 = vsel %vm3365_vm9, %v3197_v22, -1e+30  ;;  %v3314_v7 = vsel %vm3298_vm13, 16843009, %v6079_v15 }
 0x7ed   : > { %v3433_v53 = vmax.f32 %v7560_v8, %v7562_v37  ;;  %v3207_v17 = vmax.f32 %v3143_v58, %v3175_v30  ;;  %v3335_v30 = vunpack.c.0.s8 %v3314_v7 }
 0x7ee   : > { %3762 = vmatpush.bf16.msra.mxu0 %v5546_v52 }
 0x7ef   : > { %v7566_v41 = vsel %vm3375_vm11, %v3207_v17, -1e+30  ;;  %3810 = vmatpush.bf16.msra.mxu1 %v5555_v1  ;;  %5593 = vmatpush.bf16.msra.mxu3 %v5546_v52  ;;  %vm3367_vm0 = vcmp.ne.s32.totalorder %v3335_v30, 0 }
 0x7f2   : > { %3446 = vmax.xlane.f32.xlu1 %v3445_v63  ;;  %v3144_v63 = vadd.f32 %v7384_v6, %v3088_v13  ;;  %3763 = vmatpush.bf16.msra.mxu0 %v5545_v21  ;;  %v3135_v13 = vadd.f32 %v7382_v34, %v3068_v59 }
 0x7f3   : > { %3811 = vmatpush.bf16.msra.mxu1 %v7573_v14  ;;  %5594 = vmatpush.bf16.msra.mxu3 %v5545_v21 }
 0x7f4   : > { %v3176_v50 = vmul.f32 0.2, %v3144_v63 }
 0x7f6   : > { %v3208_v44 = vmax.f32 %v3144_v63, %v3176_v50  ;;  %3764 = vmatpush.bf16.msra.mxu0 %v5544_v31  ;;  %v3167_v63 = vmul.f32 0.2, %v3135_v13 }
 0x7f7   : > { %3812 = vmatpush.bf16.msra.mxu1 %v7576_v48  ;;  %5595 = vmatpush.bf16.msra.mxu3 %v5544_v31 }
 0x7f8   : > { %v7568_v3 = vsel %vm3376_vm12, %v3208_v44, -1e+30  ;;  %v3199_v50 = vmax.f32 %v3135_v13, %v3167_v63  ;;  %v3250_v63 = vunpack.c.2.s8 %v7470_v32  ;;  %vm3995_vm12 = vcmask 261120  }
 0x7f9   : > { %v3448_v18 = vmax.f32 %v7566_v41, %v7568_v3 }
 0x7fa   : > { %v7603_v31 = vsel %vm3367_vm0, %v3199_v50, -1e+30 }
 0x7fb   : > { %3813 = vmatpush.bf16.msra.mxu1 %v7579_v46  ;;  %5596 = vmatpush.bf16.msrb.mxu3 %v7539_v43  ;;  %v3168_v43 = vmul.f32 0.2, %v3136_v19 }
 0x7fd   : > { %v3200_v26 = vmax.f32 %v3136_v19, %v3168_v43 }
 0x7ff   : > { %5597 = vmatpush.bf16.msrb.mxu3 %v7543_v47  ;;  %v3336_v47 = vunpack.c.1.s8 %v3314_v7 }
 0x801   : > { %vm3368_vm15 = vcmp.ne.s32.totalorder %v3336_v47, 0 }
 0x803   : > { %5598 = vmatpush.bf16.msrb.mxu3 %v7554_v25 }
 0x804   : > { %3431 = vmax.xlane.f32.xlu2 %v3430_v33  ;;  %v3257_v33 = vunpack.c.2.s8 %v7411_v24 }
 0x806   : > { %v3289_v28 = vpack.c.b16 %v3258_v11, %v3257_v33 }
 0x807   : > { %5599 = vmatpush.bf16.msrb.mxu3 %v5556_v16 }
 0x808   : > { %v3290_v22 = vpack.c.b8 %v3289_v28, %v3289_v28 }
 0x80a   : > { %vm3307_vm14 = vnez %v3290_v22 }
 0x80b   : > { %v3323_v10 = vsel %vm3307_vm14, 16843009, %v6079_v15  ;;  %5600 = vmatpush.bf16.msrb.mxu3 %v5555_v1 }
 0x80c   : > { %v3353_v16 = vunpack.c.0.s8 %v3323_v10  ;;  %v3354_v42 = vunpack.c.1.s8 %v3323_v10 }
 0x80e   : > { %vm3385_vm1 = vcmp.ne.s32.totalorder %v3353_v16, 0  ;;  %vm3386_vm2 = vcmp.ne.s32.totalorder %v3354_v42, 0 }
 0x80f   : > { %5601 = vmatpush.bf16.msrb.mxu3 %v7573_v14 }
 0x810   : > { %3434 = vmax.xlane.f32.xlu0 %v3433_v53 }
 0x813   : > { %5602 = vmatpush.bf16.msrb.mxu3 %v7576_v48 }
 0x817   : > { %5603 = vmatpush.bf16.msrb.mxu3 %v7579_v46 }
 0x818   : > { %3449 = vmax.xlane.f32.xlu0 %v3448_v18  ;;  %v3259_v18 = vunpack.c.3.s8 %v7411_v24  ;;  %v7605_v24 = vsel %vm3368_vm15, %v3200_v26, -1e+30 }
 0x819   : > { %v3436_v45 = vmax.f32 %v7603_v31, %v7605_v24 }
 0x81c   : > { %3097 = vperm.xlu2 %5824, %v3034_v60  }
 0x835   : > { %v7595_v17 = vpop.xlane.xlu1 %3428 }
 0x836   : > { %v3423_v58 = vpop.xlane.xlu2 %3422 }
 0x837   : > { %v3469_v0 = vsub.f32 %v7426_v61, %v3423_v58  ;;  %v3470_v51 = vsub.f32 %v7432_v35, %v3423_v58  ;;  %v3260_v61 = vunpack.c.3.s8 %v7414_v39  ;;  %v3249_v58 = vunpack.c.2.s8 %v7467_v29 }
 0x839   : > { %v3501_v53 = vmul.f32 1.442695, %v3469_v0  ;;  %v3503_v25 = vmul.f32 1.442695, %v3470_v51  ;;  %v3281_v10 = vpack.c.b16 %v3250_v63, %v3249_v58 }
 0x83b   : > { %5827 = vpow2.f32 %v3501_v53 }
 0x83c   : > { %5829 = vpow2.f32 %v3503_v25 }
 0x83d   : > { %v3426_v44 = vpop.xlane.xlu0 %3425 }
 0x83e   : > { %v3471_v35 = vsub.f32 %v7444_v49, %v3426_v44  ;;  %v3472_v60 = vsub.f32 %v7446_v9, %v3426_v44  ;;  %v3113_v38 = vpop.permute.xlu2 %3112  ;;  %v3291_v49 = vpack.c.b16 %v3260_v61, %v3259_v18  ;;  %v3282_v18 = vpack.c.b8 %v3281_v10, %v3281_v10 }
 0x83f   : > { %v3153_v52 = vadd.f32 %v7382_v34, %v3113_v38  ;;  %v3154_v21 = vadd.f32 %v7384_v6, %v3113_v38 }
 0x840   : > { %v3505_v33 = vmul.f32 1.442695, %v3471_v35  ;;  %v3507_v11 = vmul.f32 1.442695, %v3472_v60  ;;  %v3292_v22 = vpack.c.b8 %v3291_v49, %v3291_v49  ;;  %vm3303_vm4 = vnez %v3282_v18 }
 0x841   : > { %v3185_v39 = vmul.f32 0.2, %v3153_v52  ;;  %v3186_v1 = vmul.f32 0.2, %v3154_v21  ;;  %v7615_v7 = vpop.eup %5827 }
 0x842   : > { %5831 = vpow2.f32 %v3505_v33  ;;  %v7621_v43 = vpop.eup %5829  ;;  %vm3308_vm3 = vnez %v3292_v22 }
 0x843   : > { %5833 = vpow2.f32 %v3507_v11  ;;  %v3217_v9 = vmax.f32 %v3153_v52, %v3185_v39  ;;  %v3218_v59 = vmax.f32 %v3154_v21, %v3186_v1  ;;  %v3319_v11 = vsel %vm3303_vm4, 16843009, %v6079_v15 }
 0x844   : > { %v3346_v58 = vunpack.c.1.s8 %v3319_v11 }
 0x845   : > { %3437 = vmax.xlane.f32.xlu2 %v3436_v45  ;;  %v3441_v28 = vpop.xlane.xlu1 %3440  ;;  %v7610_v13 = vsel %vm3385_vm1, %v3217_v9, -1e+30  ;;  %v7612_v19 = vsel %vm3386_vm2, %v3218_v59, -1e+30 }
 0x846   : > { %v3463_v14 = vmax.f32 %v7610_v13, %v7612_v19  ;;  %v3481_v30 = vsub.f32 %v7475_v54, %v3441_v28  ;;  %v3482_v48 = vsub.f32 %v7477_v12, %v3441_v28  ;;  %v3324_v54 = vsel %vm3308_vm3, 16843009, %v6079_v15 }
 0x847   : > { %v3355_v61 = vunpack.c.0.s8 %v3324_v54  ;;  %v3356_v38 = vunpack.c.1.s8 %v3324_v54  ;;  %vm3378_vm8 = vcmp.ne.s32.totalorder %v3346_v58, 0 }
 0x848   : > { %v7623_v0 = vpop.eup %5831  ;;  %3464 = vmax.xlane.f32.xlu1 %v3463_v14  ;;  %v3525_v26 = vmul.f32 1.442695, %v3481_v30  ;;  %v3527_v53 = vmul.f32 1.442695, %v3482_v48  ;;  %v3345_v14 = vunpack.c.0.s8 %v3319_v11 }
 0x849   : > { %v7626_v51 = vpop.eup %5833  ;;  %v3613_v47 = vpack.c.bf16 %v7623_v0, %v7615_v7  ;;  %vm3387_vm5 = vcmp.ne.s32.totalorder %v3355_v61, 0  ;;  %vm3388_vm6 = vcmp.ne.s32.totalorder %v3356_v38, 0 }
 0x84a   : > { %v3614_v50 = vpack.c.bf16 %v7626_v51, %v7621_v43  ;;  %5835 = vpow2.f32 %v3525_v26  ;;  %vm3377_vm7 = vcmp.ne.s32.totalorder %v3345_v14, 0 }
 0x84b   : > { %3765 = vmatmul.bf16.vlgmr.msra.gmra.mxu0 %v3613_v47  ;;  %5837 = vpow2.f32 %v3527_v53 }
 0x84c   : > { %3814 = vmatmul.bf16.vlgmr.msra.gmra.mxu1 %v3614_v50 }
 0x84d   : > { %v3444_v25 = vpop.xlane.xlu1 %3443 }
 0x84e   : > { %v3483_v44 = vsub.f32 %v7487_v62, %v3444_v25  ;;  %v3484_v12 = vsub.f32 %v7493_v55, %v3444_v25 }
 0x850   : > { %v3529_v35 = vmul.f32 1.442695, %v3483_v44  ;;  %v3531_v46 = vmul.f32 1.442695, %v3484_v12  ;;  %v3118_v60 = vpop.permute.xlu0 %3117  ;;  %v7640_v39 = vpop.eup %5835 }
 0x851   : > { %v3155_v16 = vadd.f32 %v7382_v34, %v3118_v60  ;;  %v3156_v42 = vadd.f32 %v7384_v6, %v3118_v60  ;;  %v7642_v1 = vpop.eup %5837 }
 0x852   : > { %5839 = vpow2.f32 %v3529_v35 }
 0x853   : > { %5841 = vpow2.f32 %v3531_v46  ;;  %v3187_v52 = vmul.f32 0.2, %v3155_v16  ;;  %v3188_v21 = vmul.f32 0.2, %v3156_v42  ;;  %v3565_v46 = vadd.f32 %v7621_v43, %v7615_v7 }
 0x855   : > { %v3219_v62 = vmax.f32 %v3155_v16, %v3187_v52  ;;  %v3220_v55 = vmax.f32 %v3156_v42, %v3188_v21  ;;  %v3459_v33 = vpop.xlane.xlu1 %3458  ;;  %v3568_v52 = vadd.f32 %v7626_v51, %v7623_v0  ;;  %v3473_v0 = vsub.f32 %v7418_v5, %v7595_v17 }
 0x856   : > { %v3493_v45 = vsub.f32 %v7502_v20, %v3459_v33  ;;  %v3494_v30 = vsub.f32 %v7506_v4, %v3459_v33  ;;  %v3252_v33 = vunpack.c.3.s8 %v7470_v32 }
 0x857   : > { %v7644_v49 = vsel %vm3387_vm5, %v3219_v62, -1e+30  ;;  %v7646_v9 = vsel %vm3388_vm6, %v3220_v55, -1e+30  ;;  %v3251_v55 = vunpack.c.3.s8 %v7467_v29 }
 0x858   : > { %v7648_v59 = vpop.eup %5839  ;;  %v3093_v28 = vpop.permute.xlu0 %3092  ;;  %v3466_v22 = vmax.f32 %v7644_v49, %v7646_v9  ;;  %v3549_v54 = vmul.f32 1.442695, %v3493_v45  ;;  %v3551_v53 = vmul.f32 1.442695, %v3494_v30  ;;  %v3474_v45 = vsub.f32 %v7422_v2, %v7595_v17 }
 0x859   : > { %v7653_v63 = vpop.eup %5841  ;;  %v3145_v48 = vadd.f32 %v7382_v34, %v3093_v28  ;;  %v3146_v47 = vadd.f32 %v7384_v6, %v3093_v28  ;;  %v3619_v50 = vpack.c.bf16 %v7648_v59, %v7640_v39  ;;  %v3283_v11 = vpack.c.b16 %v3252_v33, %v3251_v55 }
 0x85a   : > { %3467 = vmax.xlane.f32.xlu2 %v3466_v22  ;;  %v3620_v20 = vpack.c.bf16 %v7653_v63, %v7642_v1  ;;  %5843 = vpow2.f32 %v3549_v54  ;;  %v3509_v28 = vmul.f32 1.442695, %v3473_v0  ;;  %v3511_v30 = vmul.f32 1.442695, %v3474_v45 }
 0x85b   : > { %v3177_v10 = vmul.f32 0.2, %v3145_v48  ;;  %v3178_v26 = vmul.f32 0.2, %v3146_v47  ;;  %5845 = vpow2.f32 %v3551_v53  ;;  %v3284_v51 = vpack.c.b8 %v3283_v11, %v3283_v11 }
 0x85c   : > { %v3583_v55 = vadd.f32 %v7642_v1, %v7640_v39 }
 0x85d   : > { %v3209_v25 = vmax.f32 %v3145_v48, %v3177_v10  ;;  %v3210_v44 = vmax.f32 %v3146_v47, %v3178_v26  ;;  %v3462_v4 = vpop.xlane.xlu1 %3461  ;;  %vm3304_vm9 = vnez %v3284_v51 }
 0x85e   : > { %v3495_v12 = vsub.f32 %v7516_v57, %v3462_v4  ;;  %v3496_v18 = vsub.f32 %v7518_v36, %v3462_v4  ;;  %v3320_v32 = vsel %vm3304_vm9, 16843009, %v6079_v15 }
 0x85f   : > { %v7664_v61 = vsel %vm3377_vm7, %v3209_v25, -1e+30  ;;  %v7666_v35 = vsel %vm3378_vm8, %v3210_v44, -1e+30  ;;  %v3347_v47 = vunpack.c.0.s8 %v3320_v32  ;;  %v3348_v10 = vunpack.c.1.s8 %v3320_v32 }
 0x860   : > { %v3553_v60 = vmul.f32 1.442695, %v3495_v12  ;;  %v3555_v38 = vmul.f32 1.442695, %v3496_v18  ;;  %v3451_v16 = vmax.f32 %v7664_v61, %v7666_v35  ;;  %v7672_v57 = vpop.eup %5843 }
 0x861   : > { %v7674_v36 = vpop.eup %5845  ;;  %vm3379_vm10 = vcmp.ne.s32.totalorder %v3347_v47, 0  ;;  %vm3380_vm11 = vcmp.ne.s32.totalorder %v3348_v10, 0 }
 0x862   : > { %5847 = vpow2.f32 %v3553_v60  ;;  %3452 = vmax.xlane.f32.xlu0 %v3451_v16  ;;  %3566 = vadd.xlane.f32.xlu2 %v3565_v46 }
 0x863   : > { %5849 = vpow2.f32 %v3555_v38 }
 0x864   : > { %5851 = vpow2.f32 %v3509_v28 }
 0x868   : > { %v5848_v42 = vpop.eup %5847 }
 0x869   : > { %v7678_v7 = vpop.eup %5849  ;;  %v3625_v43 = vpack.c.bf16 %v5848_v42, %v7672_v57 }
 0x86a   : > { %3569 = vadd.xlane.f32.xlu0 %v3568_v52  ;;  %v7682_v21 = vadd.f32 %v7678_v7, %v5848_v42  ;;  %v3626_v62 = vpack.c.bf16 %v7678_v7, %v7674_v36 }
 0x86b   : > { %3795 = vmatmul.bf16.vlgmr.msra.gmra.mxu3 %v3625_v43 }
 0x877   : > { %v3432_v22 = vpop.xlane.xlu2 %3431 }
 0x878   : > { %v3475_v14 = vsub.f32 %v7546_v56, %v3432_v22  ;;  %v3476_v58 = vsub.f32 %v7548_v23, %v3432_v22  ;;  %v5852_v56 = vpop.eup %5851 }
 0x87a   : > { %v3513_v48 = vmul.f32 1.442695, %v3475_v14  ;;  %v3515_v29 = vmul.f32 1.442695, %v3476_v58  ;;  %v3601_v58 = vadd.f32 %v7674_v36, %v7672_v57 }
 0x87c   : > { %5853 = vpow2.f32 %v3513_v48  ;;  %v7720_v48 = vld [vmem:[%s6187_s29 + $0x10] sm:$0xff] }
 0x87d   : > { %5855 = vpow2.f32 %v3515_v29 }
 0x87e   : > { %5857 = vpow2.f32 %v3511_v30  ;;  %v3447_v30 = vpop.xlane.xlu1 %3446 }
 0x87f   : > { %v3098_v5 = vpop.permute.xlu2 %3097  ;;  %v3485_v47 = vsub.f32 %v7522_v27, %v3447_v30  ;;  %v3486_v57 = vsub.f32 %v7524_v40, %v3447_v30 }
 0x880   : > { %v3147_v2 = vadd.f32 %v7382_v34, %v3098_v5  ;;  %v3148_v17 = vadd.f32 %v7384_v6, %v3098_v5 }
 0x882   : > { %v5854_v26 = vpop.eup %5853  ;;  %v3179_v23 = vmul.f32 0.2, %v3147_v2  ;;  %v3180_v54 = vmul.f32 0.2, %v3148_v17 }
 0x883   : > { %v5856_v53 = vpop.eup %5855  ;;  %v3435_v25 = vpop.xlane.xlu0 %3434  ;;  %v3615_v44 = vpack.c.bf16 %v5854_v26, %v5852_v56 }
 0x884   : > { %v5858_v4 = vpop.eup %5857  ;;  %v3211_v15 = vmax.f32 %v3147_v2, %v3179_v23  ;;  %v3212_v12 = vmax.f32 %v3148_v17, %v3180_v54  ;;  %v3477_v18 = vsub.f32 %v7560_v8, %v3435_v25  ;;  %v3478_v46 = vsub.f32 %v7562_v37, %v3435_v25 }
 0x885   : > { %3770 = vmatmul.bf16.gmra.mxu0 %v3615_v44  ;;  %v3616_v34 = vpack.c.bf16 %v5856_v53, %v5858_v4  ;;  %v3574_v60 = vadd.f32 %v5856_v53, %v5854_v26  ;;  %v3571_v45 = vadd.f32 %v5858_v4, %v5852_v56  ;;  %v3535_v54 = vmul.f32 1.442695, %v3486_v57 }
 0x886   : > { %v3517_v6 = vmul.f32 1.442695, %v3477_v18  ;;  %v3519_v38 = vmul.f32 1.442695, %v3478_v46  ;;  %v7699_v16 = vsel %vm3379_vm10, %v3211_v15, -1e+30 }
 0x887   : > { %3819 = vmatmul.bf16.gmra.mxu1 %v3616_v34  ;;  %3575 = vadd.xlane.f32.xlu2 %v3574_v60  ;;  %v7701_v42 = vsel %vm3380_vm11, %v3212_v12, -1e+30  ;;  %v3989_v15 = vld [vmem:[%s8560_s9 + $0x10] sm:$0xff]  ;;  %v3988_v46 = vld [vmem:[%s8560_s9 + $0x8] sm:$0xff]  ;;  %v3987_v60 = vld [vmem:[%s8560_s9] sm:$0xff] }
 0x888   : > { %5859 = vpow2.f32 %v3517_v6  ;;  %v3454_v52 = vmax.f32 %v7699_v16, %v7701_v42 }
 0x889   : > { %5861 = vpow2.f32 %v3519_v38 }
 0x88a   : > { %3455 = vmax.xlane.f32.xlu1 %v3454_v52 }
 0x88b   : > { %v3450_v8 = vpop.xlane.xlu0 %3449 }
 0x88c   : > { %v3487_v37 = vsub.f32 %v7566_v41, %v3450_v8  ;;  %v3488_v43 = vsub.f32 %v7568_v3, %v3450_v8  ;;  %v3586_v3 = vadd.f32 %v7653_v63, %v7648_v59 }
 0x88e   : > { %v5860_v33 = vpop.eup %5859  ;;  %v3537_v11 = vmul.f32 1.442695, %v3487_v37  ;;  %v3539_v0 = vmul.f32 1.442695, %v3488_v43 }
 0x88f   : > { %v5862_v51 = vpop.eup %5861  ;;  %3584 = vadd.xlane.f32.xlu2 %v3583_v55 }
 0x890   : > { %5863 = vpow2.f32 %v3537_v11  ;;  %v3577_v28 = vadd.f32 %v5862_v51, %v5860_v33 }
 0x891   : > { %5865 = vpow2.f32 %v3539_v0 }
 0x892   : > { %3572 = vadd.xlane.f32.xlu1 %v3571_v45  ;;  %3578 = vadd.xlane.f32.xlu0 %v3577_v28 }
 0x896   : > { %v7709_v22 = vpop.eup %5863 }
 0x897   : > { %v7711_v41 = vpop.eup %5865 }
 0x898   : > { %v3592_v14 = vadd.f32 %v7711_v41, %v7709_v22 }
 0x89a   : > { %3587 = vadd.xlane.f32.xlu0 %v3586_v3  ;;  %3593 = vadd.xlane.f32.xlu2 %v3592_v14 }
 0x8a2   : > { %3602 = vadd.xlane.f32.xlu2 %v3601_v58 }
 0x8b8   : > { %v3438_v29 = vpop.xlane.xlu2 %3437 }
 0x8b9   : > { %v3479_v32 = vsub.f32 %v7603_v31, %v3438_v29  ;;  %v3480_v5 = vsub.f32 %v7605_v24, %v3438_v29  ;;  %v3533_v24 = vmul.f32 1.442695, %v3485_v47 }
 0x8ba   : > { %4465 = vrot.lane.b32.xlu2 %v7720_v48, %s6080_s25 }
 0x8bb   : > { %v3521_v10 = vmul.f32 1.442695, %v3479_v32  ;;  %v3523_v2 = vmul.f32 1.442695, %v3480_v5  ;;  %v3465_v17 = vpop.xlane.xlu1 %3464 }
 0x8bc   : > { %v3497_v56 = vsub.f32 %v7610_v13, %v3465_v17  ;;  %v3498_v26 = vsub.f32 %v7612_v19, %v3465_v17  ;;  %v3990_v19 = vld [vmem:[%s8560_s9 + $0x18] sm:$0xff] }
 0x8bd   : > { %5867 = vpow2.f32 %v3521_v10  ;;  %4056 = vmatpush.msra.mxu2 %v3990_v19  ;;  %5604 = vmatpush.msra.mxu3 %v3990_v19 }
 0x8be   : > { %5869 = vpow2.f32 %v3523_v2  ;;  %v3557_v31 = vmul.f32 1.442695, %v3497_v56  ;;  %v3559_v23 = vmul.f32 1.442695, %v3498_v26 }
 0x8bf   : > { %4057 = vmatpush.msra.mxu2 %v3989_v15  ;;  %5605 = vmatpush.msra.mxu3 %v3989_v15 }
 0x8c0   : > { %5871 = vpow2.f32 %v3557_v31 }
 0x8c1   : > { %5873 = vpow2.f32 %v3559_v23  ;;  %4058 = vmatpush.msra.mxu2 %v3988_v46  ;;  %5606 = vmatpush.msra.mxu3 %v3988_v46 }
 0x8c2   : > { %5875 = vpow2.f32 %v3533_v24 }
 0x8c3   : > { %v5868_v53 = vpop.eup %5867  ;;  %5877 = vpow2.f32 %v3535_v54  ;;  %4059 = vmatpush.msra.mxu2 %v3987_v60  ;;  %5607 = vmatpush.msra.mxu3 %v3987_v60 }
 0x8c4   : > { %v5870_v27 = vpop.eup %5869  ;;  %v3617_v25 = vpack.c.bf16 %v5868_v53, %v5860_v33 }
 0x8c5   : > { %v3618_v44 = vpack.c.bf16 %v5870_v27, %v5862_v51  ;;  %v3580_v4 = vadd.f32 %v5870_v27, %v5868_v53 }
 0x8c6   : > { %v5872_v40 = vpop.eup %5871  ;;  %3775 = vmatmul.bf16.gmra.mxu0 %v3617_v25  ;;  %v7774_v25 = vld [vmem:[%s6187_s29] sm:$0xff] }
 0x8c7   : > { %v7730_v13 = vpop.eup %5873  ;;  %3824 = vmatmul.bf16.gmra.mxu1 %v3618_v44  ;;  %3581 = vadd.xlane.f32.xlu1 %v3580_v4 }
 0x8c8   : > { %v7739_v12 = vadd.f32 %v7730_v13, %v5872_v40  ;;  %v5876_v18 = vpop.eup %5875  ;;  %v3766_v11 = vpop.f32.mrf.mxu0 }
 0x8c9   : > { %v5878_v34 = vpop.eup %5877  ;;  %v3815_v0 = vpop.f32.mrf.mxu1  ;;  %v3621_v2 = vpack.c.bf16 %v7709_v22, %v5876_v18 }
 0x8ca   : > { %v3589_v6 = vadd.f32 %v5878_v34, %v5876_v18  ;;  %v3816_v14 = vadd.f32 %v3815_v0, %v3766_v11  ;;  %v3622_v57 = vpack.c.bf16 %v7711_v41, %v5878_v34 }
 0x8cd   : > { %v3468_v38 = vpop.xlane.xlu2 %3467 }
 0x8ce   : > { %v3499_v52 = vsub.f32 %v7644_v49, %v3468_v38  ;;  %v3500_v8 = vsub.f32 %v7646_v9, %v3468_v38 }
 0x8cf   : > { %3590 = vadd.xlane.f32.xlu1 %v3589_v6 }
 0x8d0   : > { %v3561_v37 = vmul.f32 1.442695, %v3499_v52  ;;  %v3563_v43 = vmul.f32 1.442695, %v3500_v8 }
 0x8d1   : > { %v3817_v58 = vpop.f32.mrf.mxu1 }
 0x8d2   : > { %5879 = vpow2.f32 %v3561_v37 }
 0x8d5   : > { %v3453_v55 = vpop.xlane.xlu0 %3452  ;;  %v3567_v33 = vpop.xlane.xlu2 %3566 }
 0x8d6   : > { %v3489_v51 = vsub.f32 %v7664_v61, %v3453_v55  ;;  %v3490_v45 = vsub.f32 %v7666_v35, %v3453_v55  ;;  %3780 = vmatmul.bf16.gmra.mxu0 %v3619_v50  ;;  %5881 = vrcp.f32 %v3567_v33  ;;  %v7760_v61 = vld [vmem:[%s8559_s8] ss:$0 sm:$0xff] }
 0x8d7   : > { %3829 = vmatmul.bf16.gmra.mxu1 %v3620_v20  ;;  %5883 = vpow2.f32 %v3563_v43  ;;  %v3768_v20 = vpop.f32.mrf.mxu0 }
 0x8d8   : > { %v5880_v49 = vpop.eup %5879  ;;  %v3541_v9 = vmul.f32 1.442695, %v3489_v51  ;;  %v3543_v28 = vmul.f32 1.442695, %v3490_v45  ;;  %v3818_v47 = vadd.f32 %v3817_v58, %v3768_v20 }
 0x8d9   : > { %v3627_v3 = vpack.c.bf16 %v5880_v49, %v5872_v40 }
 0x8da   : > { %5885 = vpow2.f32 %v3541_v9 }
 0x8db   : > { %5887 = vpow2.f32 %v3543_v28  ;;  %3800 = vmatmul.bf16.gmra.mxu3 %v3627_v3  ;;  %v7784_v28 = vld [vmem:[%s6187_s29 + $0x8] sm:$0xff] }
 0x8dc   : > { %v5882_v39 = vpop.eup %5881 }
 0x8dd   : > { %v3871_v59 = vmul.f32 %v5882_v39, %v3816_v14  ;;  %v3570_v50 = vpop.xlane.xlu0 %3569  ;;  %v5884_v35 = vpop.eup %5883  ;;  %v7790_v14 = vld [vmem:[%s6187_s29 + $0x18] sm:$0xff] }
 0x8de   : > { %5889 = vrcp.f32 %v3570_v50  ;;  %v3610_v29 = vadd.f32 %v5884_v35, %v5880_v49  ;;  %v3628_v53 = vpack.c.bf16 %v5884_v35, %v7730_v13 }
 0x8df   : > { %v3891_v1 = vadd.f32 %v7760_v61, %v3871_v59 }
 0x8e0   : > { %v5886_v63 = vpop.eup %5885 }
 0x8e1   : > { %v5888_v30 = vpop.eup %5887  ;;  %v3923_v32 = vmul.f32 1.442695, %v3891_v1  ;;  %vm3907_vm13 = vcmp.gt.f32.partialorder %v3891_v1, 0.0 }
 0x8e2   : > { %v3595_v5 = vadd.f32 %v5888_v30, %v5886_v63 }
 0x8e3   : > { %3611 = vadd.xlane.f32.xlu2 %v3610_v29  ;;  %5891 = vpow2.f32 %v3923_v32 }
 0x8e4   : > { %v5890_v10 = vpop.eup %5889  ;;  %3596 = vadd.xlane.f32.xlu0 %v3595_v5 }
 0x8e5   : > { %v3872_v17 = vmul.f32 %v5890_v10, %v3818_v47 }
 0x8e6   : > { %3785 = vmatmul.bf16.gmra.mxu0 %v3621_v2 }
 0x8e7   : > { %3834 = vmatmul.bf16.gmra.mxu1 %v3622_v57  ;;  %v3892_v56 = vadd.f32 %v7760_v61, %v3872_v17 }
 0x8e9   : > { %v5892_v26 = vpop.eup %5891  ;;  %v3925_v31 = vmul.f32 1.442695, %v3892_v56  ;;  %vm3908_vm14 = vcmp.gt.f32.partialorder %v3892_v56, 0.0 }
 0x8ea   : > { %v5460_v23 = vadd.f32 -1.0, %v5892_v26 }
 0x8eb   : > { %3844 = vmatmul.bf16.vlgmr.msrb.gmra.mxu3 %v3626_v62  ;;  %5893 = vpow2.f32 %v3925_v31 }
 0x8ec   : > { %3605 = vadd.xlane.f32.xlu0 %v7682_v21  ;;  %v3971_v22 = vsel %vm3907_vm13, %v3891_v1, %v5460_v23 }
 0x8ed   : > { %5476 = vmatmul.msk.f32.vlgmr.msra.gmra.mxu2 %vm3995_vm12, %v3971_v22 }
 0x8ee   : > { %v7795_v32 = vpop.f32.mrf.mxu3 }
 0x8f1   : > { %v5894_v41 = vpop.eup %5893 }
 0x8f2   : > { %v5461_v24 = vadd.f32 -1.0, %v5894_v41 }
 0x8f4   : > { %v3972_v54 = vsel %vm3908_vm14, %v3892_v56, %v5461_v24 }
 0x8f5   : > { %5477 = vmatmul.msk.f32.gmra.mxu2 %vm3995_vm12, %v3972_v54 }
 0x8fa   : > { %v3576_v40 = vpop.xlane.xlu2 %3575 }
 0x8fb   : > { %3849 = vmatmul.bf16.gmra.mxu3 %v3628_v53  ;;  %v7799_v53 = vpop.f32.mrf.mxu3 }
 0x8fd   : > { %v3456_v27 = vpop.xlane.xlu1 %3455 }
 0x8fe   : > { %v3491_v36 = vsub.f32 %v7699_v16, %v3456_v27  ;;  %v3492_v7 = vsub.f32 %v7701_v42, %v3456_v27 }
 0x900   : > { %v3545_v21 = vmul.f32 1.442695, %v3491_v36  ;;  %v3547_v62 = vmul.f32 1.442695, %v3492_v7  ;;  %4461 = vrot.lane.b32.xlu0 %v7774_v25, %s6080_s25  ;;  %v7802_v36 = vld [vmem:[%s6187_s29 + $0x30] sm:$0xff] }
 0x902   : > { %5895 = vpow2.f32 %v3545_v21  ;;  %v3771_v44 = vpop.f32.mrf.mxu0  ;;  %v3585_v47 = vpop.xlane.xlu2 %3584 }
 0x903   : > { %5897 = vpow2.f32 %v3547_v62 }
 0x904   : > { %v3820_v4 = vpop.f32.mrf.mxu1 }
 0x905   : > { %v3573_v19 = vpop.xlane.xlu1 %3572  ;;  %v3821_v42 = vadd.f32 %v3820_v4, %v3771_v44  ;;  %v3579_v39 = vpop.xlane.xlu0 %3578 }
 0x906   : > { %5899 = vrcp.f32 %v3573_v19 }
 0x907   : > { %5901 = vrcp.f32 %v3576_v40 }
 0x908   : > { %v5896_v13 = vpop.eup %5895  ;;  %4467 = vrot.lane.b32.xlu0 %v7790_v14, %s6080_s25 }
 0x909   : > { %v5898_v15 = vpop.eup %5897  ;;  %v3623_v18 = vpack.c.bf16 %v5896_v13, %v5886_v63 }
 0x90a   : > { %v3773_v46 = vpop.f32.mrf.mxu0  ;;  %v3624_v16 = vpack.c.bf16 %v5898_v15, %v5888_v30  ;;  %v3598_v34 = vadd.f32 %v5898_v15, %v5896_v13 }
 0x90b   : > { %3790 = vmatmul.bf16.gmra.mxu0 %v3623_v18 }
 0x90c   : > { %v5900_v60 = vpop.eup %5899  ;;  %v3822_v6 = vpop.f32.mrf.mxu1  ;;  %3839 = vmatmul.bf16.gmra.mxu1 %v3624_v16  ;;  %3599 = vadd.xlane.f32.xlu1 %v3598_v34  ;;  %v4422_v34 = vld [vmem:[%s6187_s29 + $0x48] sm:$0xff] }
 0x90d   : > { %v3873_v38 = vmul.f32 %v5900_v60, %v3821_v42  ;;  %v3823_v52 = vadd.f32 %v3822_v6, %v3773_v46  ;;  %v5902_v8 = vpop.eup %5901  ;;  %v3588_v41 = vpop.xlane.xlu0 %3587  ;;  %v7817_v42 = vld [vmem:[%s6187_s29 + $0x38] sm:$0xff] }
 0x90f   : > { %v3874_v37 = vmul.f32 %v5902_v8, %v3823_v52  ;;  %v3893_v43 = vadd.f32 %v7760_v61, %v3873_v38  ;;  %v3594_v52 = vpop.xlane.xlu2 %3593 }
 0x910   : > { %4473 = vrot.lane.b32.xlu0 %v7802_v36, %s6080_s25 }
 0x911   : > { %v3894_v55 = vadd.f32 %v7760_v61, %v3874_v37  ;;  %v3927_v33 = vmul.f32 1.442695, %v3893_v43  ;;  %vm3909_vm0 = vcmp.gt.f32.partialorder %v3893_v43, 0.0 }
 0x913   : > { %5903 = vpow2.f32 %v3927_v33  ;;  %v3929_v11 = vmul.f32 1.442695, %v3894_v55  ;;  %vm3910_vm15 = vcmp.gt.f32.partialorder %v3894_v55, 0.0 }
 0x915   : > { %5905 = vpow2.f32 %v3929_v11  ;;  %v7825_v11 = vld [vmem:[%s6187_s29 + $0x28] sm:$0xff] }
 0x916   : > { %5907 = vrcp.f32 %v3579_v39 }
 0x918   : > { %4479 = vrot.lane.b32.xlu0 %v4422_v34, %s6080_s25 }
 0x919   : > { %v5904_v0 = vpop.eup %5903 }
 0x91a   : > { %v5462_v51 = vadd.f32 -1.0, %v5904_v0 }
 0x91b   : > { %v5906_v49 = vpop.eup %5905 }
 0x91c   : > { %v3973_v45 = vsel %vm3909_vm0, %v3893_v43, %v5462_v51  ;;  %v5463_v9 = vadd.f32 -1.0, %v5906_v49  ;;  %v5908_v63 = vpop.eup %5907  ;;  %v4425_v49 = vld [vmem:[%s6187_s29 + $0x60] sm:$0xff] }
 0x91d   : > { %5478 = vmatmul.msk.f32.gmra.mxu2 %vm3995_vm12, %v3973_v45 }
 0x91e   : > { %v3974_v3 = vsel %vm3910_vm15, %v3894_v55, %v5463_v9  ;;  %v7831_v9 = vld [vmem:[%s6187_s29 + $0x50] sm:$0xff] }
 0x920   : > { %4485 = vrot.lane.b32.xlu0 %v4425_v49, %s6080_s25 }
 0x925   : > { %4463 = vrot.lane.b32.xlu1 %v7784_v28, %s6080_s25  ;;  %5479 = vmatmul.msk.f32.gmra.mxu2 %vm3995_vm12, %v3974_v3 }
 0x93a   : > { %v3582_v35 = vpop.xlane.xlu1 %3581 }
 0x93b   : > { %5909 = vrcp.f32 %v3582_v35 }
 0x941   : > { %v5910_v2 = vpop.eup %5909 }
 0x942   : > { %v3591_v13 = vpop.xlane.xlu1 %3590 }
 0x943   : > { %v3776_v59 = vpop.f32.mrf.mxu0 }
 0x944   : > { %v3825_v50 = vpop.f32.mrf.mxu1 }
 0x945   : > { %v3826_v1 = vadd.f32 %v3825_v50, %v3776_v59 }
 0x947   : > { %v3875_v20 = vmul.f32 %v5908_v63, %v3826_v1 }
 0x949   : > { %v3895_v58 = vadd.f32 %v7760_v61, %v3875_v20  ;;  %v3603_v20 = vpop.xlane.xlu2 %3602 }
 0x94b   : > { %v3778_v30 = vpop.f32.mrf.mxu0  ;;  %v3931_v29 = vmul.f32 1.442695, %v3895_v58  ;;  %vm3911_vm1 = vcmp.gt.f32.partialorder %v3895_v58, 0.0 }
 0x94c   : > { %v3827_v5 = vpop.f32.mrf.mxu1 }
 0x94d   : > { %v3828_v10 = vadd.f32 %v3827_v5, %v3778_v30  ;;  %5911 = vpow2.f32 %v3931_v29  ;;  %v7843_v30 = vld [vmem:[%s8561_s10] ss:$0 sm:$0xff] }
 0x94e   : > { %5913 = vrcp.f32 %v3585_v47  ;;  %v7846_v29 = vld [vmem:[%s6187_s29 + $0x40] sm:$0xff] }
 0x94f   : > { %v3876_v17 = vmul.f32 %v5910_v2, %v3828_v10  ;;  %3608 = vadd.xlane.f32.xlu1 %v7739_v12  ;;  %v7805_v12 = vld [vmem:[%s6187_s29 + $0x20] sm:$0xff]  ;;  %v7851_v2 = vld [vmem:[%s6187_s29 + $0x78] sm:$0xff] }
 0x950   : > { %4469 = vrot.lane.b32.xlu2 %v7805_v12, %s6080_s25  ;;  %4491 = vrot.lane.b32.xlu0 %v7851_v2, %s6080_s25 }
 0x951   : > { %v3896_v57 = vadd.f32 %v7760_v61, %v3876_v17  ;;  %v7854_v17 = vld [vmem:[%s6187_s29 + $0x68] sm:$0xff] }
 0x953   : > { %v5912_v56 = vpop.eup %5911  ;;  %v3781_v26 = vpop.f32.mrf.mxu0  ;;  %v3933_v31 = vmul.f32 1.442695, %v3896_v57  ;;  %vm3912_vm2 = vcmp.gt.f32.partialorder %v3896_v57, 0.0 }
 0x954   : > { %v3830_v23 = vpop.f32.mrf.mxu1  ;;  %v5464_v22 = vadd.f32 -1.0, %v5912_v56  ;;  %v5914_v54 = vpop.eup %5913 }
 0x955   : > { %v3831_v24 = vadd.f32 %v3830_v23, %v3781_v26  ;;  %5915 = vpow2.f32 %v3933_v31 }
 0x956   : > { %v3975_v27 = vsel %vm3911_vm1, %v3895_v58, %v5464_v22  ;;  %5917 = vrcp.f32 %v3588_v41 }
 0x957   : > { %v3877_v7 = vmul.f32 %v5914_v54, %v3831_v24  ;;  %5480 = vmatmul.msk.f32.gmra.mxu2 %vm3995_vm12, %v3975_v27  ;;  %v7865_v54 = vpop.permute.xlu2 %4465  ;;  %v7868_v27 = vld [vmem:[%s6187_s29 + $0x58] sm:$0xff] }
 0x958   : > { %4475 = vrot.lane.b32.xlu2 %v7817_v42, %s6080_s25 }
 0x959   : > { %v3897_v21 = vadd.f32 %v7760_v61, %v3877_v7 }
 0x95b   : > { %v5916_v62 = vpop.eup %5915  ;;  %v3783_v44 = vpop.f32.mrf.mxu0  ;;  %v3935_v4 = vmul.f32 1.442695, %v3897_v21  ;;  %vm3913_vm3 = vcmp.gt.f32.partialorder %v3897_v21, 0.0 }
 0x95c   : > { %v3832_v40 = vpop.f32.mrf.mxu1  ;;  %v5465_v19 = vadd.f32 -1.0, %v5916_v62  ;;  %v5918_v18 = vpop.eup %5917 }
 0x95d   : > { %v3833_v15 = vadd.f32 %v3832_v40, %v3783_v44  ;;  %5919 = vpow2.f32 %v3935_v4  ;;  %v3597_v4 = vpop.xlane.xlu0 %3596 }
 0x95e   : > { %v3976_v46 = vsel %vm3912_vm2, %v3896_v57, %v5465_v19  ;;  %v7813_v16 = vpop.f32.mrf.mxu3  ;;  %5921 = vrcp.f32 %v3591_v13 }
 0x95f   : > { %v3878_v60 = vmul.f32 %v5918_v18, %v3833_v15  ;;  %5481 = vmatmul.msk.f32.gmra.mxu2 %vm3995_vm12, %v3976_v46  ;;  %v4427_v46 = vld [vmem:[%s6187_s29 + $0x70] sm:$0xff] }
 0x960   : > { %4481 = vrot.lane.b32.xlu2 %v7831_v9, %s6080_s25 }
 0x961   : > { %v3898_v6 = vadd.f32 %v7760_v61, %v3878_v60  ;;  %v3612_v60 = vpop.xlane.xlu2 %3611 }
 0x963   : > { %v5920_v38 = vpop.eup %5919  ;;  %v3786_v8 = vpop.f32.mrf.mxu0  ;;  %v3937_v37 = vmul.f32 1.442695, %v3898_v6  ;;  %vm3914_vm4 = vcmp.gt.f32.partialorder %v3898_v6, 0.0 }
 0x964   : > { %v3835_v43 = vpop.f32.mrf.mxu1  ;;  %v5466_v55 = vadd.f32 -1.0, %v5920_v38  ;;  %v5922_v0 = vpop.eup %5921 }
 0x965   : > { %v3836_v33 = vadd.f32 %v3835_v43, %v3786_v8  ;;  %5923 = vpow2.f32 %v3937_v37  ;;  %v3606_v37 = vpop.xlane.xlu0 %3605 }
 0x966   : > { %v3977_v51 = vsel %vm3913_vm3, %v3897_v21, %v5466_v55  ;;  %v7827_v45 = vpop.f32.mrf.mxu3  ;;  %5925 = vrcp.f32 %v3594_v52 }
 0x967   : > { %v3879_v3 = vmul.f32 %v5922_v0, %v3836_v33  ;;  %5482 = vmatmul.msk.f32.gmra.mxu2 %vm3995_vm12, %v3977_v51 }
 0x968   : > { %4471 = vrot.lane.b32.xlu1 %v7825_v11, %s6080_s25  ;;  %4487 = vrot.lane.b32.xlu2 %v7854_v17, %s6080_s25 }
 0x969   : > { %v3899_v39 = vadd.f32 %v7760_v61, %v3879_v3 }
 0x96b   : > { %v5924_v59 = vpop.eup %5923  ;;  %v3788_v50 = vpop.f32.mrf.mxu0  ;;  %v3939_v35 = vmul.f32 1.442695, %v3899_v39  ;;  %vm3915_vm5 = vcmp.gt.f32.partialorder %v3899_v39, 0.0 }
 0x96c   : > { %v3837_v1 = vpop.f32.mrf.mxu1  ;;  %v5467_v63 = vadd.f32 -1.0, %v5924_v59  ;;  %v5926_v5 = vpop.eup %5925 }
 0x96d   : > { %v3838_v58 = vadd.f32 %v3837_v1, %v3788_v50  ;;  %5927 = vpow2.f32 %v3939_v35 }
 0x96e   : > { %v3978_v47 = vsel %vm3914_vm4, %v3898_v6, %v5467_v63  ;;  %v7848_v10 = vpop.f32.mrf.mxu3 }
 0x96f   : > { %v3880_v57 = vmul.f32 %v5926_v5, %v3838_v58  ;;  %5483 = vmatmul.msk.f32.gmra.mxu2 %vm3995_vm12, %v3978_v47 }
 0x970   : > { %v4061_v56 = vpop.f32.mrf.mxu2  ;;  %4477 = vrot.lane.b32.xlu1 %v7846_v29, %s6080_s25 }
 0x971   : > { %v3900_v26 = vadd.f32 %v7760_v61, %v3880_v57  ;;  %v4062_v31 = vadd.f32 %v7843_v30, %v4061_v56 }
 0x972   : > { %v4462_v56 = vpop.permute.xlu0 %4461 }
 0x973   : > { %v5928_v23 = vpop.eup %5927  ;;  %v5492_v22 = vmul.f32 -1.442695, %v4062_v31  ;;  %v3941_v41 = vmul.f32 1.442695, %v3900_v26  ;;  %vm3916_vm6 = vcmp.gt.f32.partialorder %v3900_v26, 0.0 }
 0x974   : > { %v5468_v24 = vadd.f32 -1.0, %v5928_v23 }
 0x975   : > { %5929 = vpow2.f32 %v5492_v22 }
 0x976   : > { %v3979_v7 = vsel %vm3915_vm5, %v3899_v39, %v5468_v24  ;;  %v7870_v21 = vpop.f32.mrf.mxu3  ;;  %5931 = vpow2.f32 %v3941_v41 }
 0x977   : > { %5484 = vmatmul.msk.f32.gmra.mxu2 %vm3995_vm12, %v3979_v7 }
 0x978   : > { %v4064_v62 = vpop.f32.mrf.mxu2  ;;  %4483 = vrot.lane.b32.xlu1 %v7868_v27, %s6080_s25 }
 0x979   : > { %v4065_v44 = vadd.f32 %v7843_v30, %v4064_v62 }
 0x97b   : > { %v5930_v40 = vpop.eup %5929  ;;  %v5493_v19 = vmul.f32 -1.442695, %v4065_v44 }
 0x97c   : > { %v5932_v13 = vpop.eup %5931  ;;  %v4157_v15 = vadd.f32 1.0, %v5930_v40 }
 0x97d   : > { %5933 = vpow2.f32 %v5493_v19  ;;  %v5469_v18 = vadd.f32 -1.0, %v5932_v13 }
 0x97e   : > { %5935 = vrcp.f32 %v4157_v15  ;;  %v3850_v34 = vpop.f32.mrf.mxu3  ;;  %v4184_v3 = vand.u32 2147483648, %v4157_v15  ;;  %v4182_v1 = vand.u32 2147483647, %v4157_v15  ;;  %vm4178_vm8 = vweird.f32 %v4157_v15 }
 0x97f   : > { %v3980_v6 = vsel %vm3916_vm6, %v3900_v26, %v5469_v18  ;;  %v7878_v38 = vadd.f32 %v3850_v34, %v7813_v16  ;;  %5937 = vrcp.f32 %v3612_v60  ;;  %v3600_v39 = vpop.xlane.xlu1 %3599 }
 0x980   : > { %5485 = vmatmul.msk.f32.gmra.mxu2 %vm3995_vm12, %v3980_v6  ;;  %4489 = vrot.lane.b32.xlu1 %v4427_v46, %s6080_s25  ;;  %5939 = vrcp.f32 %v3597_v4  ;;  %v4185_v26 = vor.u32 1.1754944e-38, %v4184_v3  ;;  %vm4183_vm10 = vcmp.eq.f32.partialorder %v4182_v1, 8.507059e+37  ;;  %s6081_s25 = smov 3  }
 0x983   : > { %v5934_v52 = vpop.eup %5933 }
 0x984   : > { %v5936_v8 = vpop.eup %5935  ;;  %v7882_v43 = vadd.f32 1.0, %v5934_v52 }
 0x985   : > { %v4174_v55 = vmul.f32 %v5936_v8, %v4157_v15  ;;  %v5938_v16 = vpop.eup %5937  ;;  %vm4179_vm7 = vweird.f32 %v5936_v8 }
 0x986   : > { %5941 = vrcp.f32 %v7882_v43  ;;  %v3852_v33 = vpop.f32.mrf.mxu3  ;;  %v5940_v58 = vpop.eup %5939  ;;  %vm4180_vm9 = vmor %vm4178_vm8, %vm4179_vm7  ;;  %v4199_v4 = vand.u32 2147483648, %v7882_v43  ;;  %v4197_v18 = vand.u32 2147483647, %v7882_v43  ;;  %vm4193_vm13 = vweird.f32 %v7882_v43 }
 0x987   : > { %v3853_v0 = vadd.f32 %v3852_v33, %v7827_v45  ;;  %v4175_v51 = vsub.f32 1.0, %v4174_v55  ;;  %5943 = vrcp.f32 %v3603_v20  ;;  %v3846_v45 = vadd.f32 %v7848_v10, %v7795_v32 }
 0x988   : > { %v3791_v49 = vpop.f32.mrf.mxu0  ;;  %5945 = vrcp.f32 %v3600_v39  ;;  %v4200_v6 = vor.u32 1.1754944e-38, %v4199_v4  ;;  %vm4198_vm0 = vcmp.eq.f32.partialorder %v4197_v18, 8.507059e+37 }
 0x989   : > { %v3840_v59 = vpop.f32.mrf.mxu1  ;;  %v3886_v50 = vmul.f32 %v5938_v16, %v3853_v0  ;;  %v4176_v35 = vmul.f32 %v5936_v8, %v4175_v51 }
 0x98a   : > { %v3841_v63 = vadd.f32 %v3840_v59, %v3791_v49 }
 0x98b   : > { %v3906_v5 = vadd.f32 %v7760_v61, %v3886_v50  ;;  %v4177_v47 = vadd.f32 %v5936_v8, %v4176_v35 }
 0x98c   : > { %v5942_v57 = vpop.eup %5941  ;;  %v3881_v20 = vmul.f32 %v5940_v58, %v3841_v63 }
 0x98d   : > { %v3953_v31 = vmul.f32 1.442695, %v3906_v5  ;;  %v4181_v23 = vsel %vm4180_vm9, %v5936_v8, %v4177_v47  ;;  %v4189_v22 = vmul.f32 %v5942_v57, %v7882_v43  ;;  %v5944_v41 = vpop.eup %5943  ;;  %vm4194_vm11 = vweird.f32 %v5942_v57 }
 0x98e   : > { %v3901_v24 = vadd.f32 %v7760_v61, %v3881_v20  ;;  %v7891_v7 = vsel %vm4183_vm10, %v4185_v26, %v4181_v23  ;;  %v3883_v32 = vmul.f32 %v5944_v41, %v3846_v45  ;;  %v5946_v46 = vpop.eup %5945  ;;  %vm4195_vm14 = vmor %vm4193_vm13, %vm4194_vm11  ;;  %vm3922_vm15 = vcmp.gt.f32.partialorder %v3906_v5, 0.0 }
 0x98f   : > { %5947 = vpow2.f32 %v3953_v31  ;;  %v4509_v62 = vmul.f32 %v4462_v56, %v7891_v7  ;;  %v4190_v44 = vsub.f32 1.0, %v4189_v22 }
 0x990   : > { %v3793_v10 = vpop.f32.mrf.mxu0  ;;  %v3943_v40 = vmul.f32 1.442695, %v3901_v24  ;;  %v3903_v8 = vadd.f32 %v7760_v61, %v3883_v32  ;;  %vm3917_vm1 = vcmp.gt.f32.partialorder %v3901_v24, 0.0 }
 0x991   : > { %v7896_v19 = vmul.f32 %v4509_v62, %v7774_v25  ;;  %v3842_v13 = vpop.f32.mrf.mxu1  ;;  %4893 = vrot.lane.b32.xlu1 %v4509_v62, %s6081_s25  ;;  %v4191_v15 = vmul.f32 %v5942_v57, %v4190_v44 }
 0x992   : > { %v3843_v34 = vadd.f32 %v3842_v13, %v3793_v10  ;;  %5949 = vpow2.f32 %v3943_v40  ;;  %v3947_v35 = vmul.f32 1.442695, %v3903_v8  ;;  %vm3919_vm3 = vcmp.gt.f32.partialorder %v3903_v8, 0.0 }
 0x993   : > { %5951 = vrcp.f32 %v3606_v37  ;;  %4717 = vrot.lane.b32.xlu0 %v7896_v19, %s6082_s15  ;;  %4557 = vrot.lane.b32.xlu2 %v7896_v19, %s6083_s16  ;;  %v4192_v25 = vadd.f32 %v5942_v57, %v4191_v15  ;;  %v3848_v37 = vadd.f32 %v7870_v21, %v7799_v53 }
 0x994   : > { %v3882_v60 = vmul.f32 %v5946_v46, %v3843_v34 }
 0x995   : > { %v5948_v52 = vpop.eup %5947  ;;  %v4196_v55 = vsel %vm4195_vm14, %v5942_v57, %v4192_v25 }
 0x996   : > { %v3902_v33 = vadd.f32 %v7760_v61, %v3882_v60  ;;  %v7909_v0 = vsel %vm4198_vm0, %v4200_v6, %v4196_v55  ;;  %v5475_v51 = vadd.f32 -1.0, %v5948_v52 }
 0x997   : > { %v4464_v16 = vpop.permute.xlu1 %4463 }
 0x998   : > { %v5950_v49 = vpop.eup %5949  ;;  %v4510_v43 = vmul.f32 %v4464_v16, %v7909_v0  ;;  %v3986_v3 = vsel %vm3922_vm15, %v3906_v5, %v5475_v51  ;;  %v3945_v39 = vmul.f32 1.442695, %v3902_v33  ;;  %vm3918_vm2 = vcmp.gt.f32.partialorder %v3902_v33, 0.0 }
 0x999   : > { %v5952_v59 = vpop.eup %5951  ;;  %v5470_v50 = vadd.f32 -1.0, %v5950_v49  ;;  %5491 = vmatmul.msk.f32.vlgmr.msra.gmra.mxu3 %vm3995_vm12, %v3986_v3 }
 0x99a   : > { %v3884_v1 = vmul.f32 %v5952_v59, %v3848_v37  ;;  %v7914_v53 = vmul.f32 %v4510_v43, %v7784_v28  ;;  %5953 = vpow2.f32 %v3945_v39 }
 0x99b   : > { %v3981_v21 = vsel %vm3917_vm1, %v3901_v24, %v5470_v50  ;;  %4895 = vrot.lane.b32.xlu0 %v4510_v43, %s6081_s25  ;;  %5955 = vpow2.f32 %v3947_v35 }
 0x99c   : > { %5486 = vmatmul.msk.f32.gmra.mxu2 %vm3995_vm12, %v3981_v21  ;;  %4559 = vrot.lane.b32.xlu1 %v7914_v53, %s6083_s16  ;;  %v3904_v63 = vadd.f32 %v7760_v61, %v3884_v1 }
 0x99d   : > { %4719 = vrot.lane.b32.xlu2 %v7914_v53, %s6082_s15 }
 0x99e   : > { %v3949_v57 = vmul.f32 1.442695, %v3904_v63  ;;  %vm3920_vm4 = vcmp.gt.f32.partialorder %v3904_v63, 0.0 }
 0x9a0   : > { %v5954_v58 = vpop.eup %5953  ;;  %v4067_v5 = vpop.f32.mrf.mxu2 }
 0x9a1   : > { %v4068_v28 = vadd.f32 %v7843_v30, %v4067_v5  ;;  %v5471_v47 = vadd.f32 -1.0, %v5954_v58  ;;  %v5956_v56 = vpop.eup %5955 }
 0x9a2   : > { %v5472_v26 = vadd.f32 -1.0, %v5956_v56 }
 0x9a3   : > { %v5494_v45 = vmul.f32 -1.442695, %v4068_v28  ;;  %v3982_v20 = vsel %vm3918_vm2, %v3902_v33, %v5471_v47 }
 0x9a4   : > { %5487 = vmatmul.msk.f32.gmra.mxu2 %vm3995_vm12, %v3982_v20  ;;  %v3983_v24 = vsel %vm3919_vm3, %v3903_v8, %v5472_v26 }
 0x9a5   : > { %5957 = vpow2.f32 %v5494_v45 }
 0x9a6   : > { %5959 = vpow2.f32 %v3949_v57 }
 0x9a8   : > { %v4070_v31 = vpop.f32.mrf.mxu2 }
 0x9a9   : > { %v4071_v23 = vadd.f32 %v7843_v30, %v4070_v31 }
 0x9ab   : > { %v5958_v22 = vpop.eup %5957  ;;  %v5495_v41 = vmul.f32 -1.442695, %v4071_v23 }
 0x9ac   : > { %v5960_v62 = vpop.eup %5959  ;;  %v4159_v44 = vadd.f32 1.0, %v5958_v22  ;;  %5488 = vmatmul.msk.f32.gmra.mxu2 %vm3995_vm12, %v3983_v24 }
 0x9ad   : > { %5961 = vpow2.f32 %v5495_v41  ;;  %v5473_v32 = vadd.f32 -1.0, %v5960_v62 }
 0x9ae   : > { %5963 = vrcp.f32 %v4159_v44  ;;  %v4214_v46 = vand.u32 2147483648, %v4159_v44  ;;  %v4212_v25 = vand.u32 2147483647, %v4159_v44  ;;  %vm4208_vm6 = vweird.f32 %v4159_v44 }
 0x9af   : > { %v3984_v4 = vsel %vm3920_vm4, %v3904_v63, %v5473_v32 }
 0x9b0   : > { %v4215_v52 = vor.u32 1.1754944e-38, %v4214_v46  ;;  %vm4213_vm8 = vcmp.eq.f32.partialorder %v4212_v25, 8.507059e+37 }
 0x9b3   : > { %v5962_v10 = vpop.eup %5961 }
 0x9b4   : > { %v5964_v40 = vpop.eup %5963  ;;  %v4160_v13 = vadd.f32 1.0, %v5962_v10  ;;  %5489 = vmatmul.msk.f32.gmra.mxu2 %vm3995_vm12, %v3984_v4 }
 0x9b5   : > { %v4204_v15 = vmul.f32 %v5964_v40, %v4159_v44  ;;  %vm4209_vm5 = vweird.f32 %v5964_v40 }
 0x9b6   : > { %5965 = vrcp.f32 %v4160_v13  ;;  %vm4210_vm7 = vmor %vm4208_vm6, %vm4209_vm5  ;;  %v4229_v16 = vand.u32 2147483648, %v4160_v13  ;;  %v4227_v3 = vand.u32 2147483647, %v4160_v13  ;;  %vm4223_vm10 = vweird.f32 %v4160_v13 }
 0x9b7   : > { %v4205_v18 = vsub.f32 1.0, %v4204_v15 }
 0x9b8   : > { %v4230_v50 = vor.u32 1.1754944e-38, %v4229_v16  ;;  %vm4228_vm13 = vcmp.eq.f32.partialorder %v4227_v3, 8.507059e+37 }
 0x9b9   : > { %v4206_v34 = vmul.f32 %v5964_v40, %v4205_v18 }
 0x9bb   : > { %v4207_v60 = vadd.f32 %v5964_v40, %v4206_v34 }
 0x9bc   : > { %v5966_v6 = vpop.eup %5965 }
 0x9bd   : > { %v4211_v8 = vsel %vm4210_vm7, %v5964_v40, %v4207_v60  ;;  %v4219_v55 = vmul.f32 %v5966_v6, %v4160_v13  ;;  %vm4224_vm9 = vweird.f32 %v5966_v6 }
 0x9be   : > { %v7928_v37 = vsel %vm4213_vm8, %v4215_v52, %v4211_v8  ;;  %vm4225_vm11 = vmor %vm4223_vm10, %vm4224_vm9 }
 0x9bf   : > { %v4511_v33 = vmul.f32 %v7865_v54, %v7928_v37  ;;  %v4220_v51 = vsub.f32 1.0, %v4219_v55  ;;  %v4468_v54 = vpop.permute.xlu0 %4467 }
 0x9c1   : > { %4897 = vrot.lane.b32.xlu2 %v4511_v33, %s6081_s25  ;;  %v7934_v49 = vmul.f32 %v4511_v33, %v7720_v48  ;;  %v4221_v43 = vmul.f32 %v5966_v6, %v4220_v51  ;;  %v4470_v51 = vpop.permute.xlu2 %4469 }
 0x9c2   : > { %v3609_v39 = vpop.xlane.xlu1 %3608 }
 0x9c3   : > { %5967 = vrcp.f32 %v3609_v39  ;;  %4721 = vrot.lane.b32.xlu1 %v7934_v49, %s6082_s15  ;;  %4561 = vrot.lane.b32.xlu0 %v7934_v49, %s6083_s16  ;;  %v4222_v59 = vadd.f32 %v5966_v6, %v4221_v43 }
 0x9c5   : > { %v4226_v35 = vsel %vm4225_vm11, %v5966_v6, %v4222_v59 }
 0x9c6   : > { %v7940_v48 = vsel %vm4228_vm13, %v4230_v50, %v4226_v35 }
 0x9c7   : > { %v4512_v1 = vmul.f32 %v4468_v54, %v7940_v48 }
 0x9c9   : > { %v5968_v21 = vpop.eup %5967  ;;  %v7944_v63 = vmul.f32 %v4512_v1, %v7790_v14 }
 0x9ca   : > { %v3885_v58 = vmul.f32 %v5968_v21, %v7878_v38 }
 0x9cb   : > { %4563 = vrot.lane.b32.xlu2 %v7944_v63, %s6083_s16  ;;  %4899 = vrot.lane.b32.xlu1 %v4512_v1, %s6081_s25 }
 0x9cc   : > { %4723 = vrot.lane.b32.xlu0 %v7944_v63, %s6082_s15  ;;  %v3905_v5 = vadd.f32 %v7760_v61, %v3885_v58 }
 0x9ce   : > { %v3951_v28 = vmul.f32 1.442695, %v3905_v5  ;;  %vm3921_vm14 = vcmp.gt.f32.partialorder %v3905_v5, 0.0 }
 0x9d0   : > { %5969 = vpow2.f32 %v3951_v28 }
 0x9d6   : > { %v5970_v47 = vpop.eup %5969 }
 0x9d7   : > { %v5474_v57 = vadd.f32 -1.0, %v5970_v47 }
 0x9d9   : > { %v3985_v45 = vsel %vm3921_vm14, %v3905_v5, %v5474_v57 }
 0x9da   : > { %5490 = vmatmul.msk.f32.gmra.mxu2 %vm3995_vm12, %v3985_v45  ;;  %v4073_v14 = vpop.f32.mrf.mxu2 }
 0x9db   : > { %v4074_v38 = vadd.f32 %v7843_v30, %v4073_v14 }
 0x9dd   : > { %v5496_v20 = vmul.f32 -1.442695, %v4074_v38 }
 0x9df   : > { %5971 = vpow2.f32 %v5496_v20 }
 0x9e2   : > { %v4076_v56 = vpop.f32.mrf.mxu2 }
 0x9e3   : > { %v4077_v26 = vadd.f32 %v7843_v30, %v4076_v56 }
 0x9e5   : > { %v5972_v31 = vpop.eup %5971  ;;  %v5497_v23 = vmul.f32 -1.442695, %v4077_v26 }
 0x9e6   : > { %v4161_v22 = vadd.f32 1.0, %v5972_v31 }
 0x9e7   : > { %5973 = vpow2.f32 %v5497_v23 }
 0x9e8   : > { %5975 = vrcp.f32 %v4161_v22  ;;  %v4244_v13 = vand.u32 2147483648, %v4161_v22  ;;  %v4242_v46 = vand.u32 2147483647, %v4161_v22  ;;  %vm4238_vm0 = vweird.f32 %v4161_v22 }
 0x9ea   : > { %v4079_v61 = vpop.f32.mrf.mxu2  ;;  %v4245_v8 = vor.u32 1.1754944e-38, %v4244_v13  ;;  %vm4243_vm1 = vcmp.eq.f32.partialorder %v4242_v46, 8.507059e+37  ;;  %v4474_v13 = vpop.permute.xlu0 %4473 }
 0x9eb   : > { %v4080_v41 = vadd.f32 %v7843_v30, %v4079_v61 }
 0x9ed   : > { %v5974_v24 = vpop.eup %5973  ;;  %v5498_v62 = vmul.f32 -1.442695, %v4080_v41 }
 0x9ee   : > { %v5976_v44 = vpop.eup %5975  ;;  %v4162_v32 = vadd.f32 1.0, %v5974_v24 }
 0x9ef   : > { %v4234_v10 = vmul.f32 %v5976_v44, %v4161_v22  ;;  %5977 = vpow2.f32 %v5498_v62  ;;  %vm4239_vm12 = vweird.f32 %v5976_v44 }
 0x9f0   : > { %5979 = vrcp.f32 %v4162_v32  ;;  %vm4240_vm15 = vmor %vm4238_vm0, %vm4239_vm12  ;;  %v4257_v39 = vand.u32 2147483647, %v4162_v32  ;;  %v4259_v59 = vand.u32 2147483648, %v4162_v32  ;;  %vm4253_vm3 = vweird.f32 %v4162_v32 }
 0x9f1   : > { %v4235_v4 = vsub.f32 1.0, %v4234_v10 }
 0x9f2   : > { %v4082_v40 = vpop.f32.mrf.mxu2  ;;  %v4260_v47 = vor.u32 1.1754944e-38, %v4259_v59  ;;  %vm4258_vm5 = vcmp.eq.f32.partialorder %v4257_v39, 8.507059e+37 }
 0x9f3   : > { %v4083_v15 = vadd.f32 %v7843_v30, %v4082_v40  ;;  %v4236_v18 = vmul.f32 %v5976_v44, %v4235_v4 }
 0x9f5   : > { %v5978_v34 = vpop.eup %5977  ;;  %v5499_v25 = vmul.f32 -1.442695, %v4083_v15  ;;  %v4237_v60 = vadd.f32 %v5976_v44, %v4236_v18 }
 0x9f6   : > { %v5980_v6 = vpop.eup %5979  ;;  %v4163_v52 = vadd.f32 1.0, %v5978_v34 }
 0x9f7   : > { %v4249_v55 = vmul.f32 %v5980_v6, %v4162_v32  ;;  %5981 = vpow2.f32 %v5499_v25  ;;  %v4241_v33 = vsel %vm4240_vm15, %v5976_v44, %v4237_v60  ;;  %vm4254_vm2 = vweird.f32 %v5980_v6 }
 0x9f8   : > { %5983 = vrcp.f32 %v4163_v52  ;;  %v7958_v16 = vsel %vm4243_vm1, %v4245_v8, %v4241_v33  ;;  %vm4255_vm4 = vmor %vm4253_vm3, %vm4254_vm2  ;;  %v4274_v26 = vand.u32 2147483648, %v4163_v52  ;;  %v4272_v61 = vand.u32 2147483647, %v4163_v52 }
 0x9f9   : > { %v4250_v43 = vsub.f32 1.0, %v4249_v55  ;;  %v4513_v3 = vmul.f32 %v4470_v51, %v7958_v16  ;;  %vm4268_vm7 = vweird.f32 %v4163_v52 }
 0x9fa   : > { %v4085_v54 = vpop.f32.mrf.mxu2  ;;  %vm4273_vm9 = vcmp.eq.f32.partialorder %v4272_v61, 8.507059e+37 }
 0x9fb   : > { %v4251_v50 = vmul.f32 %v5980_v6, %v4250_v43  ;;  %v4086_v35 = vadd.f32 %v7843_v30, %v4085_v54  ;;  %4901 = vrot.lane.b32.xlu0 %v4513_v3, %s6081_s25  ;;  %v7964_v1 = vmul.f32 %v4513_v3, %v7805_v12  ;;  %v4472_v12 = vpop.permute.xlu1 %4471  ;;  %v4476_v43 = vpop.permute.xlu2 %4475 }
 0x9fd   : > { %v5982_v21 = vpop.eup %5981  ;;  %v4252_v58 = vadd.f32 %v5980_v6, %v4251_v50  ;;  %v5500_v5 = vmul.f32 -1.442695, %v4086_v35  ;;  %4725 = vrot.lane.b32.xlu2 %v7964_v1, %s6082_s15  ;;  %4565 = vrot.lane.b32.xlu1 %v7964_v1, %s6083_s16 }
 0x9fe   : > { %v5984_v28 = vpop.eup %5983  ;;  %v4164_v57 = vadd.f32 1.0, %v5982_v21 }
 0x9ff   : > { %v4256_v45 = vsel %vm4255_vm4, %v5980_v6, %v4252_v58  ;;  %v4264_v14 = vmul.f32 %v5984_v28, %v4163_v52  ;;  %5985 = vpow2.f32 %v5500_v5  ;;  %vm4269_vm6 = vweird.f32 %v5984_v28 }
 0xa00   : > { %v7970_v38 = vsel %vm4258_vm5, %v4260_v47, %v4256_v45  ;;  %5987 = vrcp.f32 %v4164_v57  ;;  %vm4270_vm8 = vmor %vm4268_vm7, %vm4269_vm6  ;;  %v4289_v34 = vand.u32 2147483648, %v4164_v57  ;;  %v4287_v6 = vand.u32 2147483647, %v4164_v57 }
 0xa01   : > { %v4514_v20 = vmul.f32 %v4472_v12, %v7970_v38  ;;  %v4265_v56 = vsub.f32 1.0, %v4264_v14  ;;  %vm4283_vm11 = vweird.f32 %v4164_v57 }
 0xa02   : > { %v4290_v55 = vor.u32 1.1754944e-38, %v4289_v34  ;;  %vm4288_vm14 = vcmp.eq.f32.partialorder %v4287_v6, 8.507059e+37 }
 0xa03   : > { %v7974_v31 = vmul.f32 %v4514_v20, %v7825_v11  ;;  %v4088_v23 = vpop.f32.mrf.mxu2  ;;  %v4266_v22 = vmul.f32 %v5984_v28, %v4265_v56  ;;  %v4275_v11 = vor.u32 1.1754944e-38, %v4274_v26 }
 0xa04   : > { %v4089_v41 = vadd.f32 %v7843_v30, %v4088_v23 }
 0xa05   : > { %v5986_v24 = vpop.eup %5985  ;;  %4567 = vrot.lane.b32.xlu0 %v7974_v31, %s6083_s16  ;;  %4903 = vrot.lane.b32.xlu2 %v4514_v20, %s6081_s25  ;;  %v4267_v62 = vadd.f32 %v5984_v28, %v4266_v22 }
 0xa06   : > { %v5988_v44 = vpop.eup %5987  ;;  %v4165_v32 = vadd.f32 1.0, %v5986_v24  ;;  %v5501_v10 = vmul.f32 -1.442695, %v4089_v41  ;;  %4727 = vrot.lane.b32.xlu1 %v7974_v31, %s6082_s15 }
 0xa07   : > { %v4279_v4 = vmul.f32 %v5988_v44, %v4164_v57  ;;  %v4271_v40 = vsel %vm4270_vm8, %v5984_v28, %v4267_v62  ;;  %vm4284_vm10 = vweird.f32 %v5988_v44 }
 0xa08   : > { %5989 = vrcp.f32 %v4165_v32  ;;  %v7982_v15 = vsel %vm4273_vm9, %v4275_v11, %v4271_v40  ;;  %vm4285_vm13 = vmor %vm4283_vm11, %vm4284_vm10  ;;  %v4304_v50 = vand.u32 2147483648, %v4165_v32  ;;  %v4302_v58 = vand.u32 2147483647, %v4165_v32  ;;  %v4480_v40 = vpop.permute.xlu0 %4479 }
 0xa09   : > { %5991 = vpow2.f32 %v5501_v10  ;;  %v4515_v18 = vmul.f32 %v4474_v13, %v7982_v15  ;;  %v4280_v46 = vsub.f32 1.0, %v4279_v4  ;;  %vm4298_vm0 = vweird.f32 %v4165_v32 }
 0xa0a   : > { %v4305_v28 = vor.u32 1.1754944e-38, %v4304_v50  ;;  %vm4303_vm1 = vcmp.eq.f32.partialorder %v4302_v58, 8.507059e+37 }
 0xa0b   : > { %v7986_v25 = vmul.f32 %v4515_v18, %v7802_v36  ;;  %v4281_v60 = vmul.f32 %v5988_v44, %v4280_v46 }
 0xa0d   : > { %4729 = vrot.lane.b32.xlu0 %v7986_v25, %s6082_s15  ;;  %4569 = vrot.lane.b32.xlu2 %v7986_v25, %s6083_s16  ;;  %v4282_v52 = vadd.f32 %v5988_v44, %v4281_v60 }
 0xa0e   : > { %v5990_v8 = vpop.eup %5989  ;;  %4905 = vrot.lane.b32.xlu1 %v4515_v18, %s6081_s25 }
 0xa0f   : > { %v5992_v33 = vpop.eup %5991  ;;  %v4294_v51 = vmul.f32 %v5990_v8, %v4165_v32  ;;  %v4286_v36 = vsel %vm4285_vm13, %v5988_v44, %v4282_v52  ;;  %vm4299_vm12 = vweird.f32 %v5990_v8 }
 0xa10   : > { %v4166_v3 = vadd.f32 1.0, %v5992_v33  ;;  %v7993_v39 = vsel %vm4288_vm14, %v4290_v55, %v4286_v36  ;;  %vm4300_vm15 = vmor %vm4298_vm0, %vm4299_vm12 }
 0xa11   : > { %v4295_v59 = vsub.f32 1.0, %v4294_v51  ;;  %v4516_v54 = vmul.f32 %v4476_v43, %v7993_v39  ;;  %v8025_v51 = vpop.permute.xlu0 %4485 }
 0xa12   : > { %5993 = vrcp.f32 %v4166_v3  ;;  %v4319_v23 = vand.u32 2147483648, %v4166_v3  ;;  %v4317_v41 = vand.u32 2147483647, %v4166_v3  ;;  %vm4313_vm3 = vweird.f32 %v4166_v3 }
 0xa13   : > { %v7997_v35 = vmul.f32 %v4516_v54, %v7817_v42  ;;  %v4296_v21 = vmul.f32 %v5990_v8, %v4295_v59  ;;  %v4478_v42 = vpop.permute.xlu1 %4477 }
 0xa14   : > { %vm4318_vm5 = vcmp.eq.f32.partialorder %v4317_v41, 8.507059e+37 }
 0xa15   : > { %4907 = vrot.lane.b32.xlu0 %v4516_v54, %s6081_s25  ;;  %4731 = vrot.lane.b32.xlu2 %v7997_v35, %s6082_s15  ;;  %v4297_v5 = vadd.f32 %v5990_v8, %v4296_v21 }
 0xa16   : > { %4571 = vrot.lane.b32.xlu1 %v7997_v35, %s6083_s16 }
 0xa17   : > { %v4301_v47 = vsel %vm4300_vm15, %v5990_v8, %v4297_v5 }
 0xa18   : > { %v5994_v57 = vpop.eup %5993  ;;  %v8004_v45 = vsel %vm4303_vm1, %v4305_v28, %v4301_v47 }
 0xa19   : > { %v4309_v14 = vmul.f32 %v5994_v57, %v4166_v3  ;;  %v8007_v12 = vmul.f32 %v4478_v42, %v8004_v45  ;;  %vm4314_vm2 = vweird.f32 %v5994_v57 }
 0xa1a   : > { %vm4315_vm4 = vmor %vm4313_vm3, %vm4314_vm2 }
 0xa1b   : > { %v8011_v20 = vmul.f32 %v8007_v12, %v7846_v29  ;;  %v4310_v56 = vsub.f32 1.0, %v4309_v14  ;;  %v4320_v29 = vor.u32 1.1754944e-38, %v4319_v23 }
 0xa1c   : > { %v4106_v26 = vpop.f32.mrf.mxu3 }
 0xa1d   : > { %v4107_v22 = vadd.f32 %v7843_v30, %v4106_v26  ;;  %v4311_v61 = vmul.f32 %v5994_v57, %v4310_v56 }
 0xa1e   : > { %4733 = vrot.lane.b32.xlu1 %v8011_v20, %s6082_s15 }
 0xa1f   : > { %v4091_v24 = vpop.f32.mrf.mxu2  ;;  %v5507_v62 = vmul.f32 -1.442695, %v4107_v22  ;;  %v4312_v44 = vadd.f32 %v5994_v57, %v4311_v61 }
 0xa20   : > { %v4092_v32 = vadd.f32 %v7843_v30, %v4091_v24 }
 0xa21   : > { %5995 = vpow2.f32 %v5507_v62  ;;  %v4316_v10 = vsel %vm4315_vm4, %v5994_v57, %v4312_v44  ;;  %v4492_v62 = vpop.permute.xlu0 %4491 }
 0xa22   : > { %v5502_v11 = vmul.f32 -1.442695, %v4092_v32  ;;  %v8017_v4 = vsel %vm4318_vm5, %v4320_v29, %v4316_v10 }
 0xa23   : > { %v8020_v13 = vmul.f32 %v4480_v40, %v8017_v4 }
 0xa24   : > { %5997 = vpow2.f32 %v5502_v11 }
 0xa26   : > { %4911 = vrot.lane.b32.xlu1 %v8020_v13, %s6081_s25 }
 0xa27   : > { %v5996_v18 = vpop.eup %5995  ;;  %v4094_v46 = vpop.f32.mrf.mxu2 }
 0xa28   : > { %v4172_v34 = vadd.f32 1.0, %v5996_v18  ;;  %v4095_v60 = vadd.f32 %v7843_v30, %v4094_v46 }
 0xa2a   : > { %v5998_v6 = vpop.eup %5997  ;;  %5999 = vrcp.f32 %v4172_v34  ;;  %v5503_v52 = vmul.f32 -1.442695, %v4095_v60  ;;  %v4409_v58 = vand.u32 2147483648, %v4172_v34  ;;  %v4407_v47 = vand.u32 2147483647, %v4172_v34 }
 0xa2b   : > { %v4167_v8 = vadd.f32 1.0, %v5998_v6  ;;  %vm4403_vm7 = vweird.f32 %v4172_v34 }
 0xa2c   : > { %6001 = vpow2.f32 %v5503_v52  ;;  %v4410_v56 = vor.u32 1.1754944e-38, %v4409_v58  ;;  %vm4408_vm10 = vcmp.eq.f32.partialorder %v4407_v47, 8.507059e+37  ;;  %v4484_v58 = vpop.permute.xlu1 %4483 }
 0xa2d   : > { %6003 = vrcp.f32 %v4167_v8  ;;  %v4334_v26 = vand.u32 2147483648, %v4167_v8  ;;  %v4332_v61 = vand.u32 2147483647, %v4167_v8  ;;  %vm4328_vm11 = vweird.f32 %v4167_v8 }
 0xa2f   : > { %v4097_v55 = vpop.f32.mrf.mxu2  ;;  %vm4333_vm14 = vcmp.eq.f32.partialorder %v4332_v61, 8.507059e+37 }
 0xa30   : > { %v6000_v33 = vpop.eup %5999  ;;  %v4098_v36 = vadd.f32 %v7843_v30, %v4097_v55 }
 0xa31   : > { %v4399_v43 = vmul.f32 %v6000_v33, %v4172_v34  ;;  %vm4404_vm6 = vweird.f32 %v6000_v33  ;;  %v4482_v34 = vpop.permute.xlu2 %4481 }
 0xa32   : > { %v6002_v3 = vpop.eup %6001  ;;  %v5504_v59 = vmul.f32 -1.442695, %v4098_v36  ;;  %vm4405_vm8 = vmor %vm4403_vm7, %vm4404_vm6 }
 0xa33   : > { %v6004_v54 = vpop.eup %6003  ;;  %v4400_v50 = vsub.f32 1.0, %v4399_v43  ;;  %v4168_v21 = vadd.f32 1.0, %v6002_v3 }
 0xa34   : > { %v4324_v5 = vmul.f32 %v6004_v54, %v4167_v8  ;;  %6005 = vpow2.f32 %v5504_v59  ;;  %vm4329_vm9 = vweird.f32 %v6004_v54 }
 0xa35   : > { %6007 = vrcp.f32 %v4168_v21  ;;  %v4401_v28 = vmul.f32 %v6000_v33, %v4400_v50  ;;  %vm4330_vm13 = vmor %vm4328_vm11, %vm4329_vm9  ;;  %v4349_v55 = vand.u32 2147483648, %v4168_v21  ;;  %vm4343_vm0 = vweird.f32 %v4168_v21 }
 0xa36   : > { %v4325_v57 = vsub.f32 1.0, %v4324_v5 }
 0xa37   : > { %v4100_v42 = vpop.f32.mrf.mxu2  ;;  %v4402_v14 = vadd.f32 %v6000_v33, %v4401_v28  ;;  %v4350_v50 = vor.u32 1.1754944e-38, %v4349_v55 }
 0xa38   : > { %v4101_v23 = vadd.f32 %v7843_v30, %v4100_v42  ;;  %v4326_v22 = vmul.f32 %v6004_v54, %v4325_v57  ;;  %v4335_v30 = vor.u32 1.1754944e-38, %v4334_v26 }
 0xa39   : > { %v4406_v41 = vsel %vm4405_vm8, %v6000_v33, %v4402_v14  ;;  %v4488_v42 = vpop.permute.xlu2 %4487 }
 0xa3a   : > { %v6006_v24 = vpop.eup %6005  ;;  %v5505_v44 = vmul.f32 -1.442695, %v4101_v23  ;;  %v8029_v32 = vsel %vm4408_vm10, %v4410_v56, %v4406_v41  ;;  %v4327_v29 = vadd.f32 %v6004_v54, %v4326_v22 }
 0xa3b   : > { %v6008_v10 = vpop.eup %6007  ;;  %v4169_v11 = vadd.f32 1.0, %v6006_v24  ;;  %v8032_v40 = vmul.f32 %v4492_v62, %v8029_v32  ;;  %v8066_v62 = vld [vmem:[%s6187_s29 + $0x48] sm:$0xff] }
 0xa3c   : > { %v4339_v18 = vmul.f32 %v6008_v10, %v4168_v21  ;;  %6009 = vpow2.f32 %v5505_v44  ;;  %v4331_v46 = vsel %vm4330_vm13, %v6004_v54, %v4327_v29  ;;  %vm4344_vm12 = vweird.f32 %v6008_v10  ;;  %v8074_v44 = vpop.permute.xlu1 %4489 }
 0xa3d   : > { %6011 = vrcp.f32 %v4169_v11  ;;  %v8036_v60 = vmul.f32 %v8032_v40, %v7851_v2  ;;  %v8038_v6 = vsel %vm4333_vm14, %v4335_v30, %v4331_v46  ;;  %v4347_v2 = vand.u32 2147483647, %v4168_v21  ;;  %vm4345_vm15 = vmor %vm4343_vm0, %vm4344_vm12 }
 0xa3e   : > { %v4340_v52 = vsub.f32 1.0, %v4339_v18  ;;  %v8041_v8 = vmul.f32 %v4482_v34, %v8038_v6  ;;  %v4364_v21 = vand.u32 2147483648, %v4169_v11  ;;  %v4362_v26 = vand.u32 2147483647, %v4169_v11 }
 0xa3f   : > { %4747 = vrot.lane.b32.xlu0 %v8036_v60, %s6082_s15  ;;  %4587 = vrot.lane.b32.xlu2 %v8036_v60, %s6083_s16  ;;  %vm4348_vm1 = vcmp.eq.f32.partialorder %v4347_v2, 8.507059e+37  ;;  %vm4358_vm3 = vweird.f32 %v4169_v11  ;;  %v4718_v2 = vpop.permute.xlu0 %4717  ;;  %vm4941_vm12 = vcmask 7168   ;;  %vm4958_vm0 = vcmask 15360  }
 0xa40   : > { %v8049_v33 = vmul.f32 %v8041_v8, %v7831_v9  ;;  %v4341_v36 = vmul.f32 %v6008_v10, %v4340_v52  ;;  %v4365_v61 = vor.u32 1.1754944e-38, %v4364_v21  ;;  %vm4363_vm5 = vcmp.eq.f32.partialorder %v4362_v26, 8.507059e+37 }
 0xa42   : > { %v6010_v43 = vpop.eup %6009  ;;  %4577 = vrot.lane.b32.xlu1 %v8049_v33, %s6083_s16  ;;  %v4342_v3 = vadd.f32 %v6008_v10, %v4341_v36 }
 0xa43   : > { %v6012_v59 = vpop.eup %6011  ;;  %v4170_v54 = vadd.f32 1.0, %v6010_v43 }
 0xa44   : > { %v4354_v5 = vmul.f32 %v6012_v59, %v4169_v11  ;;  %v4346_v28 = vsel %vm4345_vm15, %v6008_v10, %v4342_v3  ;;  %vm4359_vm2 = vweird.f32 %v6012_v59  ;;  %vm4975_vm15 = vcmask 23552  }
 0xa45   : > { %6013 = vrcp.f32 %v4170_v54  ;;  %v8053_v9 = vsel %vm4348_vm1, %v4350_v50, %v4346_v28  ;;  %vm4360_vm4 = vmor %vm4358_vm3, %vm4359_vm2  ;;  %v4379_v10 = vand.u32 2147483648, %v4170_v54  ;;  %v4377_v18 = vand.u32 2147483647, %v4170_v54  ;;  %v8115_v28 = vld [vmem:[%s6187_s29 + $0x60] sm:$0xff] }
 0xa46   : > { %v4520_v47 = vmul.f32 %v4484_v58, %v8053_v9  ;;  %v4355_v57 = vsub.f32 1.0, %v4354_v5  ;;  %vm4373_vm7 = vweird.f32 %v4170_v54  ;;  %vm4992_vm1 = vcmask 31744  }
 0xa47   : > { %4573 = vrot.lane.b32.xlu0 %v8011_v20, %s6083_s16  ;;  %4909 = vrot.lane.b32.xlu2 %v8007_v12, %s6081_s25  ;;  %v4380_v34 = vor.u32 1.1754944e-38, %v4379_v10  ;;  %vm4378_vm9 = vcmp.eq.f32.partialorder %v4377_v18, 8.507059e+37  ;;  %vm5009_vm2 = vcmask 39936   ;;  %vm5026_vm3 = vcmask 64512  }
 0xa48   : > { %v8061_v14 = vmul.f32 %v4520_v47, %v7868_v27  ;;  %v4356_v56 = vmul.f32 %v6012_v59, %v4355_v57  ;;  %v8070_v27 = vmul.f32 %v8066_v62, %v8020_v13  ;;  %v8082_v13 = vpop.permute.xlu2 %4557 }
 0xa4a   : > { %4739 = vrot.lane.b32.xlu1 %v8061_v14, %s6082_s15  ;;  %v4357_v23 = vadd.f32 %v6012_v59, %v4356_v56 }
 0xa4b   : > { %v6014_v22 = vpop.eup %6013 }
 0xa4c   : > { %v4369_v41 = vmul.f32 %v6014_v22, %v4170_v54  ;;  %v4361_v24 = vsel %vm4360_vm4, %v6012_v59, %v4357_v23  ;;  %vm4374_vm6 = vweird.f32 %v6014_v22 }
 0xa4d   : > { %v8072_v12 = vsel %vm4363_vm5, %v4365_v61, %v4361_v24  ;;  %vm4375_vm8 = vmor %vm4373_vm7, %vm4374_vm6 }
 0xa4e   : > { %v4370_v29 = vsub.f32 1.0, %v4369_v41  ;;  %v4521_v11 = vmul.f32 %v8025_v51, %v8072_v12  ;;  %v8094_v51 = vpop.permute.xlu1 %4893 }
 0xa4f   : > { %4735 = vrot.lane.b32.xlu0 %v8070_v27, %s6082_s15  ;;  %4575 = vrot.lane.b32.xlu2 %v8070_v27, %s6083_s16 }
 0xa50   : > { %v4371_v30 = vmul.f32 %v6014_v22, %v4370_v29  ;;  %v8102_v3 = vpop.permute.xlu2 %4719  ;;  %v8118_v57 = vmul.f32 %v8115_v28, %v4521_v11 }
 0xa52   : > { %4917 = vrot.lane.b32.xlu1 %v4521_v11, %s6081_s25  ;;  %v4372_v46 = vadd.f32 %v6014_v22, %v4371_v30 }
 0xa54   : > { %v4376_v52 = vsel %vm4375_vm8, %v6014_v22, %v4372_v46  ;;  %v4765_v22 = vsub.f32 %v7896_v19, %v4718_v2 }
 0xa55   : > { %v8085_v55 = vsel %vm4378_vm9, %v4380_v34, %v4376_v52  ;;  %v8136_v34 = vld [vmem:[%s6187_s29 + $0x10] sm:$0xff] }
 0xa56   : > { %v8088_v36 = vmul.f32 %v4488_v42, %v8085_v55  ;;  %v4560_v50 = vpop.permute.xlu1 %4559  ;;  %v4781_v11 = vmul.f32 0.1, %v4765_v22  ;;  %v8140_v52 = vmul.f32 %v8136_v34, %v7928_v37 }
 0xa57   : > { %4913 = vrot.lane.b32.xlu0 %v8041_v8, %s6081_s25  ;;  %4737 = vrot.lane.b32.xlu2 %v8049_v33, %s6082_s15  ;;  %v6020_v8 = vld [vmem:[%s8561_s10] ss:$0 sm:$0xff] }
 0xa58   : > { %v8098_v43 = vmul.f32 %v8088_v36, %v7854_v17  ;;  %v8110_v17 = vpop.permute.xlu0 %4895  ;;  %v8112_v5 = vpop.permute.xlu2 %4897 }
 0xa5a   : > { %4583 = vrot.lane.b32.xlu1 %v8098_v43, %s6083_s16 }
 0xa5d   : > { %v4103_v59 = vpop.f32.mrf.mxu2 }
 0xa5e   : > { %v4104_v54 = vadd.f32 %v6020_v8, %v4103_v59 }
 0xa5f   : > { %4579 = vrot.lane.b32.xlu0 %v8061_v14, %s6083_s16  ;;  %4915 = vrot.lane.b32.xlu2 %v4520_v47, %s6081_s25  ;;  %v8124_v47 = vpop.permute.xlu1 %4721 }
 0xa60   : > { %v5506_v58 = vmul.f32 -1.442695, %v4104_v54  ;;  %v4562_v56 = vpop.permute.xlu0 %4561  ;;  %v8126_v26 = vpop.permute.xlu2 %4563 }
 0xa61   : > { %v4607_v2 = vsub.f32 %v8140_v52, %v4562_v56 }
 0xa62   : > { %6015 = vpow2.f32 %v5506_v58 }
 0xa63   : > { %v4623_v22 = vmul.f32 0.1, %v4607_v2 }
 0xa67   : > { %4741 = vrot.lane.b32.xlu0 %v8118_v57, %s6082_s15  ;;  %4581 = vrot.lane.b32.xlu2 %v8118_v57, %s6083_s16  ;;  %v8131_v61 = vpop.permute.xlu1 %4899 }
 0xa68   : > { %v6016_v42 = vpop.eup %6015  ;;  %v8133_v24 = vpop.permute.xlu2 %4725 }
 0xa69   : > { %v4171_v21 = vadd.f32 1.0, %v6016_v42  ;;  %v4724_v29 = vpop.permute.xlu0 %4723 }
 0xa6b   : > { %6017 = vrcp.f32 %v4171_v21  ;;  %v4394_v30 = vand.u32 2147483648, %v4171_v21  ;;  %v4392_v46 = vand.u32 2147483647, %v4171_v21  ;;  %vm4388_vm11 = vweird.f32 %v4171_v21 }
 0xa6d   : > { %v4395_v59 = vor.u32 1.1754944e-38, %v4394_v30  ;;  %vm4393_vm14 = vcmp.eq.f32.partialorder %v4392_v46, 8.507059e+37  ;;  %v4768_v30 = vsub.f32 %v7944_v63, %v4724_v29 }
 0xa6f   : > { %4743 = vrot.lane.b32.xlu2 %v8098_v43, %s6082_s15  ;;  %v4566_v8 = vpop.permute.xlu1 %4565  ;;  %v4784_v2 = vmul.f32 0.1, %v4768_v30 }
 0xa71   : > { %v6018_v23 = vpop.eup %6017  ;;  %v8146_v42 = vpop.permute.xlu0 %4901 }
 0xa72   : > { %v4384_v41 = vmul.f32 %v6018_v23, %v4171_v21  ;;  %vm4389_vm10 = vweird.f32 %v6018_v23  ;;  %8630 = vst [vmem:[#allocation7_spill] sm:$0xff] %v8146_v42  ;;  %v8155_v21 = vld [vmem:[%s6187_s29 + $0x70] sm:$0xff] }
 0xa73   : > { %vm4390_vm13 = vmor %vm4388_vm11, %vm4389_vm10 }
 0xa74   : > { %v4385_v10 = vsub.f32 1.0, %v4384_v41  ;;  %v8152_v41 = vpop.permute.xlu2 %4903 }
 0xa76   : > { %v4386_v18 = vmul.f32 %v6018_v23, %v4385_v10 }
 0xa77   : > { %4813 = vrot.lane.b32.xlu2 %v4781_v11, %s6084_s28 }
 0xa78   : > { %v4387_v19 = vadd.f32 %v6018_v23, %v4386_v18 }
 0xa79   : > { %v4568_v46 = vpop.permute.xlu0 %4567 }
 0xa7a   : > { %v4391_v54 = vsel %vm4390_vm13, %v6018_v23, %v4387_v19  ;;  %v8163_v23 = vld [vmem:[%s6187_s29] sm:$0xff]  ;;  %v4728_v19 = vpop.permute.xlu1 %4727 }
 0xa7b   : > { %v8144_v58 = vsel %vm4393_vm14, %v4395_v59, %v4391_v54  ;;  %v8167_v10 = vmul.f32 %v8163_v23, %v7891_v7 }
 0xa7c   : > { %v8150_v37 = vmul.f32 %v8074_v44, %v8144_v58  ;;  %v8170_v44 = vld [vmem:[%s6187_s29 + $0x8] sm:$0xff] }
 0xa7d   : > { %v8174_v11 = vmul.f32 %v8170_v44, %v7909_v0  ;;  %v4605_v18 = vsub.f32 %v8167_v10, %v8082_v13  ;;  %v4570_v0 = vpop.permute.xlu2 %4569  ;;  %v4766_v13 = vsub.f32 %v7914_v53, %v8102_v3 }
 0xa7e   : > { %v8159_v56 = vmul.f32 %v8155_v21, %v8150_v37 }
 0xa7f   : > { %4657 = vrot.lane.b32.xlu2 %v4623_v22, %s6085_s2  ;;  %v4606_v7 = vsub.f32 %v8174_v11, %v4560_v50  ;;  %v4621_v59 = vmul.f32 0.1, %v4605_v18  ;;  %v8185_v22 = vld [vmem:[%s6187_s29 + $0x28] sm:$0xff]  ;;  %v4767_v50 = vsub.f32 %v7934_v49, %v8124_v47  ;;  %v4782_v30 = vmul.f32 0.1, %v4766_v13 }
 0xa80   : > { %4585 = vrot.lane.b32.xlu0 %v8159_v56, %s6083_s16  ;;  %4745 = vrot.lane.b32.xlu1 %v8159_v56, %s6082_s15  ;;  %v8189_v42 = vmul.f32 %v8185_v22, %v7970_v38 }
 0xa81   : > { %v4622_v54 = vmul.f32 0.1, %v4606_v7  ;;  %v4783_v18 = vmul.f32 0.1, %v4767_v50  ;;  %v4730_v7 = vpop.permute.xlu0 %4729 }
 0xa82   : > { %v4610_v63 = vsub.f32 %v8189_v42, %v4568_v46  ;;  %v8199_v38 = vpop.permute.xlu1 %4905  ;;  %v8210_v46 = vld [vmem:[%s6187_s29 + $0x20] sm:$0xff]  ;;  %v4771_v3 = vsub.f32 %v7986_v25, %v4730_v7  ;;  %v4769_v25 = vsub.f32 %v7964_v1, %v8133_v24  ;;  %v8236_v7 = vld [vmem:[%s6187_s29 + $0x38] sm:$0xff] }
 0xa83   : > { %v8214_v53 = vmul.f32 %v8210_v46, %v7958_v16 }
 0xa84   : > { %v4626_v29 = vmul.f32 0.1, %v4610_v63 }
 0xa85   : > { %v4732_v49 = vpop.permute.xlu2 %4731 }
 0xa87   : > { %4819 = vrot.lane.b32.xlu2 %v4784_v2, %s6084_s28  ;;  %v8203_v2 = vld [vmem:[%s6187_s29 + $0x18] sm:$0xff] }
 0xa88   : > { %4655 = vrot.lane.b32.xlu0 %v4622_v54, %s6085_s2  ;;  %4653 = vrot.lane.b32.xlu1 %v4621_v59, %s6085_s2  ;;  %v8207_v59 = vmul.f32 %v8203_v2, %v7940_v48  ;;  %v4609_v48 = vsub.f32 %v8214_v53, %v4566_v8  ;;  %v4787_v54 = vmul.f32 0.1, %v4771_v3  ;;  %v8240_v3 = vmul.f32 %v8236_v7, %v7993_v39 }
 0xa89   : > { %v8250_v39 = vpop.permute.xlu0 %4907 }
 0xa8a   : > { %v4608_v47 = vsub.f32 %v8207_v59, %v8126_v26  ;;  %v4625_v13 = vmul.f32 0.1, %v4609_v48  ;;  %v4572_v16 = vpop.permute.xlu1 %4571  ;;  %v4785_v26 = vmul.f32 0.1, %v4769_v25 }
 0xa8b   : > { %v4612_v24 = vsub.f32 %v8240_v3, %v4572_v16  ;;  %v8257_v16 = vld [vmem:[%s6187_s29 + $0x78] sm:$0xff] }
 0xa8c   : > { %v4624_v63 = vmul.f32 0.1, %v4608_v47 }
 0xa8d   : > { %v4628_v47 = vmul.f32 0.1, %v4612_v24 }
 0xa8f   : > { %4663 = vrot.lane.b32.xlu2 %v4626_v29, %s6085_s2  ;;  %v4770_v29 = vsub.f32 %v7974_v31, %v4728_v19 }
 0xa90   : > { %4817 = vrot.lane.b32.xlu0 %v4783_v18, %s6084_s28  ;;  %4815 = vrot.lane.b32.xlu1 %v4782_v30, %s6084_s28  ;;  %v8229_v18 = vld [vmem:[%s6187_s29 + $0x30] sm:$0xff] }
 0xa91   : > { %v4786_v30 = vmul.f32 0.1, %v4770_v29  ;;  %v8233_v8 = vmul.f32 %v8229_v18, %v7982_v15  ;;  %v8261_v29 = vmul.f32 %v8257_v16, %v8029_v32 }
 0xa92   : > { %v4734_v19 = vpop.permute.xlu1 %4733 }
 0xa93   : > { %v4611_v31 = vsub.f32 %v8233_v8, %v4570_v0 }
 0xa95   : > { %v4627_v15 = vmul.f32 0.1, %v4611_v31 }
 0xa97   : > { %4825 = vrot.lane.b32.xlu2 %v4787_v54, %s6084_s28  ;;  %v4772_v54 = vsub.f32 %v7997_v35, %v4732_v49  ;;  %v8268_v49 = vld [vmem:[%s6187_s29 + $0x50] sm:$0xff] }
 0xa98   : > { %4661 = vrot.lane.b32.xlu0 %v4625_v13, %s6085_s2  ;;  %4659 = vrot.lane.b32.xlu1 %v4624_v63, %s6085_s2  ;;  %v4773_v63 = vsub.f32 %v8011_v20, %v4734_v19  ;;  %v8272_v31 = vmul.f32 %v8268_v49, %v8038_v6 }
 0xa99   : > { %v4588_v50 = vpop.permute.xlu2 %4587  ;;  %v4788_v0 = vmul.f32 0.1, %v4772_v54  ;;  %v8278_v54 = vmul.f32 %v8066_v62, %v8017_v4 }
 0xa9a   : > { %v8254_v13 = vpop.permute.xlu1 %4911  ;;  %v4789_v25 = vmul.f32 0.1, %v4773_v63  ;;  %v4620_v35 = vsub.f32 %v8261_v29, %v4588_v50 }
 0xaa0   : > { %4823 = vrot.lane.b32.xlu0 %v4786_v30, %s6084_s28  ;;  %4821 = vrot.lane.b32.xlu1 %v4785_v26, %s6084_s28 }
 0xaa1   : > { %v8244_v1 = vpop.permute.xlu2 %4909 }
 0xaa8   : > { %4667 = vrot.lane.b32.xlu0 %v4628_v47, %s6085_s2  ;;  %4665 = vrot.lane.b32.xlu1 %v4627_v15, %s6085_s2  ;;  %v4636_v15 = vmul.f32 0.1, %v4620_v35 }
 0xaa9   : > { %v4576_v48 = vpop.permute.xlu2 %4575 }
 0xaaa   : > { %v4614_v63 = vsub.f32 %v8278_v54, %v4576_v48 }
 0xab0   : > { %4829 = vrot.lane.b32.xlu0 %v4789_v25, %s6084_s28  ;;  %4827 = vrot.lane.b32.xlu1 %v4788_v0, %s6084_s28 }
 0xab1   : > { %v4748_v26 = vpop.permute.xlu0 %4747  ;;  %v4738_v30 = vpop.permute.xlu2 %4737 }
 0xab2   : > { %v4780_v20 = vsub.f32 %v8036_v60, %v4748_v26  ;;  %v8282_v60 = vld [vmem:[%s6187_s29 + $0x40] sm:$0xff]  ;;  %v4775_v48 = vsub.f32 %v8049_v33, %v4738_v30  ;;  %v8311_v30 = vld [vmem:[%s6187_s29 + $0x68] sm:$0xff] }
 0xab3   : > { %v8286_v6 = vmul.f32 %v8282_v60, %v8004_v45 }
 0xab4   : > { %v4796_v24 = vmul.f32 0.1, %v4780_v20  ;;  %v4578_v32 = vpop.permute.xlu1 %4577  ;;  %v4630_v20 = vmul.f32 0.1, %v4614_v63 }
 0xab5   : > { %v4615_v19 = vsub.f32 %v8272_v31, %v4578_v32 }
 0xab6   : > { %4843 = vrot.lane.b32.xlu2 %v4796_v24, %s6084_s28 }
 0xab7   : > { %v4631_v47 = vmul.f32 0.1, %v4615_v19 }
 0xab8   : > { %4683 = vrot.lane.b32.xlu1 %v4636_v15, %s6085_s2 }
 0xab9   : > { %4673 = vrot.lane.b32.xlu0 %v4631_v47, %s6085_s2  ;;  %v4574_v50 = vpop.permute.xlu0 %4573  ;;  %v8291_v25 = vpop.permute.xlu2 %4915 }
 0xaba   : > { %v4613_v0 = vsub.f32 %v8286_v6, %v4574_v50  ;;  %v8304_v50 = vmul.f32 %v8115_v28, %v8072_v12  ;;  %v8320_v12 = vld [vmem:[%s6187_s29 + $0x58] sm:$0xff] }
 0xabc   : > { %v4629_v26 = vmul.f32 0.1, %v4613_v0  ;;  %v4740_v4 = vpop.permute.xlu1 %4739 }
 0xabd   : > { %v4776_v35 = vsub.f32 %v8061_v14, %v4740_v4  ;;  %v4791_v14 = vmul.f32 0.1, %v4775_v48 }
 0xabe   : > { %4669 = vrot.lane.b32.xlu2 %v4629_v26, %s6085_s2 }
 0xabf   : > { %v4792_v24 = vmul.f32 0.1, %v4776_v35 }
 0xac0   : > { %4671 = vrot.lane.b32.xlu1 %v4630_v20, %s6085_s2 }
 0xac1   : > { %4835 = vrot.lane.b32.xlu0 %v4792_v24, %s6084_s28  ;;  %v4736_v45 = vpop.permute.xlu0 %4735  ;;  %v4582_v47 = vpop.permute.xlu2 %4581  ;;  %v8324_v24 = vmul.f32 %v8320_v12, %v8053_v9 }
 0xac2   : > { %v4774_v32 = vsub.f32 %v8070_v27, %v4736_v45  ;;  %v4617_v33 = vsub.f32 %v8304_v50, %v4582_v47  ;;  %v8315_v27 = vmul.f32 %v8311_v30, %v8085_v55 }
 0xac4   : > { %v4790_v19 = vmul.f32 0.1, %v4774_v32  ;;  %v8299_v15 = vpop.permute.xlu1 %4917  ;;  %v4633_v4 = vmul.f32 0.1, %v4617_v33 }
 0xac6   : > { %4831 = vrot.lane.b32.xlu2 %v4790_v19, %s6084_s28 }
 0xac8   : > { %4833 = vrot.lane.b32.xlu1 %v4791_v14, %s6084_s28 }
 0xac9   : > { %v8307_v63 = vpop.permute.xlu0 %4913  ;;  %v4744_v20 = vpop.permute.xlu2 %4743 }
 0xaca   : > { %v4778_v55 = vsub.f32 %v8098_v43, %v4744_v20  ;;  %v8337_v43 = vmul.f32 %v8155_v21, %v8144_v58 }
 0xacc   : > { %v4584_v0 = vpop.permute.xlu1 %4583  ;;  %v4794_v19 = vmul.f32 0.1, %v4778_v55 }
 0xacd   : > { %v4618_v26 = vsub.f32 %v8315_v27, %v4584_v0 }
 0xacf   : > { %v4634_v35 = vmul.f32 0.1, %v4618_v26 }
 0xad0   : > { %4677 = vrot.lane.b32.xlu1 %v4633_v4, %s6085_s2 }
 0xad1   : > { %4679 = vrot.lane.b32.xlu0 %v4634_v35, %s6085_s2  ;;  %v4580_v45 = vpop.permute.xlu0 %4579  ;;  %v4814_v9 = vpop.permute.xlu2 %4813 }
 0xad2   : > { %v4616_v48 = vsub.f32 %v8324_v24, %v4580_v45  ;;  %v4861_v58 = vadd.f32 %v8163_v23, %v4814_v9 }
 0xad4   : > { %v4632_v32 = vmul.f32 0.1, %v4616_v48 }
 0xad6   : > { %4675 = vrot.lane.b32.xlu2 %v4632_v32, %s6085_s2 }
 0xad8   : > { %4839 = vrot.lane.b32.xlu1 %v4794_v19, %s6084_s28 }
 0xad9   : > { %v4742_v47 = vpop.permute.xlu0 %4741  ;;  %v4658_v0 = vpop.permute.xlu2 %4657 }
 0xada   : > { %v4777_v14 = vsub.f32 %v8118_v57, %v4742_v47 }
 0xadc   : > { %v4793_v33 = vmul.f32 0.1, %v4777_v14 }
 0xade   : > { %4837 = vrot.lane.b32.xlu2 %v4793_v33, %s6084_s28 }
 0xae0   : > { %4923 = vrot.lane.b32.xlu1 %v8032_v40, %s6081_s25 }
 0xae1   : > { %v4820_v55 = vpop.permute.xlu2 %4819 }
 0xae9   : > { %v4664_v14 = vpop.permute.xlu2 %4663 }
 0xaf2   : > { %v4586_v26 = vpop.permute.xlu0 %4585  ;;  %v4746_v4 = vpop.permute.xlu1 %4745 }
 0xaf3   : > { %v4619_v35 = vsub.f32 %v8337_v43, %v4586_v26  ;;  %v4779_v20 = vsub.f32 %v8159_v56, %v4746_v4  ;;  %v4703_v26 = vadd.f32 %v8136_v34, %v4658_v0 }
 0xaf5   : > { %v4635_v45 = vmul.f32 0.1, %v4619_v35  ;;  %v4795_v57 = vmul.f32 0.1, %v4779_v20 }
 0xaf7   : > { %4681 = vrot.lane.b32.xlu2 %v4635_v45, %s6085_s2  ;;  %4841 = vrot.lane.b32.xlu0 %v4795_v57, %s6084_s28 }
 0xafa   : > { %v4656_v40 = vpop.permute.xlu0 %4655  ;;  %v4654_v48 = vpop.permute.xlu1 %4653 }
 0xafb   : > { %v4701_v32 = vadd.f32 %v8163_v23, %v4654_v48  ;;  %v4702_v4 = vadd.f32 %v8170_v44, %v4656_v40 }
 0xafd   : > { %v4942_v56 = vsel %vm4941_vm12, %v4701_v32, %v4861_v58  ;;  %v4864_v58 = vadd.f32 %v8203_v2, %v4820_v55 }
 0xafe   : > { %v4959_v19 = vsel %vm4958_vm0, %v4942_v56, %v8167_v10  ;;  %v4826_v56 = vpop.permute.xlu2 %4825 }
 0xaff   : > { %v4976_v47 = vsel %vm4975_vm15, %v4959_v19, %v8094_v51  ;;  %4921 = vrot.lane.b32.xlu2 %v8150_v37, %s6081_s25  ;;  %4919 = vrot.lane.b32.xlu0 %v8088_v36, %s6081_s25 }
 0xb00   : > { %v4993_v23 = vsel %vm4992_vm1, %v4976_v47, %v8094_v51 }
 0xb01   : > { %v5010_v33 = vsel %vm5009_vm2, %v4993_v23, 0.0 }
 0xb02   : > { %5027 = vst.msk [vmem:[%s6192_s13] sm:$0xff] %vm5026_vm3, %v5010_v33  ;;  %v4818_v9 = vpop.permute.xlu0 %4817  ;;  %v4816_v10 = vpop.permute.xlu1 %4815 }
 0xb03   : > { %v4863_v37 = vadd.f32 %v8136_v34, %v4818_v9  ;;  %v4862_v36 = vadd.f32 %v8170_v44, %v4816_v10 }
 0xb05   : > { %v4944_v35 = vsel %vm4941_vm12, %v4703_v26, %v4863_v37  ;;  %v4943_v51 = vsel %vm4941_vm12, %v4702_v4, %v4862_v36 }
 0xb06   : > { %v4961_v20 = vsel %vm4958_vm0, %v4944_v35, %v8140_v52  ;;  %v4960_v45 = vsel %vm4958_vm0, %v4943_v51, %v8174_v11  ;;  %v8631_v35 = vld [vmem:[#allocation7_spill] sm:$0xff] }
 0xb07   : > { %v4978_v0 = vsel %vm4975_vm15, %v4961_v20, %v8112_v5  ;;  %v4977_v57 = vsel %vm4975_vm15, %v4960_v45, %v8110_v17 }
 0xb08   : > { %v4995_v34 = vsel %vm4992_vm1, %v4978_v0, %v8112_v5  ;;  %v4994_v44 = vsel %vm4992_vm1, %v4977_v57, %v8110_v17  ;;  %v4867_v0 = vadd.f32 %v8229_v18, %v4826_v56 }
 0xb09   : > { %v5012_v40 = vsel %vm5009_vm2, %v4995_v34, 0.0  ;;  %v5011_v52 = vsel %vm5009_vm2, %v4994_v44, 0.0 }
 0xb0a   : > { %5029 = vst.msk [vmem:[%s6192_s13 + $0x10] sm:$0xff] %vm5026_vm3, %v5012_v40  ;;  %v4662_v11 = vpop.permute.xlu0 %4661  ;;  %v4660_v48 = vpop.permute.xlu1 %4659 }
 0xb0b   : > { %5028 = vst.msk [vmem:[%s6192_s13 + $0x8] sm:$0xff] %vm5026_vm3, %v5011_v52  ;;  %v4704_v32 = vadd.f32 %v8203_v2, %v4660_v48  ;;  %v4706_v2 = vadd.f32 %v8185_v22, %v4664_v14  ;;  %v4705_v9 = vadd.f32 %v8210_v46, %v4662_v11 }
 0xb0d   : > { %v4945_v5 = vsel %vm4941_vm12, %v4704_v32, %v4864_v58 }
 0xb0e   : > { %v4962_v17 = vsel %vm4958_vm0, %v4945_v5, %v8207_v59 }
 0xb0f   : > { %v4979_v19 = vsel %vm4975_vm15, %v4962_v17, %v8131_v61 }
 0xb10   : > { %v4996_v47 = vsel %vm4992_vm1, %v4979_v19, %v8131_v61  ;;  %v8399_v26 = vpop.permute.xlu2 %4843 }
 0xb11   : > { %v5013_v23 = vsel %vm5009_vm2, %v4996_v47, 0.0 }
 0xb12   : > { %5030 = vst.msk [vmem:[%s6192_s13 + $0x18] sm:$0xff] %vm5026_vm3, %v5013_v23  ;;  %v4824_v55 = vpop.permute.xlu0 %4823  ;;  %v4822_v33 = vpop.permute.xlu1 %4821 }
 0xb13   : > { %v4866_v10 = vadd.f32 %v8185_v22, %v4824_v55  ;;  %v4865_v59 = vadd.f32 %v8210_v46, %v4822_v33 }
 0xb15   : > { %v4947_v61 = vsel %vm4941_vm12, %v4706_v2, %v4866_v10  ;;  %v4946_v4 = vsel %vm4941_vm12, %v4705_v9, %v4865_v59 }
 0xb16   : > { %v4964_v37 = vsel %vm4958_vm0, %v4947_v61, %v8189_v42  ;;  %v4963_v36 = vsel %vm4958_vm0, %v4946_v4, %v8214_v53 }
 0xb17   : > { %v4981_v14 = vsel %vm4975_vm15, %v4964_v37, %v8152_v41  ;;  %v4980_v22 = vsel %vm4975_vm15, %v4963_v36, %v8631_v35 }
 0xb18   : > { %v4998_v46 = vsel %vm4992_vm1, %v4981_v14, %v8152_v41  ;;  %v4997_v51 = vsel %vm4992_vm1, %v4980_v22, %v8631_v35  ;;  %v4670_v44 = vpop.permute.xlu2 %4669 }
 0xb19   : > { %v5015_v20 = vsel %vm5009_vm2, %v4998_v46, 0.0  ;;  %v5014_v42 = vsel %vm5009_vm2, %v4997_v51, 0.0  ;;  %v4709_v32 = vadd.f32 %v8282_v60, %v4670_v44 }
 0xb1a   : > { %5032 = vst.msk [vmem:[%s6192_s13 + $0x28] sm:$0xff] %vm5026_vm3, %v5015_v20  ;;  %v4668_v53 = vpop.permute.xlu0 %4667  ;;  %v4666_v45 = vpop.permute.xlu1 %4665 }
 0xb1b   : > { %5031 = vst.msk [vmem:[%s6192_s13 + $0x20] sm:$0xff] %vm5026_vm3, %v5014_v42  ;;  %v4707_v57 = vadd.f32 %v8229_v18, %v4666_v45  ;;  %v4708_v18 = vadd.f32 %v8236_v7, %v4668_v53 }
 0xb1d   : > { %v4948_v41 = vsel %vm4941_vm12, %v4707_v57, %v4867_v0 }
 0xb1e   : > { %v4965_v34 = vsel %vm4958_vm0, %v4948_v41, %v8233_v8 }
 0xb1f   : > { %v4982_v40 = vsel %vm4975_vm15, %v4965_v34, %v8199_v38 }
 0xb20   : > { %v4999_v52 = vsel %vm4992_vm1, %v4982_v40, %v8199_v38  ;;  %v4832_v55 = vpop.permute.xlu2 %4831 }
 0xb21   : > { %v5016_v11 = vsel %vm5009_vm2, %v4999_v52, 0.0 }
 0xb22   : > { %5033 = vst.msk [vmem:[%s6192_s13 + $0x30] sm:$0xff] %vm5026_vm3, %v5016_v11  ;;  %v4830_v48 = vpop.permute.xlu0 %4829  ;;  %v4828_v58 = vpop.permute.xlu1 %4827 }
 0xb23   : > { %v4869_v8 = vadd.f32 %v8282_v60, %v4830_v48  ;;  %v4868_v56 = vadd.f32 %v8236_v7, %v4828_v58 }
 0xb25   : > { %v4950_v5 = vsel %vm4941_vm12, %v4709_v32, %v4869_v8  ;;  %v4949_v38 = vsel %vm4941_vm12, %v4708_v18, %v4868_v56 }
 0xb26   : > { %v4967_v17 = vsel %vm4958_vm0, %v4950_v5, %v8286_v6  ;;  %v4966_v19 = vsel %vm4958_vm0, %v4949_v38, %v8240_v3 }
 0xb27   : > { %v4984_v47 = vsel %vm4975_vm15, %v4967_v17, %v8244_v1  ;;  %v4983_v23 = vsel %vm4975_vm15, %v4966_v19, %v8250_v39 }
 0xb28   : > { %v5001_v60 = vsel %vm4992_vm1, %v4984_v47, %v8244_v1  ;;  %v5000_v7 = vsel %vm4992_vm1, %v4983_v23, %v8250_v39  ;;  %v4870_v1 = vadd.f32 %v8066_v62, %v4832_v55 }
 0xb29   : > { %v5018_v33 = vsel %vm5009_vm2, %v5001_v60, 0.0  ;;  %v5017_v6 = vsel %vm5009_vm2, %v5000_v7, 0.0 }
 0xb2a   : > { %5035 = vst.msk [vmem:[%s6192_s13 + $0x40] sm:$0xff] %vm5026_vm3, %v5018_v33  ;;  %v4684_v3 = vpop.permute.xlu1 %4683 }
 0xb2b   : > { %5034 = vst.msk [vmem:[%s6192_s13 + $0x38] sm:$0xff] %vm5026_vm3, %v5017_v6  ;;  %v4674_v2 = vpop.permute.xlu0 %4673  ;;  %v4716_v48 = vadd.f32 %v8257_v16, %v4684_v3 }
 0xb2c   : > { %v4711_v42 = vadd.f32 %v8268_v49, %v4674_v2 }
 0xb30   : > { %v4676_v9 = vpop.permute.xlu2 %4675 }
 0xb31   : > { %v4712_v59 = vadd.f32 %v8320_v12, %v4676_v9 }
 0xb32   : > { %v4672_v10 = vpop.permute.xlu1 %4671 }
 0xb33   : > { %v4710_v39 = vadd.f32 %v8066_v62, %v4672_v10  ;;  %v4836_v61 = vpop.permute.xlu0 %4835 }
 0xb34   : > { %v4872_v4 = vadd.f32 %v8320_v12, %v4836_v61 }
 0xb35   : > { %v4951_v37 = vsel %vm4941_vm12, %v4710_v39, %v4870_v1 }
 0xb36   : > { %v4968_v36 = vsel %vm4958_vm0, %v4951_v37, %v8278_v54  ;;  %v4953_v14 = vsel %vm4941_vm12, %v4712_v59, %v4872_v4 }
 0xb37   : > { %v4985_v35 = vsel %vm4975_vm15, %v4968_v36, %v8254_v13  ;;  %v4970_v22 = vsel %vm4958_vm0, %v4953_v14, %v8324_v24 }
 0xb38   : > { %v5002_v62 = vsel %vm4992_vm1, %v4985_v35, %v8254_v13  ;;  %v4987_v12 = vsel %vm4975_vm15, %v4970_v22, %v8291_v25  ;;  %v4838_v0 = vpop.permute.xlu2 %4837 }
 0xb39   : > { %v5019_v46 = vsel %vm5009_vm2, %v5002_v62, 0.0  ;;  %v5004_v54 = vsel %vm4992_vm1, %v4987_v12, %v8291_v25 }
 0xb3a   : > { %5036 = vst.msk [vmem:[%s6192_s13 + $0x48] sm:$0xff] %vm5026_vm3, %v5019_v46  ;;  %v5021_v51 = vsel %vm5009_vm2, %v5004_v54, 0.0  ;;  %v4834_v20 = vpop.permute.xlu1 %4833 }
 0xb3b   : > { %5038 = vst.msk [vmem:[%s6192_s13 + $0x58] sm:$0xff] %vm5026_vm3, %v5021_v51  ;;  %v4871_v13 = vadd.f32 %v8268_v49, %v4834_v20  ;;  %v4873_v49 = vadd.f32 %v8115_v28, %v4838_v0 }
 0xb3d   : > { %v4952_v24 = vsel %vm4941_vm12, %v4711_v42, %v4871_v13 }
 0xb3e   : > { %v4969_v53 = vsel %vm4958_vm0, %v4952_v24, %v8272_v31 }
 0xb3f   : > { %v4986_v25 = vsel %vm4975_vm15, %v4969_v53, %v8307_v63 }
 0xb40   : > { %v5003_v45 = vsel %vm4992_vm1, %v4986_v25, %v8307_v63 }
 0xb41   : > { %v5020_v57 = vsel %vm5009_vm2, %v5003_v45, 0.0 }
 0xb42   : > { %5037 = vst.msk [vmem:[%s6192_s13 + $0x50] sm:$0xff] %vm5026_vm3, %v5020_v57  ;;  %v4678_v41 = vpop.permute.xlu1 %4677 }
 0xb43   : > { %v4713_v34 = vadd.f32 %v8115_v28, %v4678_v41  ;;  %v4876_v28 = vadd.f32 %v8257_v16, %v8399_v26  ;;  %v4680_v56 = vpop.permute.xlu0 %4679 }
 0xb45   : > { %v4954_v44 = vsel %vm4941_vm12, %v4713_v34, %v4873_v49  ;;  %v4957_v58 = vsel %vm4941_vm12, %v4716_v48, %v4876_v28 }
 0xb46   : > { %v4971_v31 = vsel %vm4958_vm0, %v4954_v44, %v8304_v50  ;;  %v4974_v50 = vsel %vm4958_vm0, %v4957_v58, %v8261_v29  ;;  %v4714_v29 = vadd.f32 %v8311_v30, %v4680_v56 }
 0xb47   : > { %v4988_v40 = vsel %vm4975_vm15, %v4971_v31, %v8299_v15 }
 0xb48   : > { %v5005_v63 = vsel %vm4992_vm1, %v4988_v40, %v8299_v15 }
 0xb49   : > { %v5022_v52 = vsel %vm5009_vm2, %v5005_v63, 0.0 }
 0xb4a   : > { %5039 = vst.msk [vmem:[%s6192_s13 + $0x60] sm:$0xff] %vm5026_vm3, %v5022_v52  ;;  %v4840_v11 = vpop.permute.xlu1 %4839 }
 0xb4b   : > { %v4874_v16 = vadd.f32 %v8311_v30, %v4840_v11 }
 0xb4d   : > { %v4955_v60 = vsel %vm4941_vm12, %v4714_v29, %v4874_v16 }
 0xb51   : > { %v4682_v5 = vpop.permute.xlu2 %4681 }
 0xb52   : > { %v4924_v18 = vpop.permute.xlu1 %4923  ;;  %v4715_v26 = vadd.f32 %v8155_v21, %v4682_v5 }
 0xb53   : > { %v4991_v32 = vsel %vm4975_vm15, %v4974_v50, %v4924_v18 }
 0xb54   : > { %v5008_v15 = vsel %vm4992_vm1, %v4991_v32, %v4924_v18 }
 0xb55   : > { %v5025_v8 = vsel %vm5009_vm2, %v5008_v15, 0.0 }
 0xb56   : > { %5042 = vst.msk [vmem:[%s6192_s13 + $0x78] sm:$0xff] %vm5026_vm3, %v5025_v8 }
 0xb59   : > { %v4922_v47 = vpop.permute.xlu2 %4921 }
 0xb69   : > { %v4842_v38 = vpop.permute.xlu0 %4841 }
 0xb6a   : > { %v4875_v17 = vadd.f32 %v8155_v21, %v4842_v38  ;;  %v4972_v21 = vsel %vm4958_vm0, %v4955_v60, %v8315_v27 }
 0xb6c   : > { %v4956_v19 = vsel %vm4941_vm12, %v4715_v26, %v4875_v17 }
 0xb6d   : > { %v4973_v23 = vsel %vm4958_vm0, %v4956_v19, %v8337_v43 }
 0xb6e   : > { %v4990_v7 = vsel %vm4975_vm15, %v4973_v23, %v4922_v47 }
 0xb6f   : > { %v5007_v55 = vsel %vm4992_vm1, %v4990_v7, %v4922_v47 }
 0xb70   : > { %v5024_v33 = vsel %vm5009_vm2, %v5007_v55, 0.0 }
 0xb71   : > { %5041 = vst.msk [vmem:[%s6192_s13 + $0x70] sm:$0xff] %vm5026_vm3, %v5024_v33  ;;  %v4920_v6 = vpop.permute.xlu0 %4919 }
 0xb72   : > { %v4989_v30 = vsel %vm4975_vm15, %v4972_v21, %v4920_v6 }
 0xb73   : > { %v5006_v3 = vsel %vm4992_vm1, %v4989_v30, %v4920_v6 }
 0xb74   : > { %v5023_v43 = vsel %vm5009_vm2, %v5006_v3, 0.0 }
 0xb75   : > { %5040 = vst.msk [vmem:[%s6192_s13 + $0x68] sm:$0xff] %vm5026_vm3, %v5023_v43 }
 0xb76 PF: > { %s21_s21 = sadd.s32 1, %s6074_s21   ;;  %s8632_s17 = smov %s6066_s19 }
 0xb77   : > { %p18_p10 = scmp.ge.s32.totalorder %s21_s21, 6   ;;  %s8633_s18 = smov %s6070_s20 }
 0xb78   : > { %s8634_s19 = smov %s8637_s22  ;;  %s8635_s20 = smov %s8641_s23 }
 0xb79   :  { %20 = sbr.rel (!%p18_p10) target bundleno = 3 (0x3), region = 115 }

</bundles_post_ra>
